<compile_context>
chip_gen: v6e
topology: v6e:2x2x1
jax: 0.10.0
libtpu: 0.0.40
codegen_flags: <defaults>
</compile_context>

<pallas_src>
import jax
import jax.numpy as jnp
from jax.experimental import pallas as pl
from jax.experimental.pallas import tpu as pltpu

N_FEATURES = 100
K_PAD = 128            # padded first-layer contraction dim (multiple of 128)
H0, H1, H2 = 256, 512, 1024
N_OUT = 784
N_OUT_PAD = 896        # 7 * 128, lane-dense output


def _round_up(x, m):
    return (x + m - 1) // m * m


def _leaky_relu(x, slope=0.2):
    return jnp.where(x > 0, x, slope * x)


def generator_kernel(x_ref,
                     w0_ref, b0_ref,
                     w1_ref, b1_ref,
                     w2_ref, s2_ref, b2_ref,
                     w3_ref, s3_ref, b3_ref,
                     o_ref):
    """One batch tile: 4 fused Linear layers.

    Layers 0/1: bf16 weights.  Layers 2/3: int8 weights, upcast to bf16 in-kernel,
    per-output-channel scale applied after the f32-accumulated dot.
    """
    h = x_ref[...]                                               # bf16 [TB, 128]

    # hidden0: 128 -> 256
    z = jnp.dot(h, w0_ref[...], preferred_element_type=jnp.float32) + b0_ref[...]
    h = _leaky_relu(z).astype(jnp.bfloat16)

    # hidden1: 256 -> 512
    z = jnp.dot(h, w1_ref[...], preferred_element_type=jnp.float32) + b1_ref[...]
    h = _leaky_relu(z).astype(jnp.bfloat16)

    # hidden2: 512 -> 1024  (int8 weights -> bf16, scale post-dot)
    z = jnp.dot(h, w2_ref[...].astype(jnp.bfloat16),
                preferred_element_type=jnp.float32)
    z = z * s2_ref[...] + b2_ref[...]
    h = _leaky_relu(z).astype(jnp.bfloat16)

    # out: 1024 -> 896 (padded 784), Tanh
    z = jnp.dot(h, w3_ref[...].astype(jnp.bfloat16),
                preferred_element_type=jnp.float32)
    z = z * s3_ref[...] + b3_ref[...]
    o_ref[...] = jnp.tanh(z).astype(o_ref.dtype)                 # bf16 store


def _choose_tb(B):
    """Batch tile: multiple of 16 (bf16 sublane packing); >=2 tiles once B>=256
    so both v7x TensorCores get work; 256 rows for large batches."""
    b16 = _round_up(B, 16)
    if b16 >= 512:
        return 256
    if b16 >= 256:
        return 128
    return b16


def generator_forward(x, params):
    """x: [B, 100] f32.  params: padded/quantized weights.  Returns [B, 784] f32."""
    B = x.shape[0]
    TB = _choose_tb(B)
    B_pad = _round_up(B, TB)

    # Zero-pad batch (to B_pad) and first contraction dim (100 -> 128); cast to bf16.
    x_pad = jnp.pad(x, ((0, B_pad - B), (0, K_PAD - N_FEATURES))).astype(jnp.bfloat16)

    w0, b0 = params["w0"], params["b0"]               # bf16 [128,256],  f32 [1,256]
    w1, b1 = params["w1"], params["b1"]               # bf16 [256,512],  f32 [1,512]
    w2, s2, b2 = params["w2"], params["s2"], params["b2"]   # i8 [512,1024], f32 [1,1024] x2
    w3, s3, b3 = params["w3"], params["s3"], params["b3"]   # i8 [1024,896], f32 [1,896]  x2

    # Whole-array VMEM residents: one DMA, no double-buffering.
    vmem_resident = pl.BlockSpec(memory_space=pltpu.MemorySpace.VMEM)

    out_pad = pl.pallas_call(
        generator_kernel,
        out_shape=jax.ShapeDtypeStruct((B_pad, N_OUT_PAD), jnp.bfloat16),
        grid=(B_pad // TB,),
        in_specs=[
            pl.BlockSpec((TB, K_PAD), lambda i: (i, 0)),
            vmem_resident, vmem_resident,                    # w0, b0
            vmem_resident, vmem_resident,                    # w1, b1
            vmem_resident, vmem_resident, vmem_resident,     # w2, s2, b2
            vmem_resident, vmem_resident, vmem_resident,     # w3, s3, b3
        ],
        out_specs=pl.BlockSpec((TB, N_OUT_PAD), lambda i: (i, 0)),
        compiler_params=pltpu.CompilerParams(
            dimension_semantics=("parallel",),
            vmem_limit_bytes=32 << 20,
        ),
    )(x_pad, w0, b0, w1, b1, w2, s2, b2, w3, s3, b3)

    # Crop padding + upcast; fuses into one small XLA op on the bf16 result.
    return out_pad[:B, :N_OUT].astype(jnp.float32)


def init_params(key):
    """PyTorch nn.Linear default init U(-1/sqrt(fan_in), 1/sqrt(fan_in)).

    Weights stored [in, out].  Layer 0: K padded 100 -> 128 (zero rows), bf16.
    Layer 1: bf16.  Layers 2/3: symmetric per-output-channel int8 + f32 scale
    (layer 3 N padded 784 -> 896 with zero cols).  Biases kept f32."""
    dims = [(N_FEATURES, H0), (H0, H1), (H1, H2), (H2, N_OUT)]
    params = {}
    keys = jax.random.split(key, 2 * len(dims))
    for i, (fan_in, fan_out) in enumerate(dims):
        bound = 1.0 / (fan_in ** 0.5)
        w = jax.random.uniform(keys[2 * i], (fan_in, fan_out), jnp.float32, -bound, bound)
        b = jax.random.uniform(keys[2 * i + 1], (1, fan_out), jnp.float32, -bound, bound)
        if i == 0:
            w = jnp.pad(w, ((0, K_PAD - fan_in), (0, 0)))            # zero K-rows
        if i == 3:
            w = jnp.pad(w, ((0, 0), (0, N_OUT_PAD - fan_out)))       # zero N-cols
            b = jnp.pad(b, ((0, 0), (0, N_OUT_PAD - fan_out)))
        if i >= 2:
            amax = jnp.max(jnp.abs(w), axis=0, keepdims=True)
            scale = jnp.where(amax > 0, amax / 127.0, 1.0)
            wq = jnp.clip(jnp.round(w / scale), -127, 127).astype(jnp.int8)
            params[f"w{i}"] = wq
            params[f"s{i}"] = scale.astype(jnp.float32)
        else:
            params[f"w{i}"] = w.astype(jnp.bfloat16)
        params[f"b{i}"] = b.astype(jnp.float32)
    return params


def generator_reference(x, params):
    """Pure-JAX reference mirroring the kernel's math (bf16 ops, f32 accum,
    int8-dequant layers 2/3 with post-dot scale)."""
    B = x.shape[0]
    h = jnp.pad(x, ((0, 0), (0, K_PAD - N_FEATURES))).astype(jnp.bfloat16)
    for i in range(2):
        z = jnp.dot(h, params[f"w{i}"], preferred_element_type=jnp.float32)
        z = z + params[f"b{i}"]
        h = jnp.where(z > 0, z, 0.2 * z).astype(jnp.bfloat16)
    # layer 2
    z = jnp.dot(h, params["w2"].astype(jnp.bfloat16), preferred_element_type=jnp.float32)
    z = z * params["s2"] + params["b2"]
    h = jnp.where(z > 0, z, 0.2 * z).astype(jnp.bfloat16)
    # layer 3
    z = jnp.dot(h, params["w3"].astype(jnp.bfloat16), preferred_element_type=jnp.float32)
    z = z * params["s3"] + params["b3"]
    return jnp.tanh(z)[:B, :N_OUT]


if __name__ == "__main__":
    key = jax.random.PRNGKey(0)
    pkey, xkey = jax.random.split(key)
    params = init_params(pkey)

    B = 8  # small batch
    x = jax.random.normal(xkey, (B, N_FEATURES), jnp.float32)

    out = generator_forward(x, params)
    out = jax.block_until_ready(out)

    ref = generator_reference(x, params)
    assert out.shape == (B, N_OUT), out.shape
    assert jnp.allclose(out, ref, atol=2e-2, rtol=2e-2), "mismatch vs reference"

    print("KERNEL_OK")
</pallas_src>

<mosaic_0001>
module attributes {stable_mosaic.version = 11 : i64} {
  func.func @generator_kernel(%arg0: i32, %arg1: memref<16x128xbf16, #tpu.memory_space<vmem>>, %arg2: memref<128x256xbf16, #tpu.memory_space<vmem>>, %arg3: memref<1x256xf32, #tpu.memory_space<vmem>>, %arg4: memref<256x512xbf16, #tpu.memory_space<vmem>>, %arg5: memref<1x512xf32, #tpu.memory_space<vmem>>, %arg6: memref<512x1024xi8, #tpu.memory_space<vmem>>, %arg7: memref<1x1024xf32, #tpu.memory_space<vmem>>, %arg8: memref<1x1024xf32, #tpu.memory_space<vmem>>, %arg9: memref<1024x896xi8, #tpu.memory_space<vmem>>, %arg10: memref<1x896xf32, #tpu.memory_space<vmem>>, %arg11: memref<1x896xf32, #tpu.memory_space<vmem>>, %arg12: memref<16x896xbf16, #tpu.memory_space<vmem>>) attributes {dimension_semantics = [#tpu.dimension_semantics<parallel>], iteration_bounds = array<i64: 1>, scalar_prefetch = 0 : i64, scratch_operands = 0 : i64, tpu.core_type = #tpu.core_type<tc>, window_params = [{transform_indices = @transform_0, window_bounds = array<i64: 16, 128>}, {pipeline_mode = #tpu.pipeline_mode<synchronous>, transform_indices = @transform_1, window_bounds = array<i64: 128, 256>}, {pipeline_mode = #tpu.pipeline_mode<synchronous>, transform_indices = @transform_2, window_bounds = array<i64: 1, 256>}, {pipeline_mode = #tpu.pipeline_mode<synchronous>, transform_indices = @transform_3, window_bounds = array<i64: 256, 512>}, {pipeline_mode = #tpu.pipeline_mode<synchronous>, transform_indices = @transform_4, window_bounds = array<i64: 1, 512>}, {pipeline_mode = #tpu.pipeline_mode<synchronous>, transform_indices = @transform_5, window_bounds = array<i64: 512, 1024>}, {pipeline_mode = #tpu.pipeline_mode<synchronous>, transform_indices = @transform_6, window_bounds = array<i64: 1, 1024>}, {pipeline_mode = #tpu.pipeline_mode<synchronous>, transform_indices = @transform_7, window_bounds = array<i64: 1, 1024>}, {pipeline_mode = #tpu.pipeline_mode<synchronous>, transform_indices = @transform_8, window_bounds = array<i64: 1024, 896>}, {pipeline_mode = #tpu.pipeline_mode<synchronous>, transform_indices = @transform_9, window_bounds = array<i64: 1, 896>}, {pipeline_mode = #tpu.pipeline_mode<synchronous>, transform_indices = @transform_10, window_bounds = array<i64: 1, 896>}, {transform_indices = @transform_11, window_bounds = array<i64: 16, 896>}]} {
    %c0 = arith.constant 0 : index
    %c0_0 = arith.constant 0 : index
    %0 = vector.load %arg1[%c0, %c0_0] : memref<16x128xbf16, #tpu.memory_space<vmem>>, vector<16x128xbf16>
    %c0_1 = arith.constant 0 : index
    %c0_2 = arith.constant 0 : index
    %1 = vector.load %arg2[%c0_1, %c0_2] : memref<128x256xbf16, #tpu.memory_space<vmem>>, vector<128x256xbf16>
    %cst = arith.constant dense<0.000000e+00> : vector<16x256xf32>
    %2 = tpu.matmul %0, %1, %cst {dimension_numbers = #tpu.dot_dimension_numbers<[1], [0], [0], [1], [0, 0, 1, 1], [], []>} : vector<16x128xbf16>, vector<128x256xbf16>, vector<16x256xf32> -> vector<16x256xf32>
    %c0_3 = arith.constant 0 : index
    %c0_4 = arith.constant 0 : index
    %3 = vector.load %arg3[%c0_3, %c0_4] : memref<1x256xf32, #tpu.memory_space<vmem>>, vector<1x256xf32>
    %4 = vector.broadcast %3 : vector<1x256xf32> to vector<16x256xf32>
    %5 = arith.addf %2, %4 : vector<16x256xf32>
    %cst_5 = arith.constant 0.000000e+00 : f32
    %6 = vector.broadcast %cst_5 : f32 to vector<16x256xf32>
    %7 = arith.cmpf ogt, %5, %6 : vector<16x256xf32>
    %cst_6 = arith.constant 2.000000e-01 : f32
    %8 = vector.broadcast %cst_6 : f32 to vector<16x256xf32>
    %9 = arith.mulf %8, %5 : vector<16x256xf32>
    %10 = arith.select %7, %5, %9 : vector<16x256xi1>, vector<16x256xf32>
    %11 = arith.truncf %10 : vector<16x256xf32> to vector<16x256xbf16>
    %c0_7 = arith.constant 0 : index
    %c0_8 = arith.constant 0 : index
    %12 = vector.load %arg4[%c0_7, %c0_8] : memref<256x512xbf16, #tpu.memory_space<vmem>>, vector<256x512xbf16>
    %cst_9 = arith.constant dense<0.000000e+00> : vector<16x512xf32>
    %13 = tpu.matmul %11, %12, %cst_9 {dimension_numbers = #tpu.dot_dimension_numbers<[1], [0], [0], [1], [0, 0, 1, 1], [], []>} : vector<16x256xbf16>, vector<256x512xbf16>, vector<16x512xf32> -> vector<16x512xf32>
    %c0_10 = arith.constant 0 : index
    %c0_11 = arith.constant 0 : index
    %14 = vector.load %arg5[%c0_10, %c0_11] : memref<1x512xf32, #tpu.memory_space<vmem>>, vector<1x512xf32>
    %15 = vector.broadcast %14 : vector<1x512xf32> to vector<16x512xf32>
    %16 = arith.addf %13, %15 : vector<16x512xf32>
    %cst_12 = arith.constant 0.000000e+00 : f32
    %17 = vector.broadcast %cst_12 : f32 to vector<16x512xf32>
    %18 = arith.cmpf ogt, %16, %17 : vector<16x512xf32>
    %cst_13 = arith.constant 2.000000e-01 : f32
    %19 = vector.broadcast %cst_13 : f32 to vector<16x512xf32>
    %20 = arith.mulf %19, %16 : vector<16x512xf32>
    %21 = arith.select %18, %16, %20 : vector<16x512xi1>, vector<16x512xf32>
    %22 = arith.truncf %21 : vector<16x512xf32> to vector<16x512xbf16>
    %c0_14 = arith.constant 0 : index
    %c0_15 = arith.constant 0 : index
    %23 = vector.load %arg6[%c0_14, %c0_15] : memref<512x1024xi8, #tpu.memory_space<vmem>>, vector<512x1024xi8>
    %24 = arith.sitofp %23 : vector<512x1024xi8> to vector<512x1024xbf16>
    %cst_16 = arith.constant dense<0.000000e+00> : vector<16x1024xf32>
    %25 = tpu.matmul %22, %24, %cst_16 {dimension_numbers = #tpu.dot_dimension_numbers<[1], [0], [0], [1], [0, 0, 1, 1], [], []>} : vector<16x512xbf16>, vector<512x1024xbf16>, vector<16x1024xf32> -> vector<16x1024xf32>
    %c0_17 = arith.constant 0 : index
    %c0_18 = arith.constant 0 : index
    %26 = vector.load %arg7[%c0_17, %c0_18] : memref<1x1024xf32, #tpu.memory_space<vmem>>, vector<1x1024xf32>
    %27 = vector.broadcast %26 : vector<1x1024xf32> to vector<16x1024xf32>
    %28 = arith.mulf %25, %27 : vector<16x1024xf32>
    %c0_19 = arith.constant 0 : index
    %c0_20 = arith.constant 0 : index
    %29 = vector.load %arg8[%c0_19, %c0_20] : memref<1x1024xf32, #tpu.memory_space<vmem>>, vector<1x1024xf32>
    %30 = vector.broadcast %29 : vector<1x1024xf32> to vector<16x1024xf32>
    %31 = arith.addf %28, %30 : vector<16x1024xf32>
    %cst_21 = arith.constant 0.000000e+00 : f32
    %32 = vector.broadcast %cst_21 : f32 to vector<16x1024xf32>
    %33 = arith.cmpf ogt, %31, %32 : vector<16x1024xf32>
    %cst_22 = arith.constant 2.000000e-01 : f32
    %34 = vector.broadcast %cst_22 : f32 to vector<16x1024xf32>
    %35 = arith.mulf %34, %31 : vector<16x1024xf32>
    %36 = arith.select %33, %31, %35 : vector<16x1024xi1>, vector<16x1024xf32>
    %37 = arith.truncf %36 : vector<16x1024xf32> to vector<16x1024xbf16>
    %c0_23 = arith.constant 0 : index
    %c0_24 = arith.constant 0 : index
    %38 = vector.load %arg9[%c0_23, %c0_24] : memref<1024x896xi8, #tpu.memory_space<vmem>>, vector<1024x896xi8>
    %39 = arith.sitofp %38 : vector<1024x896xi8> to vector<1024x896xbf16>
    %cst_25 = arith.constant dense<0.000000e+00> : vector<16x896xf32>
    %40 = tpu.matmul %37, %39, %cst_25 {dimension_numbers = #tpu.dot_dimension_numbers<[1], [0], [0], [1], [0, 0, 1, 1], [], []>} : vector<16x1024xbf16>, vector<1024x896xbf16>, vector<16x896xf32> -> vector<16x896xf32>
    %c0_26 = arith.constant 0 : index
    %c0_27 = arith.constant 0 : index
    %41 = vector.load %arg10[%c0_26, %c0_27] : memref<1x896xf32, #tpu.memory_space<vmem>>, vector<1x896xf32>
    %42 = vector.broadcast %41 : vector<1x896xf32> to vector<16x896xf32>
    %43 = arith.mulf %40, %42 : vector<16x896xf32>
    %c0_28 = arith.constant 0 : index
    %c0_29 = arith.constant 0 : index
    %44 = vector.load %arg11[%c0_28, %c0_29] : memref<1x896xf32, #tpu.memory_space<vmem>>, vector<1x896xf32>
    %45 = vector.broadcast %44 : vector<1x896xf32> to vector<16x896xf32>
    %46 = arith.addf %43, %45 : vector<16x896xf32>
    %47 = math.tanh %46 : vector<16x896xf32>
    %48 = arith.truncf %47 : vector<16x896xf32> to vector<16x896xbf16>
    %c0_30 = arith.constant 0 : index
    %c0_31 = arith.constant 0 : index
    %49 = vector.load %arg12[%c0_30, %c0_31] : memref<16x896xbf16, #tpu.memory_space<vmem>>, vector<16x896xbf16>
    tpu.vector_store %arg12[%c0_30, %c0_31], %48 {strides = array<i32>} : memref<16x896xbf16, #tpu.memory_space<vmem>>, vector<16x896xbf16>,
    return
  }
  func.func @transform_0(%arg0: i32) -> (i32, i32) {
    %c0_i32 = arith.constant 0 : i32
    %c0_i32_0 = arith.constant 0 : i32
    return %arg0, %c0_i32 : i32, i32
  }
  func.func @transform_1(%arg0: i32) -> (i32, i32) {
    %c0_i32 = arith.constant 0 : i32
    %c0_i32_0 = arith.constant 0 : i32
    %c0_i32_1 = arith.constant 0 : i32
    return %c0_i32, %c0_i32_0 : i32, i32
  }
  func.func @transform_2(%arg0: i32) -> (i32, i32) {
    %c0_i32 = arith.constant 0 : i32
    %c0_i32_0 = arith.constant 0 : i32
    %c0_i32_1 = arith.constant 0 : i32
    return %c0_i32, %c0_i32_0 : i32, i32
  }
  func.func @transform_3(%arg0: i32) -> (i32, i32) {
    %c0_i32 = arith.constant 0 : i32
    %c0_i32_0 = arith.constant 0 : i32
    %c0_i32_1 = arith.constant 0 : i32
    return %c0_i32, %c0_i32_0 : i32, i32
  }
  func.func @transform_4(%arg0: i32) -> (i32, i32) {
    %c0_i32 = arith.constant 0 : i32
    %c0_i32_0 = arith.constant 0 : i32
    %c0_i32_1 = arith.constant 0 : i32
    return %c0_i32, %c0_i32_0 : i32, i32
  }
  func.func @transform_5(%arg0: i32) -> (i32, i32) {
    %c0_i32 = arith.constant 0 : i32
    %c0_i32_0 = arith.constant 0 : i32
    %c0_i32_1 = arith.constant 0 : i32
    return %c0_i32, %c0_i32_0 : i32, i32
  }
  func.func @transform_6(%arg0: i32) -> (i32, i32) {
    %c0_i32 = arith.constant 0 : i32
    %c0_i32_0 = arith.constant 0 : i32
    %c0_i32_1 = arith.constant 0 : i32
    return %c0_i32, %c0_i32_0 : i32, i32
  }
  func.func @transform_7(%arg0: i32) -> (i32, i32) {
    %c0_i32 = arith.constant 0 : i32
    %c0_i32_0 = arith.constant 0 : i32
    %c0_i32_1 = arith.constant 0 : i32
    return %c0_i32, %c0_i32_0 : i32, i32
  }
  func.func @transform_8(%arg0: i32) -> (i32, i32) {
    %c0_i32 = arith.constant 0 : i32
    %c0_i32_0 = arith.constant 0 : i32
    %c0_i32_1 = arith.constant 0 : i32
    return %c0_i32, %c0_i32_0 : i32, i32
  }
  func.func @transform_9(%arg0: i32) -> (i32, i32) {
    %c0_i32 = arith.constant 0 : i32
    %c0_i32_0 = arith.constant 0 : i32
    %c0_i32_1 = arith.constant 0 : i32
    return %c0_i32, %c0_i32_0 : i32, i32
  }
  func.func @transform_10(%arg0: i32) -> (i32, i32) {
    %c0_i32 = arith.constant 0 : i32
    %c0_i32_0 = arith.constant 0 : i32
    %c0_i32_1 = arith.constant 0 : i32
    return %c0_i32, %c0_i32_0 : i32, i32
  }
  func.func @transform_11(%arg0: i32) -> (i32, i32) {
    %c0_i32 = arith.constant 0 : i32
    %c0_i32_0 = arith.constant 0 : i32
    return %arg0, %c0_i32 : i32, i32
  }
}

</mosaic_0001>

<bundles_post_ra>
// kernel: tpu_custom_call.1
= control target key start
LH: loop header
LB: loop body
LE: loop exit
PB: predicated region body
PF: predicated region fallthrough
CT: control target
= control target key end

     0   :  { %16 = vsyncpa [#allocation3], 0  ;;  %s4178_s0 = inlined_call_operand.hbm [shape: bf16[16,128], index: 0, kind: input, shape index: {}]   ;;  %s4179_s1 = inlined_call_operand.hbm [shape: bf16[128,256], index: 1, kind: input, shape index: {}]   ;;  %s4180_s2 = inlined_call_operand.hbm [shape: f32[1,256], index: 2, kind: input, shape index: {}]   ;;  %s4181_s3 = inlined_call_operand.hbm [shape: bf16[256,512], index: 3, kind: input, shape index: {}]   ;;  %s4182_s4 = inlined_call_operand.hbm [shape: f32[1,512], index: 4, kind: input, shape index: {}]   ;;  %s4183_s5 = inlined_call_operand.hbm [shape: s8[512,1024], index: 5, kind: input, shape index: {}]   ;;  %s4184_s6 = inlined_call_operand.vmem [shape: f32[1,1024], index: 6, kind: input, shape index: {}]   ;;  %s4185_s7 = inlined_call_operand.hbm [shape: f32[1,1024], index: 7, kind: input, shape index: {}]   ;;  %s4186_s8 = inlined_call_operand.hbm [shape: s8[1024,896], index: 8, kind: input, shape index: {}]   ;;  %s4187_s9 = inlined_call_operand.vmem [shape: f32[1,896], index: 9, kind: input, shape index: {}]   ;;  %s4188_s10 = inlined_call_operand.hbm [shape: f32[1,896], index: 10, kind: input, shape index: {}]   ;;  %s4189_s11 = inlined_call_operand.hbm [shape: bf16[16,896], index: 11, kind: output, shape index: {}]  }
   0x1   :  { %17 = vsyncpa [#allocation6], 0 }
   0x2   :  { %18 = vsyncpa [#allocation9], 0 }
   0x3   :  { %19 = vsyncpa [#allocation12], 0 }
   0x4   :  { %20 = vsyncpa [#allocation15], 0 }
   0x5   :  { %21 = vsyncpa [#allocation4], 0  ;;  %s3856_s17 = smov [#allocation5]  }
   0x6   :  { %s39_s18 = sshll.u32 %s3856_s17, 4  ;;  %s40_s18 = int_to_ptr.vmem [resolvable:$true] %s39_s18 }
   0x7   :  { %s3652_s19 = scalar_lea.vmem %s40_s18, 2048  ;;  %p3657_p1 = scmp.lt.s32.totalorder %s40_s18, %s40_s18 }
   0x8   :  { %p3653_p0 = scmp.ne.s32.totalorder %s40_s18, %s3652_s19  ;;  %p3658_p2 = scmp.lt.s32.totalorder %s3652_s19, %s3652_s19 }
   0xa   :  { %p3659_p3 = por %p3658_p2, %p3657_p1 }
   0xc   :  { %p3660_p4 = pnand %p3659_p3, %p3653_p0 }
   0xe   :  { %3663 = shalt.err (!%p3660_p4)
}
   0xf   :  { %s3857_s20 = smov 128   ;;  %s3858_s21 = smov 8  }
  0x10   :  { %45 = dma.hbm_to_vmem [thread:$0]  %s4179_s1, 2048, %s40_s18, [#allocation6], %s3857_s20, %s3857_s20, %s3858_s21  }
  0x11   :  { %s3859_s24 = smov [#allocation8]  }
  0x12   :  { %s61_s25 = sshll.u32 %s3859_s24, 4  ;;  %s62_s25 = int_to_ptr.vmem [resolvable:$true] %s61_s25 }
  0x13   :  { %s3672_s26 = scalar_lea.vmem %s62_s25, 8192  ;;  %p3677_p6 = scmp.lt.s32.totalorder %s62_s25, %s62_s25 }
  0x14   :  { %p3673_p5 = scmp.ne.s32.totalorder %s62_s25, %s3672_s26  ;;  %p3678_p7 = scmp.lt.s32.totalorder %s3672_s26, %s3672_s26 }
  0x16   :  { %p3679_p8 = por %p3678_p7, %p3677_p6 }
  0x18   :  { %p3680_p9 = pnand %p3679_p8, %p3673_p5 }
  0x1a   :  { %3683 = shalt.err (!%p3680_p9)
}
  0x1b   :  { %s3860_s27 = smov 256   ;;  %s3861_s28 = smov 16  }
  0x1c   :  { %67 = dma.hbm_to_vmem [thread:$0]  %s4181_s3, 8192, %s62_s25, [#allocation9], %s3860_s27, %s3860_s27, %s3861_s28  }
  0x1d   :  { %s3862_s12 = smov [#allocation11]  }
  0x1e   :  { %s83_s13 = sshll.u32 %s3862_s12, 4  ;;  %s84_s13 = int_to_ptr.vmem [resolvable:$true] %s83_s13 }
  0x1f   :  { %s3692_s1 = scalar_lea.vmem %s84_s13, 16384  ;;  %p3697_p11 = scmp.lt.s32.totalorder %s84_s13, %s84_s13 }
  0x20   :  { %p3693_p10 = scmp.ne.s32.totalorder %s84_s13, %s3692_s1  ;;  %p3698_p12 = scmp.lt.s32.totalorder %s3692_s1, %s3692_s1 }
  0x22   :  { %p3699_p13 = por %p3698_p12, %p3697_p11 }
  0x24   :  { %p3700_p0 = pnand %p3699_p13, %p3693_p10 }
  0x26   :  { %3703 = shalt.err (!%p3700_p0)
}
  0x27   :  { %s3863_s14 = smov 1024   ;;  %s3864_s15 = smov 64  }
  0x28   :  { %89 = dma.hbm_to_vmem [thread:$0]  %s4183_s5, 16384, %s84_s13, [#allocation12], %s3863_s14, %s3863_s14, %s3864_s15  }
  0x29   :  { %s3865_s18 = smov [#allocation14]  }
  0x2a   :  { %s107_s19 = sshll.u32 %s3865_s18, 4  ;;  %s108_s19 = int_to_ptr.vmem [resolvable:$true] %s107_s19 }
  0x2b   :  { %s3712_s3 = scalar_lea.vmem %s108_s19, 28672  ;;  %p3717_p2 = scmp.lt.s32.totalorder %s108_s19, %s108_s19 }
  0x2c   :  { %p3713_p1 = scmp.ne.s32.totalorder %s108_s19, %s3712_s3  ;;  %p3718_p3 = scmp.lt.s32.totalorder %s3712_s3, %s3712_s3 }
  0x2e   :  { %p3719_p4 = por %p3718_p3, %p3717_p2 }
  0x30   :  { %p3720_p5 = pnand %p3719_p4, %p3713_p1 }
  0x32   :  { %3723 = shalt.err (!%p3720_p5)
}
  0x33   :  { %s3866_s20 = smov 896   ;;  %s3867_s21 = smov 56  }
  0x34   :  { %113 = dma.hbm_to_vmem [thread:$0]  %s4186_s8, 28672, %s108_s19, [#allocation15], %s3866_s20, %s3866_s20, %s3867_s21  }
  0x35   :  { %s3868_s24 = smov [#allocation2]   ;;  %s3869_s5 = smov [#allocation7]  }
  0x36   :  { %s27_s25 = sshll.u32 %s3868_s24, 4  ;;  %s52_s26 = sshll.u32 %s3869_s5, 4  ;;  %s28_s25 = int_to_ptr.vmem [resolvable:$true] %s27_s25  ;;  %s53_s26 = int_to_ptr.vmem [resolvable:$true] %s52_s26 }
  0x37   :  { %s3732_s27 = scalar_lea.vmem %s28_s25, 128  ;;  %p3737_p7 = scmp.lt.s32.totalorder %s28_s25, %s28_s25 }
  0x38   :  { %p3733_p6 = scmp.ne.s32.totalorder %s28_s25, %s3732_s27  ;;  %p3738_p8 = scmp.lt.s32.totalorder %s3732_s27, %s3732_s27 }
  0x3a   :  { %p3739_p9 = por %p3738_p8, %p3737_p7 }
  0x3c   :  { %p3740_p10 = pnand %p3739_p9, %p3733_p6 }
  0x3e   :  { %3743 = shalt.err (!%p3740_p10)
}
  0x3f   :  { %s3870_s28 = smov 4   ;;  %s3752_s8 = scalar_lea.vmem %s53_s26, 32 }
  0x40   :  { %33 = dma.hbm_to_vmem [thread:$0]  %s4178_s0, 128, %s28_s25, [#allocation3], %s3864_s15, %s3864_s15, %s3870_s28  }
  0x41   :  { %p3753_p11 = scmp.ne.s32.totalorder %s53_s26, %s3752_s8  ;;  %p3757_p12 = scmp.lt.s32.totalorder %s53_s26, %s53_s26 }
  0x42   :  { %p3758_p13 = scmp.lt.s32.totalorder %s3752_s8, %s3752_s8 }
  0x44   :  { %p3759_p0 = por %p3758_p13, %p3757_p12 }
  0x46   :  { %p3760_p1 = pnand %p3759_p0, %p3753_p11 }
  0x48   :  { %3763 = shalt.err (!%p3760_p1)
}
  0x49   :  { %55 = dma.hbm_to_vmem [thread:$0]  %s4180_s2, 32, %s53_s26, [#allocation6]  }
  0x4a   :  { %s3871_s1 = smov [#allocation10]   ;;  %s3872_s16 = smov [#allocation13]  }
  0x4b   :  { %s74_s14 = sshll.u32 %s3871_s1, 4  ;;  %s98_s17 = sshll.u32 %s3872_s16, 4  ;;  %s75_s14 = int_to_ptr.vmem [resolvable:$true] %s74_s14  ;;  %s99_s17 = int_to_ptr.vmem [resolvable:$true] %s98_s17 }
  0x4c   :  { %s3772_s18 = scalar_lea.vmem %s75_s14, 64  ;;  %p3777_p3 = scmp.lt.s32.totalorder %s75_s14, %s75_s14 }
  0x4d   :  { %p3773_p2 = scmp.ne.s32.totalorder %s75_s14, %s3772_s18  ;;  %p3778_p4 = scmp.lt.s32.totalorder %s3772_s18, %s3772_s18 }
  0x4f   :  { %p3779_p5 = por %p3778_p4, %p3777_p3 }
  0x51   :  { %p3780_p6 = pnand %p3779_p5, %p3773_p2 }
  0x53   :  { %3783 = shalt.err (!%p3780_p6)
}
  0x54   :  { %77 = dma.hbm_to_vmem [thread:$0]  %s4182_s4, 64, %s75_s14, [#allocation9]  }
  0x55   :  { %s3792_s19 = scalar_lea.vmem %s99_s17, 128  ;;  %p3797_p8 = scmp.lt.s32.totalorder %s99_s17, %s99_s17 }
  0x56   :  { %p3793_p7 = scmp.ne.s32.totalorder %s99_s17, %s3792_s19  ;;  %p3798_p9 = scmp.lt.s32.totalorder %s3792_s19, %s3792_s19 }
  0x58   :  { %p3799_p10 = por %p3798_p9, %p3797_p8 }
  0x5a   :  { %p3800_p11 = pnand %p3799_p10, %p3793_p7 }
  0x5c   :  { %3803 = shalt.err (!%p3800_p11)
}
  0x5d   :  { %101 = dma.hbm_to_vmem [thread:$0]  %s4185_s7, 128, %s99_s17, [#allocation12]  }
  0x5e   :  { %s3873_s20 = smov [#allocation16]  }
  0x5f   :  { %s122_s21 = sshll.u32 %s3873_s20, 4  ;;  %s123_s21 = int_to_ptr.vmem [resolvable:$true] %s122_s21 }
  0x60   :  { %s3812_s22 = scalar_lea.vmem %s123_s21, 112  ;;  %s3816_s23 = scalar_lea.vmem %s123_s21, 128 }
  0x61   :  { %p3813_p12 = scmp.ne.s32.totalorder %s123_s21, %s3812_s22  ;;  %p3817_p13 = scmp.lt.s32.totalorder %s123_s21, %s123_s21 }
  0x62   :  { %p3818_p0 = scmp.lt.s32.totalorder %s3816_s23, %s3812_s22 }
  0x64   :  { %p3819_p1 = por %p3818_p0, %p3817_p13 }
  0x66   :  { %p3820_p2 = pnand %p3819_p1, %p3813_p12 }
  0x68   :  { %3823 = shalt.err (!%p3820_p2)
}
  0x69   :  { %125 = dma.hbm_to_vmem [thread:$0]  %s4188_s10, 112, %s123_s21, [#allocation15]  }
  0x6a   :  { %3844 = dma.done.wait [#allocation3], 128  }
  0x6b   :  { %3845 = vsyncadd [#allocation3], 4294967168 }
  0x6c   :  { %3846 = dma.done.wait [#allocation6], 2080  }
  0x6d   :  { %3847 = vsyncadd [#allocation6], 4294965216 }
  0x6e   :  { %3848 = dma.done.wait [#allocation9], 8256  }
  0x6f   :  { %3849 = vsyncadd [#allocation9], 4294959040 }
  0x70   :  { %3850 = dma.done.wait [#allocation12], 16512  }
  0x71   :  { %3851 = vsyncadd [#allocation12], 4294950784 }
  0x72   :  { %3852 = dma.done.wait [#allocation15], 28784  }
  0x73   :  { %3853 = vsyncadd [#allocation15], 4294938512  ;;  %v3874_v0 = vmov 0   ;;  %v3495_v1 = vld [vmem:[#allocation5 + $0x74] ss:$8 sps:$4 sm:$0xff]  }
  0x74   :  { %302 = vmatprep.mubr.bf16.mxu0 %v3874_v0  ;;  %v3497_v2 = vld [vmem:[#allocation5 + $0x70] ss:$8 sps:$4 sm:$0xff]   ;;  %270 = vmatprep.subr.bf16.mxu0 %v3495_v1  ;;  %v3498_v3 = vld [vmem:[#allocation5 + $0x64] ss:$8 sps:$4 sm:$0xff]   ;;  %v3500_v4 = vld [vmem:[#allocation5 + $0x60] ss:$8 sps:$4 sm:$0xff]  }
  0x75   :  { %271 = vmatpush1.bf16.msra.mxu0 %v3497_v2  ;;  %v3501_v5 = vld [vmem:[#allocation5 + $0x54] ss:$8 sps:$4 sm:$0xff]   ;;  %v3503_v6 = vld [vmem:[#allocation5 + $0x50] ss:$8 sps:$4 sm:$0xff]   ;;  %v3504_v7 = vld [vmem:[#allocation5 + $0x44] ss:$8 sps:$4 sm:$0xff]  }
  0x76   :  { %272 = vmatprep.subr.bf16.mxu0 %v3498_v3  ;;  %v3506_v8 = vld [vmem:[#allocation5 + $0x40] ss:$8 sps:$4 sm:$0xff]   ;;  %v3507_v9 = vld [vmem:[#allocation5 + $0x34] ss:$8 sps:$4 sm:$0xff]   ;;  %v3509_v11 = vld [vmem:[#allocation5 + $0x30] ss:$8 sps:$4 sm:$0xff]  }
  0x77   :  { %v3520_v10 = vld [vmem:[#allocation8 + $0xe4] ss:$16 sps:$4 sm:$0xff]   ;;  %v3525_v12 = vld [vmem:[#allocation8 + $0xe0] ss:$16 sps:$4 sm:$0xff]   ;;  %v3524_v26 = vld [vmem:[#allocation8 + $0xec] ss:$16 sps:$4 sm:$0xff]  }
  0x78   :  { %733 = vmatprep.subr.bf16.mxu1 %v3520_v10  ;;  %v3526_v13 = vld [vmem:[#allocation8 + $0xc4] ss:$16 sps:$4 sm:$0xff]   ;;  %v3531_v15 = vld [vmem:[#allocation8 + $0xc0] ss:$16 sps:$4 sm:$0xff]   ;;  %v3522_v30 = vld [vmem:[#allocation8 + $0xe8] ss:$16 sps:$4 sm:$0xff]  }
  0x79   :  { %273 = vmatpush1.bf16.msra.mxu0 %v3500_v4  ;;  %v3510_v14 = vld [vmem:[#allocation5 + $0x24] ss:$8 sps:$4 sm:$0xff]   ;;  %734 = vmatpush1.bf16.msra.mxu1 %v3525_v12  ;;  %v3512_v17 = vld [vmem:[#allocation5 + $0x20] ss:$8 sps:$4 sm:$0xff]   ;;  %v3513_v18 = vld [vmem:[#allocation5 + $0x14] ss:$8 sps:$4 sm:$0xff]  }
  0x7a   :  { %274 = vmatprep.subr.bf16.mxu0 %v3501_v5  ;;  %735 = vmatprep.subr.bf16.mxu1 %v3526_v13  ;;  %v3532_v16 = vld [vmem:[#allocation8 + $0xa4] ss:$16 sps:$4 sm:$0xff]   ;;  %v3537_v19 = vld [vmem:[#allocation8 + $0xa0] ss:$16 sps:$4 sm:$0xff]   ;;  %v3530_v31 = vld [vmem:[#allocation8 + $0xcc] ss:$16 sps:$4 sm:$0xff]  }
  0x7b   :  { %v3538_v20 = vld [vmem:[#allocation8 + $0x84] ss:$16 sps:$4 sm:$0xff]   ;;  %v3543_v23 = vld [vmem:[#allocation8 + $0x80] ss:$16 sps:$4 sm:$0xff]   ;;  %v3528_v34 = vld [vmem:[#allocation8 + $0xc8] ss:$16 sps:$4 sm:$0xff]  }
  0x7c   :  { %v3515_v21 = vld [vmem:[#allocation5 + $0x10] ss:$8 sps:$4 sm:$0xff]   ;;  %v3516_v22 = vld [vmem:[#allocation5 + $0x4] ss:$8 sps:$4 sm:$0xff]   ;;  %v3518_v25 = vld [vmem:[#allocation5] ss:$8 sps:$4 sm:$0xff]  }
  0x7d   :  { %275 = vmatpush1.bf16.msra.mxu0 %v3503_v6  ;;  %736 = vmatpush1.bf16.msra.mxu1 %v3531_v15  ;;  %v3544_v24 = vld [vmem:[#allocation8 + $0x64] ss:$16 sps:$4 sm:$0xff]   ;;  %v3549_v27 = vld [vmem:[#allocation8 + $0x60] ss:$16 sps:$4 sm:$0xff]   ;;  %v3536_v35 = vld [vmem:[#allocation8 + $0xac] ss:$16 sps:$4 sm:$0xff]  }
  0x7e   :  { %276 = vmatprep.subr.bf16.mxu0 %v3504_v7  ;;  %737 = vmatprep.subr.bf16.mxu1 %v3532_v16  ;;  %v3550_v28 = vld [vmem:[#allocation8 + $0x44] ss:$16 sps:$4 sm:$0xff]   ;;  %v3555_v32 = vld [vmem:[#allocation8 + $0x40] ss:$16 sps:$4 sm:$0xff]   ;;  %v3534_v38 = vld [vmem:[#allocation8 + $0xa8] ss:$16 sps:$4 sm:$0xff]  }
  0x7f   :  { %v3519_v29 = vld [vmem:[#allocation2] sm:$0xff]   ;;  %v3561_v36 = vld [vmem:[#allocation8 + $0x20] ss:$16 sps:$4 sm:$0xff]  }
  0x80   :  { %v3556_v33 = vld [vmem:[#allocation8 + $0x24] ss:$16 sps:$4 sm:$0xff]   ;;  %v3542_v39 = vld [vmem:[#allocation8 + $0x8c] ss:$16 sps:$4 sm:$0xff]   ;;  %v3567_v40 = vld [vmem:[#allocation8] ss:$16 sps:$4 sm:$0xff]  }
  0x81   :  { %277 = vmatpush1.bf16.msra.mxu0 %v3506_v8  ;;  %738 = vmatpush1.bf16.msra.mxu1 %v3537_v19  ;;  %v3562_v37 = vld [vmem:[#allocation8 + $0x4] ss:$16 sps:$4 sm:$0xff]   ;;  %v3540_v42 = vld [vmem:[#allocation8 + $0x88] ss:$16 sps:$4 sm:$0xff]   ;;  %v3548_v43 = vld [vmem:[#allocation8 + $0x6c] ss:$16 sps:$4 sm:$0xff]  }
  0x82   :  { %278 = vmatprep.subr.bf16.mxu0 %v3507_v9  ;;  %739 = vmatprep.subr.bf16.mxu1 %v3538_v20  ;;  %v3568_v41 = vld [vmem:[#allocation8 + $0x1e4] ss:$16 sps:$4 sm:$0xff]   ;;  %v3573_v44 = vld [vmem:[#allocation8 + $0x1e0] ss:$16 sps:$4 sm:$0xff]   ;;  %v3546_v45 = vld [vmem:[#allocation8 + $0x68] ss:$16 sps:$4 sm:$0xff]  }
  0x83   :  { %v3574_v46 = vld [vmem:[#allocation8 + $0x1c4] ss:$16 sps:$4 sm:$0xff]   ;;  %v3554_v47 = vld [vmem:[#allocation8 + $0x4c] ss:$16 sps:$4 sm:$0xff]   ;;  %v3579_v48 = vld [vmem:[#allocation8 + $0x1c0] ss:$16 sps:$4 sm:$0xff]  }
  0x84   :  { %v3580_v49 = vld [vmem:[#allocation8 + $0x1a4] ss:$16 sps:$4 sm:$0xff]   ;;  %v3552_v50 = vld [vmem:[#allocation8 + $0x48] ss:$16 sps:$4 sm:$0xff]   ;;  %v3560_v51 = vld [vmem:[#allocation8 + $0x2c] ss:$16 sps:$4 sm:$0xff]  }
  0x85   :  { %279 = vmatpush1.bf16.msra.mxu0 %v3509_v11  ;;  %740 = vmatpush1.bf16.msra.mxu1 %v3543_v23  ;;  %v3585_v52 = vld [vmem:[#allocation8 + $0x1a0] ss:$16 sps:$4 sm:$0xff]   ;;  %v3586_v53 = vld [vmem:[#allocation8 + $0x184] ss:$16 sps:$4 sm:$0xff]   ;;  %v3558_v54 = vld [vmem:[#allocation8 + $0x28] ss:$16 sps:$4 sm:$0xff]  }
  0x86   :  { %280 = vmatprep.subr.bf16.mxu0 %v3510_v14  ;;  %741 = vmatprep.subr.bf16.mxu1 %v3544_v24  ;;  %v3566_v55 = vld [vmem:[#allocation8 + $0xc] ss:$16 sps:$4 sm:$0xff]   ;;  %v3591_v56 = vld [vmem:[#allocation8 + $0x180] ss:$16 sps:$4 sm:$0xff]   ;;  %v3592_v57 = vld [vmem:[#allocation8 + $0x164] ss:$16 sps:$4 sm:$0xff]  }
  0x87   :  { %v3564_v58 = vld [vmem:[#allocation8 + $0x8] ss:$16 sps:$4 sm:$0xff]   ;;  %v3572_v59 = vld [vmem:[#allocation8 + $0x1ec] ss:$16 sps:$4 sm:$0xff]   ;;  %v3597_v5 = vld [vmem:[#allocation8 + $0x160] ss:$16 sps:$4 sm:$0xff]  }
  0x88   :  { %v3570_v60 = vld [vmem:[#allocation8 + $0x1e8] ss:$16 sps:$4 sm:$0xff]   ;;  %v3578_v61 = vld [vmem:[#allocation8 + $0x1cc] ss:$16 sps:$4 sm:$0xff]   ;;  %v3598_v6 = vld [vmem:[#allocation8 + $0x144] ss:$16 sps:$4 sm:$0xff]  }
  0x89   :  { %281 = vmatpush1.bf16.msra.mxu0 %v3512_v17  ;;  %742 = vmatpush1.bf16.msra.mxu1 %v3549_v27  ;;  %v3576_v62 = vld [vmem:[#allocation8 + $0x1c8] ss:$16 sps:$4 sm:$0xff]   ;;  %v3584_v63 = vld [vmem:[#allocation8 + $0x1ac] ss:$16 sps:$4 sm:$0xff]   ;;  %v3603_v9 = vld [vmem:[#allocation8 + $0x140] ss:$16 sps:$4 sm:$0xff]  }
  0x8a   :  { %282 = vmatprep.subr.bf16.mxu0 %v3513_v18  ;;  %743 = vmatprep.subr.bf16.mxu1 %v3550_v28  ;;  %v3582_v0 = vld [vmem:[#allocation8 + $0x1a8] ss:$16 sps:$4 sm:$0xff]   ;;  %v3590_v1 = vld [vmem:[#allocation8 + $0x18c] ss:$16 sps:$4 sm:$0xff]   ;;  %v3604_v10 = vld [vmem:[#allocation8 + $0x124] ss:$16 sps:$4 sm:$0xff]  }
  0x8b   :  { %v3588_v2 = vld [vmem:[#allocation8 + $0x188] ss:$16 sps:$4 sm:$0xff]   ;;  %v3596_v3 = vld [vmem:[#allocation8 + $0x16c] ss:$16 sps:$4 sm:$0xff]   ;;  %v3609_v13 = vld [vmem:[#allocation8 + $0x120] ss:$16 sps:$4 sm:$0xff]  }
  0x8c   :  { %v3594_v4 = vld [vmem:[#allocation8 + $0x168] ss:$16 sps:$4 sm:$0xff]   ;;  %v3602_v7 = vld [vmem:[#allocation8 + $0x14c] ss:$16 sps:$4 sm:$0xff]   ;;  %v3610_v14 = vld [vmem:[#allocation8 + $0x104] ss:$16 sps:$4 sm:$0xff]  }
  0x8d   :  { %283 = vmatpush1.bf16.msra.mxu0 %v3515_v21  ;;  %744 = vmatpush1.bf16.msra.mxu1 %v3555_v32  ;;  %v3600_v8 = vld [vmem:[#allocation8 + $0x148] ss:$16 sps:$4 sm:$0xff]   ;;  %v3608_v11 = vld [vmem:[#allocation8 + $0x12c] ss:$16 sps:$4 sm:$0xff]   ;;  %v3615_v17 = vld [vmem:[#allocation8 + $0x100] ss:$16 sps:$4 sm:$0xff]  }
  0x8e   :  { %284 = vmatprep.subr.bf16.mxu0 %v3516_v22  ;;  %745 = vmatprep.subr.bf16.mxu1 %v3556_v33  ;;  %v3606_v12 = vld [vmem:[#allocation8 + $0x128] ss:$16 sps:$4 sm:$0xff]   ;;  %v3614_v16 = vld [vmem:[#allocation8 + $0x10c] ss:$16 sps:$4 sm:$0xff]   ;;  %v174_v22 = vlaneseq }
  0x8f   :  { %v3612_v15 = vld [vmem:[#allocation8 + $0x108] ss:$16 sps:$4 sm:$0xff]   ;;  %v872_v18 = vld [vmem:[#allocation11 + $0xc8] sm:$0xff] }
  0x90   :  { %v936_v19 = vld [vmem:[#allocation11 + $0x2c8] sm:$0xff]  ;;  %v1032_v20 = vunpack.c.h.s8.bf16 %v872_v18  ;;  %v3968_v23 = vshrl.u32 %v174_v22, 7 }
  0x91   :  { %285 = vmatpush1.bf16.msra.mxu0 %v3518_v25  ;;  %746 = vmatpush1.bf16.msra.mxu1 %v3561_v36  ;;  %v1160_v21 = vunpack.c.h.s8.bf16 %v936_v19 }
  0x92   :  { %776 = vmatprep.subr.bf16.mxu0 %v3524_v26  ;;  %747 = vmatprep.subr.bf16.mxu1 %v3562_v37  ;;  %v3971_v24 = vsub.s32 1, %v3968_v23  ;;  %v3974_v25 = vsub.s32 0, %v3968_v23  ;;  %v172_v26 = vld [vmem:[#allocation7] sm:$0x3] }
  0x94   :  { %303 = vmatmul.mubr.bf16.vlgmr.msra.gmra.mxu0 %v3519_v29  ;;  %v181_v27 = vrot.slane %v172_v26, %v3971_v24  ;;  %v177_v28 = vrot.slane %v172_v26, %v3974_v25 }
  0x95   :  { %777 = vmatpush1.bf16.msra.mxu0 %v3522_v30  ;;  %748 = vmatpush1.bf16.msra.mxu1 %v3567_v40 }
  0x96   :  { %778 = vmatprep.subr.bf16.mxu0 %v3530_v31  ;;  %749 = vmatprep.subr.bf16.mxu1 %v3568_v41  ;;  %v871_v41 = vld [vmem:[#allocation11 + $0xc0] sm:$0xff] }
  0x99   :  { %779 = vmatpush1.bf16.msra.mxu0 %v3528_v34  ;;  %750 = vmatpush2.bf16.msra.mxu1 %v3573_v44 }
  0x9a   :  { %780 = vmatprep.subr.bf16.mxu0 %v3536_v35  ;;  %751 = vmatprep.subr.bf16.mxu1 %v3574_v46 }
  0x9d   :  { %781 = vmatpush1.bf16.msra.mxu0 %v3534_v38  ;;  %752 = vmatpush2.bf16.msra.mxu1 %v3579_v48  ;;  %v1031_v48 = vunpack.c.h.s8.bf16 %v871_v41 }
  0x9e   :  { %782 = vmatprep.subr.bf16.mxu0 %v3542_v39  ;;  %753 = vmatprep.subr.bf16.mxu1 %v3580_v49 }
  0xa1   :  { %783 = vmatpush1.bf16.msra.mxu0 %v3540_v42  ;;  %754 = vmatpush2.bf16.msra.mxu1 %v3585_v52  ;;  %v935_v42 = vld [vmem:[#allocation11 + $0x2c0] sm:$0xff]  ;;  %v1152_v52 = vunpack.c.l.s8.bf16 %v936_v19 }
  0xa2   :  { %784 = vmatprep.subr.bf16.mxu0 %v3548_v43  ;;  %755 = vmatprep.subr.bf16.mxu1 %v3586_v53  ;;  %v1159_v49 = vunpack.c.h.s8.bf16 %v935_v42  ;;  %v864_v53 = vld [vmem:[#allocation11 + $0x88] sm:$0xff]  ;;  %v847_v19 = vld [vmem:[#allocation11] sm:$0xff] }
  0xa5   :  { %785 = vmatpush1.bf16.msra.mxu0 %v3546_v45  ;;  %756 = vmatpush2.bf16.msra.mxu1 %v3591_v56  ;;  %v1151_v56 = vunpack.c.l.s8.bf16 %v935_v42 }
  0xa6   :  { %786 = vmatprep.subr.bf16.mxu0 %v3554_v47  ;;  %757 = vmatprep.subr.bf16.mxu1 %v3592_v57  ;;  %v1016_v57 = vunpack.c.h.s8.bf16 %v864_v53 }
  0xa9   :  { %787 = vmatpush1.bf16.msra.mxu0 %v3552_v50  ;;  %758 = vmatpush2.bf16.msra.mxu1 %v3597_v5 }
  0xaa   :  { %788 = vmatprep.subr.bf16.mxu0 %v3560_v51  ;;  %759 = vmatprep.subr.bf16.mxu1 %v3598_v6  ;;  %v1024_v51 = vunpack.c.l.s8.bf16 %v872_v18 }
  0xad   :  { %789 = vmatpush1.bf16.msra.mxu0 %v3558_v54  ;;  %760 = vmatpush2.bf16.msra.mxu1 %v3603_v9  ;;  %v928_v54 = vld [vmem:[#allocation11 + $0x288] sm:$0xff] }
  0xae   :  { %790 = vmatprep.subr.bf16.mxu0 %v3566_v55  ;;  %761 = vmatprep.subr.bf16.mxu1 %v3604_v10  ;;  %v1023_v55 = vunpack.c.l.s8.bf16 %v871_v41  ;;  %v960_v41 = vld [vmem:[#allocation11 + $0x388] sm:$0xff] }
  0xb1   :  { %791 = vmatpush1.bf16.msra.mxu0 %v3564_v58  ;;  %762 = vmatpush2.bf16.msra.mxu1 %v3609_v13  ;;  %v1144_v58 = vunpack.c.h.s8.bf16 %v928_v54  ;;  %v848_v13 = vld [vmem:[#allocation11 + $0x8] sm:$0xff] }
  0xb2   :  { %792 = vmatprep.subr.bf16.mxu0 %v3572_v59  ;;  %763 = vmatprep.subr.bf16.mxu1 %v3610_v14  ;;  %v863_v59 = vld [vmem:[#allocation11 + $0x80] sm:$0xff]  ;;  %v912_v14 = vld [vmem:[#allocation11 + $0x208] sm:$0xff]  ;;  %v976_v26 = vunpack.c.l.s8.bf16 %v848_v13 }
  0xb3   :  { %v1112_v18 = vunpack.c.h.s8.bf16 %v912_v14 }
  0xb5   :  { %793 = vmatpush2.bf16.msra.mxu0 %v3570_v60  ;;  %764 = vmatpush2.bf16.msra.mxu1 %v3615_v17  ;;  %v927_v60 = vld [vmem:[#allocation11 + $0x280] sm:$0xff]  ;;  %v984_v17 = vunpack.c.h.s8.bf16 %v848_v13 }
  0xb6   :  { %794 = vmatprep.subr.bf16.mxu0 %v3578_v61  ;;  %1231 = vmatprep.subr.bf16.mxu1 %v1032_v20  ;;  %v1015_v61 = vunpack.c.h.s8.bf16 %v863_v59  ;;  %v911_v20 = vld [vmem:[#allocation11 + $0x200] sm:$0xff] }
  0xb7   :  { %v1111_v22 = vunpack.c.h.s8.bf16 %v911_v20 }
  0xb9   :  { %795 = vmatpush2.bf16.msra.mxu0 %v3576_v62  ;;  %v1143_v62 = vunpack.c.h.s8.bf16 %v927_v60 }
  0xba   :  { %796 = vmatprep.subr.bf16.mxu0 %v3584_v63  ;;  %v1008_v63 = vunpack.c.l.s8.bf16 %v864_v53  ;;  %v952_v53 = vld [vmem:[#allocation11 + $0x348] sm:$0xff] }
  0xbd   :  { %797 = vmatpush2.bf16.msra.mxu0 %v3582_v0  ;;  %v1136_v0 = vunpack.c.l.s8.bf16 %v928_v54 }
  0xbe   :  { %798 = vmatprep.subr.bf16.mxu0 %v3590_v1  ;;  %v856_v1 = vld [vmem:[#allocation11 + $0x48] sm:$0xff] }
  0xbf   :  { %v1000_v5 = vunpack.c.h.s8.bf16 %v856_v1 }
  0xc1   :  { %799 = vmatpush2.bf16.msra.mxu0 %v3588_v2  ;;  %v920_v2 = vld [vmem:[#allocation11 + $0x248] sm:$0xff] }
  0xc2   :  { %800 = vmatprep.subr.bf16.mxu0 %v3596_v3  ;;  %v1007_v3 = vunpack.c.l.s8.bf16 %v863_v59  ;;  %v1128_v6 = vunpack.c.h.s8.bf16 %v920_v2  ;;  %v951_v59 = vld [vmem:[#allocation11 + $0x340] sm:$0xff] }
  0xc5   :  { %801 = vmatpush2.bf16.msra.mxu0 %v3594_v4  ;;  %v1135_v4 = vunpack.c.l.s8.bf16 %v927_v60 }
  0xc6   :  { %802 = vmatprep.subr.bf16.mxu0 %v3602_v7  ;;  %v855_v7 = vld [vmem:[#allocation11 + $0x40] sm:$0xff] }
  0xc7   :  { %v999_v9 = vunpack.c.h.s8.bf16 %v855_v7 }
  0xc9   :  { %803 = vmatpush2.bf16.msra.mxu0 %v3600_v8  ;;  %v919_v8 = vld [vmem:[#allocation11 + $0x240] sm:$0xff] }
  0xca   :  { %804 = vmatprep.subr.bf16.mxu0 %v3608_v11  ;;  %v1127_v10 = vunpack.c.h.s8.bf16 %v919_v8  ;;  %v992_v11 = vunpack.c.l.s8.bf16 %v856_v1  ;;  %v1183_v1 = vunpack.c.l.s8.bf16 %v951_v59 }
  0xcd   :  { %805 = vmatpush2.bf16.msra.mxu0 %v3606_v12  ;;  %v1120_v12 = vunpack.c.l.s8.bf16 %v920_v2  ;;  %v880_v2 = vld [vmem:[#allocation11 + $0x108] sm:$0xff] }
  0xce   :  { %806 = vmatprep.subr.bf16.mxu0 %v3614_v16  ;;  %v1119_v16 = vunpack.c.l.s8.bf16 %v919_v8 }
  0xd1   :  { %807 = vmatpush2.bf16.msra.mxu0 %v3612_v15  ;;  %v991_v15 = vunpack.c.l.s8.bf16 %v855_v7  ;;  %v943_v7 = vld [vmem:[#allocation11 + $0x300] sm:$0xff] }
  0xd2   :  { %1274 = vmatprep.subr.bf16.mxu0 %v1160_v21  ;;  %v983_v21 = vunpack.c.h.s8.bf16 %v847_v19  ;;  %v1167_v13 = vunpack.c.l.s8.bf16 %v943_v7 }
 0x154   :  { %v304_v29 = vpop.f32.mrf.mxu0 }
 0x155   :  { %v305_v32 = vadd.f32 %v304_v29, %v177_v28  ;;  %v968_v29 = vld [vmem:[#allocation11 + $0x3c8] sm:$0xff] }
 0x156   :  { %v306_v30 = vpop.f32.mrf.mxu0 }
 0x157   :  { %v307_v31 = vadd.f32 %v306_v30, %v181_v27  ;;  %v317_v39 = vmul.f32 0.2, %v305_v32  ;;  %vm313_vm2 = vcmp.gt.f32.partialorder %v305_v32, 0.0  ;;  %v975_v30 = vunpack.c.l.s8.bf16 %v847_v19 }
 0x158   :  { %v308_v33 = vpop.f32.mrf.mxu0  ;;  %v3985_v19 = vsub.s32 3, %v3968_v23 }
 0x159   :  { %v309_v34 = vadd.f32 %v308_v33, %v177_v28  ;;  %v318_v36 = vmul.f32 0.2, %v307_v31  ;;  %vm314_vm1 = vcmp.gt.f32.partialorder %v307_v31, 0.0  ;;  %v321_v47 = vsel %vm313_vm2, %v305_v32, %v317_v39  ;;  %v904_v28 = vld [vmem:[#allocation11 + $0x1c8] sm:$0xff] }
 0x15a   :  { %v310_v35 = vpop.f32.mrf.mxu0  ;;  %v1096_v32 = vunpack.c.h.s8.bf16 %v904_v28  ;;  %v1224_v33 = vunpack.c.h.s8.bf16 %v968_v29  ;;  %v1216_v39 = vunpack.c.l.s8.bf16 %v968_v29 }
 0x15b   :  { %vm315_vm0 = vcmp.gt.f32.partialorder %v309_v34, 0.0  ;;  %v319_v37 = vmul.f32 0.2, %v309_v34  ;;  %v311_v38 = vadd.f32 %v310_v35, %v181_v27  ;;  %v322_v44 = vsel %vm314_vm1, %v307_v31, %v318_v36  ;;  %v967_v35 = vld [vmem:[#allocation11 + $0x3c0] sm:$0xff] }
 0x15c   :  { %v1104_v27 = vunpack.c.l.s8.bf16 %v912_v14  ;;  %v1103_v31 = vunpack.c.l.s8.bf16 %v911_v20  ;;  %v3978_v14 = vld [vmem:[#allocation11 + $0xd8] sm:$0xff]  ;;  %v3988_v20 = vsub.s32 2, %v3968_v23 }
 0x15d   :  { %v320_v40 = vmul.f32 0.2, %v311_v38  ;;  %vm316_vm3 = vcmp.gt.f32.partialorder %v311_v38, 0.0  ;;  %v323_v43 = vsel %vm315_vm0, %v309_v34, %v319_v37  ;;  %v903_v34 = vld [vmem:[#allocation11 + $0x1c0] sm:$0xff]  ;;  %v1223_v37 = vunpack.c.h.s8.bf16 %v967_v35 }
 0x15e   :  { %v325_v50 = vpack.c.bf16 %v323_v43, %v321_v47  ;;  %v1095_v36 = vunpack.c.h.s8.bf16 %v903_v34  ;;  %v1087_v42 = vunpack.c.l.s8.bf16 %v903_v34  ;;  %v1215_v43 = vunpack.c.l.s8.bf16 %v967_v35  ;;  %v959_v47 = vld [vmem:[#allocation11 + $0x380] sm:$0xff] }
 0x15f   :  { %v324_v45 = vsel %vm316_vm3, %v311_v38, %v320_v40  ;;  %v1088_v38 = vunpack.c.l.s8.bf16 %v904_v28  ;;  %v896_v40 = vld [vmem:[#allocation11 + $0x188] sm:$0xff] }
 0x160   :  { %v326_v46 = vpack.c.bf16 %v324_v45, %v322_v44  ;;  %v1080_v44 = vunpack.c.h.s8.bf16 %v896_v40  ;;  %v1208_v45 = vunpack.c.h.s8.bf16 %v960_v41 }
 0x162   :  { %765 = vmatprep.mubr.bf16.mxu1 %v326_v46  ;;  %808 = vmatprep.mubr.bf16.mxu0 %v326_v46  ;;  %v895_v46 = vld [vmem:[#allocation11 + $0x180] sm:$0xff] }
 0x163   :  { %766 = vmatmul.mubr.bf16.vlgmr.msra.gmra.mxu1 %v325_v50  ;;  %809 = vmatmul.mubr.bf16.vlgmr.msra.gmra.mxu0 %v325_v50  ;;  %v1072_v50 = vunpack.c.l.s8.bf16 %v896_v40  ;;  %v1071_v54 = vunpack.c.l.s8.bf16 %v895_v46 }
 0x164   :  { %1232 = vmatpush1.bf16.msra.mxu1 %v1031_v48  ;;  %1275 = vmatpush1.bf16.msra.mxu0 %v1159_v49  ;;  %v1079_v48 = vunpack.c.h.s8.bf16 %v895_v46  ;;  %v1207_v49 = vunpack.c.h.s8.bf16 %v959_v47 }
 0x165   :  { %1233 = vmatprep.subr.bf16.mxu1 %v1024_v51  ;;  %1276 = vmatprep.subr.bf16.mxu0 %v1152_v52  ;;  %v1200_v51 = vunpack.c.l.s8.bf16 %v960_v41  ;;  %v888_v52 = vld [vmem:[#allocation11 + $0x148] sm:$0xff] }
 0x168   :  { %1234 = vmatpush1.bf16.msra.mxu1 %v1023_v55  ;;  %1277 = vmatpush1.bf16.msra.mxu0 %v1151_v56  ;;  %v1199_v55 = vunpack.c.l.s8.bf16 %v959_v47  ;;  %v1064_v56 = vunpack.c.h.s8.bf16 %v888_v52  ;;  %v873_v47 = vld [vmem:[#allocation11 + $0xd0] sm:$0xff] }
 0x169   :  { %1235 = vmatprep.subr.bf16.mxu1 %v1016_v57  ;;  %1278 = vmatprep.subr.bf16.mxu0 %v1144_v58  ;;  %v1192_v57 = vunpack.c.h.s8.bf16 %v952_v53  ;;  %v887_v58 = vld [vmem:[#allocation11 + $0x140] sm:$0xff] }
 0x16a   :  { %v1063_v60 = vunpack.c.h.s8.bf16 %v887_v58 }
 0x16c   :  { %1236 = vmatpush1.bf16.msra.mxu1 %v1015_v61  ;;  %1279 = vmatpush1.bf16.msra.mxu0 %v1143_v62  ;;  %v1191_v61 = vunpack.c.h.s8.bf16 %v951_v59  ;;  %v1056_v62 = vunpack.c.l.s8.bf16 %v888_v52 }
 0x16d   :  { %1237 = vmatprep.subr.bf16.mxu1 %v1008_v63  ;;  %1280 = vmatprep.subr.bf16.mxu0 %v1136_v0  ;;  %v1184_v63 = vunpack.c.l.s8.bf16 %v952_v53  ;;  %v1055_v0 = vunpack.c.l.s8.bf16 %v887_v58  ;;  %v1033_v58 = vunpack.c.h.s8.bf16 %v873_v47 }
 0x170   :  { %1238 = vmatpush1.bf16.msra.mxu1 %v1007_v3  ;;  %1281 = vmatpush1.bf16.msra.mxu0 %v1135_v4  ;;  %v944_v3 = vld [vmem:[#allocation11 + $0x308] sm:$0xff]  ;;  %v1048_v4 = vunpack.c.h.s8.bf16 %v880_v2 }
 0x171   :  { %1239 = vmatprep.subr.bf16.mxu1 %v1000_v5  ;;  %1282 = vmatprep.subr.bf16.mxu0 %v1128_v6  ;;  %v1176_v5 = vunpack.c.h.s8.bf16 %v944_v3  ;;  %v879_v6 = vld [vmem:[#allocation11 + $0x100] sm:$0xff] }
 0x172   :  { %v1047_v8 = vunpack.c.h.s8.bf16 %v879_v6 }
 0x174   :  { %1240 = vmatpush1.bf16.msra.mxu1 %v999_v9  ;;  %1283 = vmatpush1.bf16.msra.mxu0 %v1127_v10  ;;  %v1175_v9 = vunpack.c.h.s8.bf16 %v943_v7  ;;  %v1040_v10 = vunpack.c.l.s8.bf16 %v880_v2  ;;  %v930_v7 = vld [vmem:[#allocation11 + $0x298] sm:$0xff] }
 0x175   :  { %1241 = vmatprep.subr.bf16.mxu1 %v992_v11  ;;  %1284 = vmatprep.subr.bf16.mxu0 %v1120_v12  ;;  %v1168_v11 = vunpack.c.l.s8.bf16 %v944_v3  ;;  %v1039_v12 = vunpack.c.l.s8.bf16 %v879_v6 }
 0x178   :  { %1242 = vmatpush1.bf16.msra.mxu1 %v991_v15  ;;  %1285 = vmatpush1.bf16.msra.mxu0 %v1119_v16  ;;  %v3980_v15 = vld [vmem:[#allocation11 + $0x2d8] sm:$0xff]  ;;  %v1034_v16 = vunpack.c.h.s8.bf16 %v3978_v14 }
 0x179   :  { %1243 = vmatprep.subr.bf16.mxu1 %v984_v17  ;;  %1286 = vmatprep.subr.bf16.mxu0 %v1112_v18  ;;  %v1162_v17 = vunpack.c.h.s8.bf16 %v3980_v15  ;;  %v391_v18 = vld [vmem:[#allocation10] sm:$0xf]  ;;  %v1154_v6 = vunpack.c.l.s8.bf16 %v3980_v15 }
 0x17a   :  { %v408_v28 = vrot.slane %v391_v18, %v3985_v19  ;;  %v404_v29 = vrot.slane %v391_v18, %v3988_v20 }
 0x17c   :  { %1244 = vmatpush1.bf16.msra.mxu1 %v983_v21  ;;  %1287 = vmatpush1.bf16.msra.mxu0 %v1111_v22  ;;  %v396_v21 = vrot.slane %v391_v18, %v3974_v25 }
 0x17d   :  { %1245 = vmatprep.subr.bf16.mxu1 %v976_v26  ;;  %1288 = vmatprep.subr.bf16.mxu0 %v1104_v27  ;;  %v400_v27 = vrot.slane %v391_v18, %v3971_v24  ;;  %v858_v18 = vld [vmem:[#allocation11 + $0x58] sm:$0xff] }
 0x180   :  { %1246 = vmatpush1.bf16.msra.mxu1 %v975_v30  ;;  %1289 = vmatpush1.bf16.msra.mxu0 %v1103_v31 }
 0x181   :  { %1247 = vmatprep.subr.bf16.mxu1 %v1096_v32  ;;  %1290 = vmatprep.subr.bf16.mxu0 %v1224_v33 }
 0x184   :  { %1248 = vmatpush2.bf16.msra.mxu1 %v1095_v36  ;;  %1291 = vmatpush2.bf16.msra.mxu0 %v1223_v37 }
 0x185   :  { %1249 = vmatprep.subr.bf16.mxu1 %v1088_v38  ;;  %1292 = vmatprep.subr.bf16.mxu0 %v1216_v39 }
 0x188   :  { %1250 = vmatpush2.bf16.msra.mxu1 %v1087_v42  ;;  %1293 = vmatpush2.bf16.msra.mxu0 %v1215_v43 }
 0x189   :  { %1251 = vmatprep.subr.bf16.mxu1 %v1080_v44  ;;  %1294 = vmatprep.subr.bf16.mxu0 %v1208_v45 }
 0x18c   :  { %1252 = vmatpush2.bf16.msra.mxu1 %v1079_v48  ;;  %1295 = vmatpush2.bf16.msra.mxu0 %v1207_v49 }
 0x18d   :  { %1253 = vmatprep.subr.bf16.mxu1 %v1072_v50  ;;  %1296 = vmatprep.subr.bf16.mxu0 %v1200_v51 }
 0x190   :  { %1254 = vmatpush2.bf16.msra.mxu1 %v1071_v54  ;;  %1297 = vmatpush2.bf16.msra.mxu0 %v1199_v55  ;;  %v937_v54 = vld [vmem:[#allocation11 + $0x2d0] sm:$0xff] }
 0x191   :  { %1255 = vmatprep.subr.bf16.mxu1 %v1064_v56  ;;  %1298 = vmatprep.subr.bf16.mxu0 %v1192_v57  ;;  %v1161_v2 = vunpack.c.h.s8.bf16 %v937_v54 }
 0x194   :  { %1256 = vmatpush2.bf16.msra.mxu1 %v1063_v60  ;;  %1299 = vmatpush2.bf16.msra.mxu0 %v1191_v61 }
 0x195   :  { %1257 = vmatprep.subr.bf16.mxu1 %v1056_v62  ;;  %1300 = vmatprep.subr.bf16.mxu0 %v1184_v63 }
 0x198   :  { %1258 = vmatpush2.bf16.msra.mxu1 %v1055_v0  ;;  %1301 = vmatpush2.bf16.msra.mxu0 %v1183_v1 }
 0x199   :  { %1259 = vmatprep.subr.bf16.mxu1 %v1048_v4  ;;  %1302 = vmatprep.subr.bf16.mxu0 %v1176_v5  ;;  %v1026_v4 = vunpack.c.l.s8.bf16 %v3978_v14  ;;  %v866_v5 = vld [vmem:[#allocation11 + $0x98] sm:$0xff] }
 0x19c   :  { %1260 = vmatpush2.bf16.msra.mxu1 %v1047_v8  ;;  %1303 = vmatpush2.bf16.msra.mxu0 %v1175_v9  ;;  %v1025_v8 = vunpack.c.l.s8.bf16 %v873_v47  ;;  %v1153_v9 = vunpack.c.l.s8.bf16 %v937_v54  ;;  %v906_v47 = vld [vmem:[#allocation11 + $0x1d8] sm:$0xff]  ;;  %v969_v54 = vld [vmem:[#allocation11 + $0x3d0] sm:$0xff] }
 0x19d   :  { %1261 = vmatprep.subr.bf16.mxu1 %v1040_v10  ;;  %1304 = vmatprep.subr.bf16.mxu0 %v1168_v11  ;;  %v1018_v10 = vunpack.c.h.s8.bf16 %v866_v5  ;;  %v865_v11 = vld [vmem:[#allocation11 + $0x90] sm:$0xff] }
 0x19e   :  { %v1017_v14 = vunpack.c.h.s8.bf16 %v865_v11 }
 0x1a0   :  { %1262 = vmatpush2.bf16.msra.mxu1 %v1039_v12  ;;  %1305 = vmatpush2.bf16.msra.mxu0 %v1167_v13  ;;  %v1146_v12 = vunpack.c.h.s8.bf16 %v930_v7  ;;  %v929_v13 = vld [vmem:[#allocation11 + $0x290] sm:$0xff] }
 0x1a1   :  { %1317 = vmatprep.subr.bf16.mxu1 %v1034_v16  ;;  %1360 = vmatprep.subr.bf16.mxu0 %v1162_v17  ;;  %v1145_v15 = vunpack.c.h.s8.bf16 %v929_v13  ;;  %v1010_v16 = vunpack.c.l.s8.bf16 %v866_v5  ;;  %v1138_v17 = vunpack.c.l.s8.bf16 %v930_v7 }
 0x223   :  { %v767_v22 = vpop.f32.mrf.mxu1  ;;  %v810_v26 = vpop.f32.mrf.mxu0 }
 0x224   :  { %v768_v32 = vadd.f32 %v767_v22, %v396_v21  ;;  %v811_v39 = vadd.f32 %v810_v26, %v404_v29  ;;  %v1009_v22 = vunpack.c.l.s8.bf16 %v865_v11  ;;  %v1137_v26 = vunpack.c.l.s8.bf16 %v929_v13  ;;  %v890_v11 = vld [vmem:[#allocation11 + $0x158] sm:$0xff] }
 0x225   :  { %v769_v30 = vpop.f32.mrf.mxu1  ;;  %v812_v31 = vpop.f32.mrf.mxu0 }
 0x226   :  { %v770_v33 = vadd.f32 %v769_v30, %v400_v27  ;;  %v813_v36 = vadd.f32 %v812_v31, %v408_v28  ;;  %vm819_vm4 = vcmp.gt.f32.partialorder %v768_v32, 0.0  ;;  %v827_v48 = vmul.f32 0.2, %v768_v32  ;;  %v921_v30 = vld [vmem:[#allocation11 + $0x250] sm:$0xff] }
 0x227   :  { %v771_v34 = vpop.f32.mrf.mxu1  ;;  %v814_v35 = vpop.f32.mrf.mxu0  ;;  %v829_v50 = vmul.f32 0.2, %v811_v39  ;;  %vm821_vm10 = vcmp.gt.f32.partialorder %v811_v39, 0.0 }
 0x228   :  { %v772_v37 = vadd.f32 %v771_v34, %v396_v21  ;;  %v815_v38 = vadd.f32 %v814_v35, %v404_v29  ;;  %v828_v42 = vmul.f32 0.2, %v770_v33  ;;  %vm820_vm6 = vcmp.gt.f32.partialorder %v770_v33, 0.0  ;;  %v922_v21 = vld [vmem:[#allocation11 + $0x258] sm:$0xff] }
 0x229   :  { %v773_v40 = vpop.f32.mrf.mxu1  ;;  %v816_v41 = vpop.f32.mrf.mxu0  ;;  %v830_v49 = vmul.f32 0.2, %v813_v36  ;;  %vm822_vm8 = vcmp.gt.f32.partialorder %v813_v36, 0.0  ;;  %v835_v59 = vsel %vm819_vm4, %v768_v32, %v827_v48  ;;  %v837_v63 = vsel %vm821_vm10, %v811_v39, %v829_v50  ;;  %v850_v35 = vld [vmem:[#allocation11 + $0x18] sm:$0xff] }
 0x22a   :  { %v831_v43 = vmul.f32 0.2, %v772_v37  ;;  %vm823_vm5 = vcmp.gt.f32.partialorder %v772_v37, 0.0  ;;  %v833_v44 = vmul.f32 0.2, %v815_v38  ;;  %v774_v45 = vadd.f32 %v773_v40, %v400_v27  ;;  %v849_v40 = vld [vmem:[#allocation11 + $0x10] sm:$0xff] }
 0x22b   :  { %v817_v46 = vadd.f32 %v816_v41, %v408_v28  ;;  %vm825_vm7 = vcmp.gt.f32.partialorder %v815_v38, 0.0  ;;  %v836_v55 = vsel %vm820_vm6, %v770_v33, %v828_v42  ;;  %v838_v60 = vsel %vm822_vm8, %v813_v36, %v830_v49  ;;  %v857_v28 = vld [vmem:[#allocation11 + $0x50] sm:$0xff]  ;;  %v914_v36 = vld [vmem:[#allocation11 + $0x218] sm:$0xff] }
 0x22c   :  { %vm824_vm9 = vcmp.gt.f32.partialorder %v774_v45, 0.0  ;;  %v832_v51 = vmul.f32 0.2, %v774_v45  ;;  %v839_v52 = vsel %vm823_vm5, %v772_v37, %v831_v43  ;;  %v841_v56 = vsel %vm825_vm7, %v815_v38, %v833_v44  ;;  %v913_v42 = vld [vmem:[#allocation11 + $0x210] sm:$0xff]  ;;  %v970_v48 = vld [vmem:[#allocation11 + $0x3d8] sm:$0xff] }
 0x22d   :  { %vm826_vm11 = vcmp.gt.f32.partialorder %v817_v46, 0.0  ;;  %v834_v53 = vmul.f32 0.2, %v817_v46  ;;  %v3997_v0 = vpack.c.bf16 %v839_v52, %v835_v59  ;;  %v4001_v3 = vpack.c.bf16 %v841_v56, %v837_v63  ;;  %v905_v52 = vld [vmem:[#allocation11 + $0x1d0] sm:$0xff]  ;;  %v898_v59 = vld [vmem:[#allocation11 + $0x198] sm:$0xff] }
 0x22e   :  { %v840_v57 = vsel %vm824_vm9, %v774_v45, %v832_v51  ;;  %v1002_v27 = vunpack.c.h.s8.bf16 %v858_v18  ;;  %v1130_v29 = vunpack.c.h.s8.bf16 %v922_v21  ;;  %v1001_v31 = vunpack.c.h.s8.bf16 %v857_v28 }
 0x22f   :  { %v3995_v61 = vpack.c.bf16 %v840_v57, %v836_v55  ;;  %v842_v62 = vsel %vm826_vm11, %v817_v46, %v834_v53  ;;  %v1129_v32 = vunpack.c.h.s8.bf16 %v921_v30  ;;  %v994_v33 = vunpack.c.l.s8.bf16 %v858_v18  ;;  %v953_v18 = vld [vmem:[#allocation11 + $0x350] sm:$0xff] }
 0x230   :  { %v3999_v1 = vpack.c.bf16 %v842_v62, %v838_v60  ;;  %v1122_v34 = vunpack.c.l.s8.bf16 %v922_v21  ;;  %v993_v37 = vunpack.c.l.s8.bf16 %v857_v28  ;;  %v1121_v38 = vunpack.c.l.s8.bf16 %v921_v30  ;;  %v962_v60 = vld [vmem:[#allocation11 + $0x398] sm:$0xff] }
 0x231   :  { %1263 = vmatprep.mubr.bf16.mxu1 %v3995_v61  ;;  %v986_v39 = vunpack.c.h.s8.bf16 %v850_v35  ;;  %v1114_v41 = vunpack.c.h.s8.bf16 %v914_v36  ;;  %v985_v43 = vunpack.c.h.s8.bf16 %v849_v40  ;;  %v1113_v44 = vunpack.c.h.s8.bf16 %v913_v42  ;;  %v882_v28 = vld [vmem:[#allocation11 + $0x118] sm:$0xff] }
 0x232   :  { %1306 = vmatprep.mubr.bf16.mxu0 %v3999_v1  ;;  %1264 = vmatmul.mubr.bf16.vlgmr.msra.gmra.mxu1 %v3997_v0  ;;  %v978_v45 = vunpack.c.l.s8.bf16 %v850_v35  ;;  %v1106_v46 = vunpack.c.l.s8.bf16 %v914_v36  ;;  %v977_v49 = vunpack.c.l.s8.bf16 %v849_v40  ;;  %v1105_v50 = vunpack.c.l.s8.bf16 %v913_v42  ;;  %v945_v35 = vld [vmem:[#allocation11 + $0x310] sm:$0xff]  ;;  %v876_v40 = vld [vmem:[#allocation11 + $0xe8] sm:$0xff] }
 0x233   :  { %1307 = vmatmul.mubr.bf16.vlgmr.msra.gmra.mxu0 %v4001_v3  ;;  %1318 = vmatpush1.bf16.msra.mxu1 %v1033_v58  ;;  %v1098_v51 = vunpack.c.h.s8.bf16 %v906_v47  ;;  %v1226_v53 = vunpack.c.h.s8.bf16 %v970_v48  ;;  %v1097_v55 = vunpack.c.h.s8.bf16 %v905_v52  ;;  %v1225_v56 = vunpack.c.h.s8.bf16 %v969_v54 }
 0x234   :  { %1361 = vmatpush1.bf16.msra.mxu0 %v1161_v2  ;;  %1349 = vmatprep.mubr.bf16.mxu1 %v3995_v61  ;;  %v1090_v57 = vunpack.c.l.s8.bf16 %v906_v47  ;;  %v1218_v58 = vunpack.c.l.s8.bf16 %v970_v48  ;;  %v1089_v62 = vunpack.c.l.s8.bf16 %v905_v52  ;;  %v1217_v63 = vunpack.c.l.s8.bf16 %v969_v54  ;;  %v939_v47 = vld [vmem:[#allocation11 + $0x2e0] sm:$0xff] }
 0x235   :  { %1392 = vmatprep.mubr.bf16.mxu0 %v3999_v1  ;;  %1319 = vmatprep.subr.bf16.mxu1 %v1026_v4  ;;  %v1082_v2 = vunpack.c.h.s8.bf16 %v898_v59  ;;  %v897_v4 = vld [vmem:[#allocation11 + $0x190] sm:$0xff]  ;;  %v1210_v5 = vunpack.c.h.s8.bf16 %v962_v60 }
 0x236   :  { %1362 = vmatprep.subr.bf16.mxu0 %v1154_v6  ;;  %v961_v6 = vld [vmem:[#allocation11 + $0x390] sm:$0xff]  ;;  %v1081_v7 = vunpack.c.h.s8.bf16 %v897_v4  ;;  %v1073_v13 = vunpack.c.l.s8.bf16 %v897_v4  ;;  %v860_v4 = vld [vmem:[#allocation11 + $0x68] sm:$0xff] }
 0x237   :  { %1320 = vmatpush1.bf16.msra.mxu1 %v1025_v8  ;;  %v1209_v8 = vunpack.c.h.s8.bf16 %v961_v6 }
 0x238   :  { %1363 = vmatpush1.bf16.msra.mxu0 %v1153_v9  ;;  %1321 = vmatprep.subr.bf16.mxu1 %v1018_v10  ;;  %v1074_v9 = vunpack.c.l.s8.bf16 %v898_v59  ;;  %v1202_v10 = vunpack.c.l.s8.bf16 %v962_v60  ;;  %v931_v59 = vld [vmem:[#allocation11 + $0x2a0] sm:$0xff] }
 0x239   :  { %1364 = vmatprep.subr.bf16.mxu0 %v1146_v12  ;;  %v954_v12 = vld [vmem:[#allocation11 + $0x358] sm:$0xff] }
 0x23b   :  { %1322 = vmatpush1.bf16.msra.mxu1 %v1017_v14  ;;  %v1201_v14 = vunpack.c.l.s8.bf16 %v961_v6 }
 0x23c   :  { %1365 = vmatpush1.bf16.msra.mxu0 %v1145_v15  ;;  %1323 = vmatprep.subr.bf16.mxu1 %v1010_v16  ;;  %v1066_v15 = vunpack.c.h.s8.bf16 %v890_v11  ;;  %v889_v16 = vld [vmem:[#allocation11 + $0x150] sm:$0xff] }
 0x23d   :  { %1366 = vmatprep.subr.bf16.mxu0 %v1138_v17  ;;  %v1194_v17 = vunpack.c.h.s8.bf16 %v954_v12  ;;  %v1065_v21 = vunpack.c.h.s8.bf16 %v889_v16  ;;  %v1057_v30 = vunpack.c.l.s8.bf16 %v889_v16  ;;  %v852_v16 = vld [vmem:[#allocation11 + $0x28] sm:$0xff] }
 0x23f   :  { %1324 = vmatpush1.bf16.msra.mxu1 %v1009_v22  ;;  %v1193_v22 = vunpack.c.h.s8.bf16 %v953_v18 }
 0x240   :  { %1367 = vmatpush1.bf16.msra.mxu0 %v1137_v26  ;;  %1325 = vmatprep.subr.bf16.mxu1 %v1002_v27  ;;  %v1058_v26 = vunpack.c.l.s8.bf16 %v890_v11  ;;  %v1186_v27 = vunpack.c.l.s8.bf16 %v954_v12  ;;  %v923_v11 = vld [vmem:[#allocation11 + $0x260] sm:$0xff] }
 0x241   :  { %1368 = vmatprep.subr.bf16.mxu0 %v1130_v29  ;;  %v946_v29 = vld [vmem:[#allocation11 + $0x318] sm:$0xff] }
 0x243   :  { %1326 = vmatpush1.bf16.msra.mxu1 %v1001_v31  ;;  %v1185_v31 = vunpack.c.l.s8.bf16 %v953_v18 }
 0x244   :  { %1369 = vmatpush1.bf16.msra.mxu0 %v1129_v32  ;;  %1327 = vmatprep.subr.bf16.mxu1 %v994_v33  ;;  %v1050_v32 = vunpack.c.h.s8.bf16 %v882_v28  ;;  %v881_v33 = vld [vmem:[#allocation11 + $0x110] sm:$0xff] }
 0x245   :  { %1370 = vmatprep.subr.bf16.mxu0 %v1122_v34  ;;  %v1178_v34 = vunpack.c.h.s8.bf16 %v946_v29  ;;  %v1049_v36 = vunpack.c.h.s8.bf16 %v881_v33  ;;  %v1041_v42 = vunpack.c.l.s8.bf16 %v881_v33  ;;  %v908_v33 = vld [vmem:[#allocation11 + $0x1e8] sm:$0xff] }
 0x247   :  { %1328 = vmatpush1.bf16.msra.mxu1 %v993_v37  ;;  %v1177_v37 = vunpack.c.h.s8.bf16 %v945_v35 }
 0x248   :  { %1371 = vmatpush1.bf16.msra.mxu0 %v1121_v38  ;;  %1329 = vmatprep.subr.bf16.mxu1 %v986_v39  ;;  %v1042_v38 = vunpack.c.l.s8.bf16 %v882_v28  ;;  %v1170_v39 = vunpack.c.l.s8.bf16 %v946_v29  ;;  %v915_v28 = vld [vmem:[#allocation11 + $0x220] sm:$0xff] }
 0x249   :  { %1372 = vmatprep.subr.bf16.mxu0 %v1114_v41  ;;  %v940_v41 = vld [vmem:[#allocation11 + $0x2e8] sm:$0xff] }
 0x24a   :  { %v1156_v52 = vunpack.c.l.s8.bf16 %v940_v41 }
 0x24b   :  { %1330 = vmatpush1.bf16.msra.mxu1 %v985_v43  ;;  %v1169_v43 = vunpack.c.l.s8.bf16 %v945_v35 }
 0x24c   :  { %1373 = vmatpush1.bf16.msra.mxu0 %v1113_v44  ;;  %1331 = vmatprep.subr.bf16.mxu1 %v978_v45  ;;  %v1036_v44 = vunpack.c.h.s8.bf16 %v876_v40  ;;  %v875_v45 = vld [vmem:[#allocation11 + $0xe0] sm:$0xff] }
 0x24d   :  { %1374 = vmatprep.subr.bf16.mxu0 %v1106_v46  ;;  %v1164_v46 = vunpack.c.h.s8.bf16 %v940_v41  ;;  %v1035_v48 = vunpack.c.h.s8.bf16 %v875_v45  ;;  %v1027_v54 = vunpack.c.l.s8.bf16 %v875_v45  ;;  %v900_v45 = vld [vmem:[#allocation11 + $0x1a8] sm:$0xff] }
 0x24f   :  { %1332 = vmatpush1.bf16.msra.mxu1 %v977_v49  ;;  %v1163_v49 = vunpack.c.h.s8.bf16 %v939_v47 }
 0x250   :  { %1375 = vmatpush1.bf16.msra.mxu0 %v1105_v50  ;;  %1333 = vmatprep.subr.bf16.mxu1 %v1098_v51  ;;  %v1028_v50 = vunpack.c.l.s8.bf16 %v876_v40  ;;  %v868_v51 = vld [vmem:[#allocation11 + $0xa8] sm:$0xff]  ;;  %v971_v40 = vld [vmem:[#allocation11 + $0x3e0] sm:$0xff] }
 0x251   :  { %1376 = vmatprep.subr.bf16.mxu0 %v1226_v53  ;;  %v932_v53 = vld [vmem:[#allocation11 + $0x2a8] sm:$0xff] }
 0x253   :  { %1334 = vmatpush2.bf16.msra.mxu1 %v1097_v55  ;;  %v1155_v55 = vunpack.c.l.s8.bf16 %v939_v47 }
 0x254   :  { %1377 = vmatpush2.bf16.msra.mxu0 %v1225_v56  ;;  %1335 = vmatprep.subr.bf16.mxu1 %v1090_v57  ;;  %v1020_v56 = vunpack.c.h.s8.bf16 %v868_v51  ;;  %v867_v57 = vld [vmem:[#allocation11 + $0xa0] sm:$0xff] }
 0x255   :  { %1378 = vmatprep.subr.bf16.mxu0 %v1218_v58  ;;  %v1148_v58 = vunpack.c.h.s8.bf16 %v932_v53  ;;  %v1019_v60 = vunpack.c.h.s8.bf16 %v867_v57  ;;  %v1011_v6 = vunpack.c.l.s8.bf16 %v867_v57  ;;  %v892_v57 = vld [vmem:[#allocation11 + $0x168] sm:$0xff] }
 0x257   :  { %1336 = vmatpush2.bf16.msra.mxu1 %v1089_v62  ;;  %v1147_v62 = vunpack.c.h.s8.bf16 %v931_v59 }
 0x258   :  { %1379 = vmatpush2.bf16.msra.mxu0 %v1217_v63  ;;  %1337 = vmatprep.subr.bf16.mxu1 %v1082_v2  ;;  %v1012_v63 = vunpack.c.l.s8.bf16 %v868_v51  ;;  %v1140_v2 = vunpack.c.l.s8.bf16 %v932_v53 }
 0x259   :  { %1380 = vmatprep.subr.bf16.mxu0 %v1210_v5  ;;  %v924_v5 = vld [vmem:[#allocation11 + $0x268] sm:$0xff] }
 0x25b   :  { %1338 = vmatpush2.bf16.msra.mxu1 %v1081_v7  ;;  %v1139_v7 = vunpack.c.l.s8.bf16 %v931_v59 }
 0x25c   :  { %1381 = vmatpush2.bf16.msra.mxu0 %v1209_v8  ;;  %1339 = vmatprep.subr.bf16.mxu1 %v1074_v9  ;;  %v1004_v8 = vunpack.c.h.s8.bf16 %v860_v4  ;;  %v859_v9 = vld [vmem:[#allocation11 + $0x60] sm:$0xff] }
 0x25d   :  { %1382 = vmatprep.subr.bf16.mxu0 %v1202_v10  ;;  %v1132_v10 = vunpack.c.h.s8.bf16 %v924_v5  ;;  %v1003_v12 = vunpack.c.h.s8.bf16 %v859_v9  ;;  %v995_v18 = vunpack.c.l.s8.bf16 %v859_v9  ;;  %v884_v9 = vld [vmem:[#allocation11 + $0x128] sm:$0xff] }
 0x25f   :  { %1340 = vmatpush2.bf16.msra.mxu1 %v1073_v13  ;;  %v1131_v13 = vunpack.c.h.s8.bf16 %v923_v11 }
 0x260   :  { %1383 = vmatpush2.bf16.msra.mxu0 %v1201_v14  ;;  %1341 = vmatprep.subr.bf16.mxu1 %v1066_v15  ;;  %v996_v14 = vunpack.c.l.s8.bf16 %v860_v4  ;;  %v1124_v15 = vunpack.c.l.s8.bf16 %v924_v5  ;;  %v955_v4 = vld [vmem:[#allocation11 + $0x360] sm:$0xff] }
 0x261   :  { %1384 = vmatprep.subr.bf16.mxu0 %v1194_v17  ;;  %v916_v17 = vld [vmem:[#allocation11 + $0x228] sm:$0xff] }
 0x263   :  { %1342 = vmatpush2.bf16.msra.mxu1 %v1065_v21  ;;  %v1123_v21 = vunpack.c.l.s8.bf16 %v923_v11 }
 0x264   :  { %1385 = vmatpush2.bf16.msra.mxu0 %v1193_v22  ;;  %1343 = vmatprep.subr.bf16.mxu1 %v1058_v26  ;;  %v988_v22 = vunpack.c.h.s8.bf16 %v852_v16  ;;  %v851_v26 = vld [vmem:[#allocation11 + $0x20] sm:$0xff] }
 0x265   :  { %1386 = vmatprep.subr.bf16.mxu0 %v1186_v27  ;;  %v1116_v27 = vunpack.c.h.s8.bf16 %v916_v17  ;;  %v987_v29 = vunpack.c.h.s8.bf16 %v851_v26  ;;  %v979_v35 = vunpack.c.l.s8.bf16 %v851_v26  ;;  %v878_v26 = vld [vmem:[#allocation11 + $0xf8] sm:$0xff] }
 0x267   :  { %1344 = vmatpush2.bf16.msra.mxu1 %v1057_v30  ;;  %v1115_v30 = vunpack.c.h.s8.bf16 %v915_v28 }
 0x268   :  { %1387 = vmatpush2.bf16.msra.mxu0 %v1185_v31  ;;  %1345 = vmatprep.subr.bf16.mxu1 %v1050_v32  ;;  %v980_v31 = vunpack.c.l.s8.bf16 %v852_v16  ;;  %v1108_v32 = vunpack.c.l.s8.bf16 %v916_v17  ;;  %v947_v16 = vld [vmem:[#allocation11 + $0x320] sm:$0xff] }
 0x269   :  { %1388 = vmatprep.subr.bf16.mxu0 %v1178_v34  ;;  %v972_v34 = vld [vmem:[#allocation11 + $0x3e8] sm:$0xff] }
 0x26b   :  { %1346 = vmatpush2.bf16.msra.mxu1 %v1049_v36  ;;  %v1107_v36 = vunpack.c.l.s8.bf16 %v915_v28 }
 0x26c   :  { %1389 = vmatpush2.bf16.msra.mxu0 %v1177_v37  ;;  %1347 = vmatprep.subr.bf16.mxu1 %v1042_v38  ;;  %v1100_v37 = vunpack.c.h.s8.bf16 %v908_v33  ;;  %v907_v38 = vld [vmem:[#allocation11 + $0x1e0] sm:$0xff] }
 0x26d   :  { %1390 = vmatprep.subr.bf16.mxu0 %v1170_v39  ;;  %v1228_v39 = vunpack.c.h.s8.bf16 %v972_v34  ;;  %v1099_v41 = vunpack.c.h.s8.bf16 %v907_v38  ;;  %v1091_v47 = vunpack.c.l.s8.bf16 %v907_v38 }
 0x26f   :  { %1348 = vmatpush2.bf16.msra.mxu1 %v1041_v42  ;;  %v1227_v42 = vunpack.c.h.s8.bf16 %v971_v40 }
 0x270   :  { %1391 = vmatpush2.bf16.msra.mxu0 %v1169_v43  ;;  %1403 = vmatprep.subr.bf16.mxu1 %v1036_v44  ;;  %v1092_v43 = vunpack.c.l.s8.bf16 %v908_v33  ;;  %v1220_v44 = vunpack.c.l.s8.bf16 %v972_v34  ;;  %v941_v33 = vld [vmem:[#allocation11 + $0x2f0] sm:$0xff] }
 0x271   :  { %1446 = vmatprep.subr.bf16.mxu0 %v1164_v46  ;;  %v964_v46 = vld [vmem:[#allocation11 + $0x3a8] sm:$0xff] }
 0x272   :  { %1350 = vmatmul.mubr.bf16.vlgmr.msra.gmra.mxu1 %v3997_v0  ;;  %v1212_v51 = vunpack.c.h.s8.bf16 %v964_v46 }
 0x273   :  { %1393 = vmatmul.mubr.bf16.vlgmr.msra.gmra.mxu0 %v4001_v3  ;;  %1404 = vmatpush1.bf16.msra.mxu1 %v1035_v48  ;;  %v1219_v48 = vunpack.c.l.s8.bf16 %v971_v40 }
 0x274   :  { %1435 = vmatprep.mubr.bf16.mxu1 %v3995_v61  ;;  %1447 = vmatpush1.bf16.msra.mxu0 %v1163_v49  ;;  %v1084_v49 = vunpack.c.h.s8.bf16 %v900_v45 }
 0x275   :  { %1478 = vmatprep.mubr.bf16.mxu0 %v3999_v1  ;;  %1405 = vmatprep.subr.bf16.mxu1 %v1028_v50  ;;  %v899_v50 = vld [vmem:[#allocation11 + $0x1a0] sm:$0xff] }
 0x276   :  { %1448 = vmatprep.subr.bf16.mxu0 %v1156_v52  ;;  %v963_v52 = vld [vmem:[#allocation11 + $0x3a0] sm:$0xff]  ;;  %v1083_v53 = vunpack.c.h.s8.bf16 %v899_v50  ;;  %v1075_v59 = vunpack.c.l.s8.bf16 %v899_v50  ;;  %v862_v50 = vld [vmem:[#allocation11 + $0x78] sm:$0xff] }
 0x277   :  { %1406 = vmatpush1.bf16.msra.mxu1 %v1027_v54  ;;  %v1211_v54 = vunpack.c.h.s8.bf16 %v963_v52 }
 0x278   :  { %1449 = vmatpush1.bf16.msra.mxu0 %v1155_v55  ;;  %1407 = vmatprep.subr.bf16.mxu1 %v1020_v56  ;;  %v1076_v55 = vunpack.c.l.s8.bf16 %v900_v45  ;;  %v1204_v56 = vunpack.c.l.s8.bf16 %v964_v46  ;;  %v933_v45 = vld [vmem:[#allocation11 + $0x2b0] sm:$0xff] }
 0x279   :  { %1450 = vmatprep.subr.bf16.mxu0 %v1148_v58  ;;  %v956_v58 = vld [vmem:[#allocation11 + $0x368] sm:$0xff] }
 0x27b   :  { %1408 = vmatpush1.bf16.msra.mxu1 %v1019_v60  ;;  %v1203_v60 = vunpack.c.l.s8.bf16 %v963_v52  ;;  %v1141_v52 = vunpack.c.l.s8.bf16 %v933_v45 }
 0x27c   :  { %1451 = vmatpush1.bf16.msra.mxu0 %v1147_v62  ;;  %1409 = vmatprep.subr.bf16.mxu1 %v1012_v63  ;;  %v1068_v62 = vunpack.c.h.s8.bf16 %v892_v57  ;;  %v891_v63 = vld [vmem:[#allocation11 + $0x160] sm:$0xff] }
 0x27d   :  { %1452 = vmatprep.subr.bf16.mxu0 %v1140_v2  ;;  %v1196_v2 = vunpack.c.h.s8.bf16 %v956_v58  ;;  %v1067_v5 = vunpack.c.h.s8.bf16 %v891_v63  ;;  %v1059_v11 = vunpack.c.l.s8.bf16 %v891_v63 }
 0x27f   :  { %1410 = vmatpush1.bf16.msra.mxu1 %v1011_v6  ;;  %v1195_v6 = vunpack.c.h.s8.bf16 %v955_v4 }
 0x280   :  { %1453 = vmatpush1.bf16.msra.mxu0 %v1139_v7  ;;  %1411 = vmatprep.subr.bf16.mxu1 %v1004_v8  ;;  %v1060_v7 = vunpack.c.l.s8.bf16 %v892_v57  ;;  %v1188_v8 = vunpack.c.l.s8.bf16 %v956_v58  ;;  %v998_v58 = vunpack.c.l.s8.bf16 %v862_v50 }
 0x281   :  { %1454 = vmatprep.subr.bf16.mxu0 %v1132_v10  ;;  %v948_v10 = vld [vmem:[#allocation11 + $0x328] sm:$0xff] }
 0x283   :  { %1412 = vmatpush1.bf16.msra.mxu1 %v1003_v12  ;;  %v1187_v12 = vunpack.c.l.s8.bf16 %v955_v4 }
 0x284   :  { %1455 = vmatpush1.bf16.msra.mxu0 %v1131_v13  ;;  %1413 = vmatprep.subr.bf16.mxu1 %v996_v14  ;;  %v1052_v13 = vunpack.c.h.s8.bf16 %v884_v9  ;;  %v883_v14 = vld [vmem:[#allocation11 + $0x120] sm:$0xff] }
 0x285   :  { %1456 = vmatprep.subr.bf16.mxu0 %v1124_v15  ;;  %v1180_v15 = vunpack.c.h.s8.bf16 %v948_v10  ;;  %v1051_v17 = vunpack.c.h.s8.bf16 %v883_v14  ;;  %v1043_v28 = vunpack.c.l.s8.bf16 %v883_v14 }
 0x287   :  { %1414 = vmatpush1.bf16.msra.mxu1 %v995_v18  ;;  %v1179_v18 = vunpack.c.h.s8.bf16 %v947_v16 }
 0x288   :  { %1457 = vmatpush1.bf16.msra.mxu0 %v1123_v21  ;;  %1415 = vmatprep.subr.bf16.mxu1 %v988_v22  ;;  %v1044_v21 = vunpack.c.l.s8.bf16 %v884_v9  ;;  %v1172_v22 = vunpack.c.l.s8.bf16 %v948_v10 }
 0x289   :  { %1458 = vmatprep.subr.bf16.mxu0 %v1116_v27  ;;  %v942_v27 = vld [vmem:[#allocation11 + $0x2f8] sm:$0xff] }
 0x28a   :  { %v1158_v38 = vunpack.c.l.s8.bf16 %v942_v27 }
 0x28b   :  { %1416 = vmatpush1.bf16.msra.mxu1 %v987_v29  ;;  %v1171_v29 = vunpack.c.l.s8.bf16 %v947_v16 }
 0x28c   :  { %1459 = vmatpush1.bf16.msra.mxu0 %v1115_v30  ;;  %1417 = vmatprep.subr.bf16.mxu1 %v980_v31  ;;  %v1038_v30 = vunpack.c.h.s8.bf16 %v878_v26  ;;  %v877_v31 = vld [vmem:[#allocation11 + $0xf0] sm:$0xff] }
 0x28d   :  { %1460 = vmatprep.subr.bf16.mxu0 %v1108_v32  ;;  %v1166_v32 = vunpack.c.h.s8.bf16 %v942_v27  ;;  %v1037_v34 = vunpack.c.h.s8.bf16 %v877_v31  ;;  %v1029_v40 = vunpack.c.l.s8.bf16 %v877_v31 }
 0x28f   :  { %1418 = vmatpush1.bf16.msra.mxu1 %v979_v35  ;;  %v1165_v35 = vunpack.c.h.s8.bf16 %v941_v33 }
 0x290   :  { %1461 = vmatpush1.bf16.msra.mxu0 %v1107_v36  ;;  %1419 = vmatprep.subr.bf16.mxu1 %v1100_v37  ;;  %v1030_v36 = vunpack.c.l.s8.bf16 %v878_v26  ;;  %v870_v37 = vld [vmem:[#allocation11 + $0xb8] sm:$0xff] }
 0x291   :  { %1462 = vmatprep.subr.bf16.mxu0 %v1228_v39  ;;  %v934_v39 = vld [vmem:[#allocation11 + $0x2b8] sm:$0xff] }
 0x293   :  { %1420 = vmatpush2.bf16.msra.mxu1 %v1099_v41  ;;  %v1157_v41 = vunpack.c.l.s8.bf16 %v941_v33 }
 0x294   :  { %1463 = vmatpush2.bf16.msra.mxu0 %v1227_v42  ;;  %1421 = vmatprep.subr.bf16.mxu1 %v1092_v43  ;;  %v1022_v42 = vunpack.c.h.s8.bf16 %v870_v37  ;;  %v869_v43 = vld [vmem:[#allocation11 + $0xb0] sm:$0xff] }
 0x295   :  { %1464 = vmatprep.subr.bf16.mxu0 %v1220_v44  ;;  %v1150_v44 = vunpack.c.h.s8.bf16 %v934_v39  ;;  %v1021_v46 = vunpack.c.h.s8.bf16 %v869_v43 }
 0x297   :  { %1422 = vmatpush2.bf16.msra.mxu1 %v1091_v47  ;;  %v1149_v47 = vunpack.c.h.s8.bf16 %v933_v45 }
 0x298   :  { %1465 = vmatpush2.bf16.msra.mxu0 %v1219_v48  ;;  %1423 = vmatprep.subr.bf16.mxu1 %v1084_v49  ;;  %v1014_v48 = vunpack.c.l.s8.bf16 %v870_v37  ;;  %v1142_v49 = vunpack.c.l.s8.bf16 %v934_v39 }
 0x299   :  { %1466 = vmatprep.subr.bf16.mxu0 %v1212_v51  ;;  %v1013_v51 = vunpack.c.l.s8.bf16 %v869_v43 }
 0x29b   :  { %1424 = vmatpush2.bf16.msra.mxu1 %v1083_v53  ;;  %v861_v53 = vld [vmem:[#allocation11 + $0x70] sm:$0xff] }
 0x29c   :  { %1467 = vmatpush2.bf16.msra.mxu0 %v1211_v54  ;;  %1425 = vmatprep.subr.bf16.mxu1 %v1076_v55  ;;  %v925_v55 = vld [vmem:[#allocation11 + $0x270] sm:$0xff]  ;;  %v997_v63 = vunpack.c.l.s8.bf16 %v861_v53 }
 0x29d   :  { %1468 = vmatprep.subr.bf16.mxu0 %v1204_v56  ;;  %v1005_v56 = vunpack.c.h.s8.bf16 %v861_v53  ;;  %v1133_v57 = vunpack.c.h.s8.bf16 %v925_v55 }
 0x29f   :  { %1426 = vmatpush2.bf16.msra.mxu1 %v1075_v59 }
 0x2a0   :  { %1469 = vmatpush2.bf16.msra.mxu0 %v1203_v60  ;;  %1427 = vmatprep.subr.bf16.mxu1 %v1068_v62  ;;  %v854_v60 = vld [vmem:[#allocation11 + $0x38] sm:$0xff] }
 0x2a1   :  { %1470 = vmatprep.subr.bf16.mxu0 %v1196_v2  ;;  %v918_v62 = vld [vmem:[#allocation11 + $0x238] sm:$0xff]  ;;  %v1125_v2 = vunpack.c.l.s8.bf16 %v925_v55  ;;  %v990_v4 = vunpack.c.h.s8.bf16 %v854_v60  ;;  %v982_v10 = vunpack.c.l.s8.bf16 %v854_v60 }
 0x2a3   :  { %1428 = vmatpush2.bf16.msra.mxu1 %v1067_v5  ;;  %v853_v5 = vld [vmem:[#allocation11 + $0x30] sm:$0xff] }
 0x2a4   :  { %1471 = vmatpush2.bf16.msra.mxu0 %v1195_v6  ;;  %1429 = vmatprep.subr.bf16.mxu1 %v1060_v7  ;;  %v1118_v6 = vunpack.c.h.s8.bf16 %v918_v62  ;;  %v917_v7 = vld [vmem:[#allocation11 + $0x230] sm:$0xff]  ;;  %v981_v14 = vunpack.c.l.s8.bf16 %v853_v5 }
 0x2a5   :  { %1472 = vmatprep.subr.bf16.mxu0 %v1188_v8  ;;  %v989_v8 = vunpack.c.h.s8.bf16 %v853_v5  ;;  %v1117_v9 = vunpack.c.h.s8.bf16 %v917_v7 }
 0x2a7   :  { %1430 = vmatpush2.bf16.msra.mxu1 %v1059_v11  ;;  %v1110_v11 = vunpack.c.l.s8.bf16 %v918_v62 }
 0x2a8   :  { %1473 = vmatpush2.bf16.msra.mxu0 %v1187_v12  ;;  %1431 = vmatprep.subr.bf16.mxu1 %v1052_v13  ;;  %v910_v12 = vld [vmem:[#allocation11 + $0x1f8] sm:$0xff] }
 0x2a9   :  { %1474 = vmatprep.subr.bf16.mxu0 %v1180_v15  ;;  %v974_v13 = vld [vmem:[#allocation11 + $0x3f8] sm:$0xff]  ;;  %v1109_v15 = vunpack.c.l.s8.bf16 %v917_v7  ;;  %v1102_v16 = vunpack.c.h.s8.bf16 %v910_v12  ;;  %v1094_v27 = vunpack.c.l.s8.bf16 %v910_v12 }
 0x2ab   :  { %1432 = vmatpush2.bf16.msra.mxu1 %v1051_v17  ;;  %v909_v17 = vld [vmem:[#allocation11 + $0x1f0] sm:$0xff] }
 0x2ac   :  { %1475 = vmatpush2.bf16.msra.mxu0 %v1179_v18  ;;  %1433 = vmatprep.subr.bf16.mxu1 %v1044_v21  ;;  %v1230_v18 = vunpack.c.h.s8.bf16 %v974_v13  ;;  %v973_v21 = vld [vmem:[#allocation11 + $0x3f0] sm:$0xff]  ;;  %v1093_v31 = vunpack.c.l.s8.bf16 %v909_v17 }
 0x2ad   :  { %1476 = vmatprep.subr.bf16.mxu0 %v1172_v22  ;;  %v1101_v22 = vunpack.c.h.s8.bf16 %v909_v17  ;;  %v1229_v26 = vunpack.c.h.s8.bf16 %v973_v21  ;;  %v1818_v17 = vld [vmem:[#allocation14 + $0x238] sm:$0xff] }
 0x2af   :  { %1434 = vmatpush2.bf16.msra.mxu1 %v1043_v28  ;;  %v1222_v28 = vunpack.c.l.s8.bf16 %v974_v13 }
 0x2b0   :  { %1477 = vmatpush2.bf16.msra.mxu0 %v1171_v29  ;;  %1489 = vmatprep.subr.bf16.mxu1 %v1038_v30  ;;  %v902_v29 = vld [vmem:[#allocation11 + $0x1b8] sm:$0xff] }
 0x2b1   :  { %1532 = vmatprep.subr.bf16.mxu0 %v1166_v32  ;;  %v966_v30 = vld [vmem:[#allocation11 + $0x3b8] sm:$0xff]  ;;  %v1221_v32 = vunpack.c.l.s8.bf16 %v973_v21  ;;  %v1086_v33 = vunpack.c.h.s8.bf16 %v902_v29  ;;  %v1078_v39 = vunpack.c.l.s8.bf16 %v902_v29 }
 0x2b2   :  { %1436 = vmatmul.mubr.bf16.vlgmr.msra.gmra.mxu1 %v3997_v0  ;;  %v4028_v21 = vld [vmem:[%s4184_s6] sm:$0xff] }
 0x2b3   :  { %1479 = vmatmul.mubr.bf16.vlgmr.msra.gmra.mxu0 %v4001_v3  ;;  %1490 = vmatpush1.bf16.msra.mxu1 %v1037_v34  ;;  %v901_v34 = vld [vmem:[#allocation11 + $0x1b0] sm:$0xff] }
 0x2b4   :  { %1521 = vmatprep.mubr.bf16.mxu1 %v3995_v61  ;;  %1533 = vmatpush1.bf16.msra.mxu0 %v1165_v35  ;;  %v926_v61 = vld [vmem:[#allocation11 + $0x278] sm:$0xff]  ;;  %v1214_v35 = vunpack.c.h.s8.bf16 %v966_v30  ;;  %v1085_v37 = vunpack.c.h.s8.bf16 %v901_v34  ;;  %v1077_v43 = vunpack.c.l.s8.bf16 %v901_v34 }
 0x2b5   :  { %1564 = vmatprep.mubr.bf16.mxu0 %v3999_v1  ;;  %1491 = vmatprep.subr.bf16.mxu1 %v1030_v36  ;;  %v1006_v1 = vunpack.c.h.s8.bf16 %v862_v50  ;;  %v1134_v54 = vunpack.c.h.s8.bf16 %v926_v61  ;;  %v1126_v59 = vunpack.c.l.s8.bf16 %v926_v61  ;;  %v965_v36 = vld [vmem:[#allocation11 + $0x3b0] sm:$0xff] }
 0x2b6   :  { %1534 = vmatprep.subr.bf16.mxu0 %v1158_v38  ;;  %v1213_v38 = vunpack.c.h.s8.bf16 %v965_v36 }
 0x2b7   :  { %1492 = vmatpush1.bf16.msra.mxu1 %v1029_v40  ;;  %v1206_v40 = vunpack.c.l.s8.bf16 %v966_v30 }
 0x2b8   :  { %1535 = vmatpush1.bf16.msra.mxu0 %v1157_v41  ;;  %1493 = vmatprep.subr.bf16.mxu1 %v1022_v42  ;;  %v894_v41 = vld [vmem:[#allocation11 + $0x178] sm:$0xff] }
 0x2b9   :  { %1536 = vmatprep.subr.bf16.mxu0 %v1150_v44  ;;  %v958_v42 = vld [vmem:[#allocation11 + $0x378] sm:$0xff]  ;;  %v1205_v44 = vunpack.c.l.s8.bf16 %v965_v36  ;;  %v1070_v45 = vunpack.c.h.s8.bf16 %v894_v41  ;;  %v1062_v61 = vunpack.c.l.s8.bf16 %v894_v41 }
 0x2bb   :  { %1494 = vmatpush1.bf16.msra.mxu1 %v1021_v46  ;;  %v893_v46 = vld [vmem:[#allocation11 + $0x170] sm:$0xff] }
 0x2bc   :  { %1537 = vmatpush1.bf16.msra.mxu0 %v1149_v47  ;;  %1495 = vmatprep.subr.bf16.mxu1 %v1014_v48  ;;  %v1198_v47 = vunpack.c.h.s8.bf16 %v958_v42  ;;  %v957_v48 = vld [vmem:[#allocation11 + $0x370] sm:$0xff]  ;;  %v1061_v53 = vunpack.c.l.s8.bf16 %v893_v46 }
 0x2bd   :  { %1538 = vmatprep.subr.bf16.mxu0 %v1142_v49  ;;  %v1069_v49 = vunpack.c.h.s8.bf16 %v893_v46  ;;  %v1197_v50 = vunpack.c.h.s8.bf16 %v957_v48 }
 0x2bf   :  { %1496 = vmatpush1.bf16.msra.mxu1 %v1013_v51  ;;  %v1190_v51 = vunpack.c.l.s8.bf16 %v958_v42 }
 0x2c0   :  { %1539 = vmatpush1.bf16.msra.mxu0 %v1141_v52  ;;  %1497 = vmatprep.subr.bf16.mxu1 %v1006_v1  ;;  %v886_v52 = vld [vmem:[#allocation11 + $0x138] sm:$0xff] }
 0x2c1   :  { %1540 = vmatprep.subr.bf16.mxu0 %v1134_v54  ;;  %v950_v1 = vld [vmem:[#allocation11 + $0x338] sm:$0xff]  ;;  %v1189_v54 = vunpack.c.l.s8.bf16 %v957_v48  ;;  %v1054_v55 = vunpack.c.h.s8.bf16 %v886_v52  ;;  %v1046_v62 = vunpack.c.l.s8.bf16 %v886_v52 }
 0x2c3   :  { %1498 = vmatpush1.bf16.msra.mxu1 %v1005_v56  ;;  %v885_v56 = vld [vmem:[#allocation11 + $0x130] sm:$0xff] }
 0x2c4   :  { %1541 = vmatpush1.bf16.msra.mxu0 %v1133_v57  ;;  %1499 = vmatprep.subr.bf16.mxu1 %v998_v58  ;;  %v1182_v57 = vunpack.c.h.s8.bf16 %v950_v1  ;;  %v949_v58 = vld [vmem:[#allocation11 + $0x330] sm:$0xff]  ;;  %v1045_v5 = vunpack.c.l.s8.bf16 %v885_v56 }
 0x2c5   :  { %1542 = vmatprep.subr.bf16.mxu0 %v1126_v59  ;;  %v1053_v59 = vunpack.c.h.s8.bf16 %v885_v56  ;;  %v1181_v60 = vunpack.c.h.s8.bf16 %v949_v58 }
 0x2c7   :  { %1500 = vmatpush1.bf16.msra.mxu1 %v997_v63  ;;  %v1174_v63 = vunpack.c.l.s8.bf16 %v950_v1  ;;  %v1810_v1 = vld [vmem:[#allocation14 + $0x1f8] sm:$0xff] }
 0x2c8   :  { %1543 = vmatpush1.bf16.msra.mxu0 %v1125_v2  ;;  %1501 = vmatprep.subr.bf16.mxu1 %v990_v4  ;;  %v1769_v2 = vld [vmem:[#allocation14 + $0xb0] sm:$0xff] }
 0x2c9   :  { %1544 = vmatprep.subr.bf16.mxu0 %v1118_v6  ;;  %v1825_v4 = vld [vmem:[#allocation14 + $0x270] sm:$0xff]  ;;  %v1173_v6 = vunpack.c.l.s8.bf16 %v949_v58  ;;  %v2021_v7 = vunpack.c.h.s8.bf16 %v1769_v2  ;;  %v2014_v12 = vunpack.c.l.s8.bf16 %v1769_v2 }
 0x2cb   :  { %1502 = vmatpush1.bf16.msra.mxu1 %v989_v8  ;;  %v1768_v8 = vld [vmem:[#allocation14 + $0xa8] sm:$0xff] }
 0x2cc   :  { %1545 = vmatpush1.bf16.msra.mxu0 %v1117_v9  ;;  %1503 = vmatprep.subr.bf16.mxu1 %v982_v10  ;;  %v2133_v9 = vunpack.c.h.s8.bf16 %v1825_v4  ;;  %v1824_v10 = vld [vmem:[#allocation14 + $0x268] sm:$0xff] }
 0x2cd   :  { %1546 = vmatprep.subr.bf16.mxu0 %v1110_v11  ;;  %v2020_v11 = vunpack.c.h.s8.bf16 %v1768_v8  ;;  %v2132_v13 = vunpack.c.h.s8.bf16 %v1824_v10  ;;  %v2125_v29 = vunpack.c.l.s8.bf16 %v1824_v10  ;;  %v1803_v10 = vld [vmem:[#allocation14 + $0x1c0] sm:$0xff] }
 0x2cf   :  { %1504 = vmatpush1.bf16.msra.mxu1 %v981_v14  ;;  %v1762_v14 = vld [vmem:[#allocation14 + $0x78] sm:$0xff] }
 0x2d0   :  { %1547 = vmatpush1.bf16.msra.mxu0 %v1109_v15  ;;  %1505 = vmatprep.subr.bf16.mxu1 %v1102_v16  ;;  %v2126_v15 = vunpack.c.l.s8.bf16 %v1825_v4 }
 0x2d1   :  { %1548 = vmatprep.subr.bf16.mxu0 %v1230_v18 }
 0x2d3   :  { %1506 = vmatpush2.bf16.msra.mxu1 %v1101_v22  ;;  %v2013_v22 = vunpack.c.l.s8.bf16 %v1768_v8  ;;  %v2097_v8 = vunpack.c.l.s8.bf16 %v1810_v1 }
 0x2d4   :  { %1549 = vmatpush2.bf16.msra.mxu0 %v1229_v26  ;;  %1507 = vmatprep.subr.bf16.mxu1 %v1094_v27  ;;  %v1584_v27 = vrot.slane %v4028_v21, %v3971_v24 }
 0x2d5   :  { %1550 = vmatprep.subr.bf16.mxu0 %v1222_v28  ;;  %v1761_v28 = vld [vmem:[#allocation14 + $0x70] sm:$0xff] }
 0x2d6   :  { %v1999_v48 = vunpack.c.l.s8.bf16 %v1761_v28 }
 0x2d7   :  { %1508 = vmatpush2.bf16.msra.mxu1 %v1093_v31  ;;  %v1817_v31 = vld [vmem:[#allocation14 + $0x230] sm:$0xff] }
 0x2d8   :  { %1551 = vmatpush2.bf16.msra.mxu0 %v1221_v32  ;;  %1509 = vmatprep.subr.bf16.mxu1 %v1086_v33  ;;  %v4032_v32 = vld [vmem:[#allocation13] sm:$0xff]  ;;  %v2118_v41 = vunpack.c.h.s8.bf16 %v1817_v31 }
 0x2d9   :  { %1552 = vmatprep.subr.bf16.mxu0 %v1214_v35  ;;  %v1642_v35 = vrot.slane %v4032_v32, %v3971_v24 }
 0x2db   :  { %1510 = vmatpush2.bf16.msra.mxu1 %v1085_v37  ;;  %v2006_v37 = vunpack.c.h.s8.bf16 %v1761_v28 }
 0x2dc   :  { %1553 = vmatpush2.bf16.msra.mxu0 %v1213_v38  ;;  %1511 = vmatprep.subr.bf16.mxu1 %v1078_v39 }
 0x2dd   :  { %1554 = vmatprep.subr.bf16.mxu0 %v1206_v40  ;;  %v2000_v40 = vunpack.c.l.s8.bf16 %v1762_v14 }
 0x2df   :  { %1512 = vmatpush2.bf16.msra.mxu1 %v1077_v43  ;;  %v1755_v43 = vld [vmem:[#allocation14 + $0x40] sm:$0xff] }
 0x2e0   :  { %1555 = vmatpush2.bf16.msra.mxu0 %v1205_v44  ;;  %1513 = vmatprep.subr.bf16.mxu1 %v1070_v45  ;;  %v2112_v44 = vunpack.c.l.s8.bf16 %v1818_v17  ;;  %v1811_v45 = vld [vmem:[#allocation14 + $0x200] sm:$0xff]  ;;  %v1986_v56 = vunpack.c.l.s8.bf16 %v1755_v43 }
 0x2e1   :  { %1556 = vmatprep.subr.bf16.mxu0 %v1198_v47  ;;  %v2105_v52 = vunpack.c.h.s8.bf16 %v1811_v45 }
 0x2e3   :  { %1514 = vmatpush2.bf16.msra.mxu1 %v1069_v49  ;;  %v1993_v49 = vunpack.c.h.s8.bf16 %v1755_v43  ;;  %v1845_v43 = vld [vmem:[#allocation14 + $0x310] sm:$0xff] }
 0x2e4   :  { %1557 = vmatpush2.bf16.msra.mxu0 %v1197_v50  ;;  %1515 = vmatprep.subr.bf16.mxu1 %v1062_v61  ;;  %v1754_v50 = vld [vmem:[#allocation14 + $0x38] sm:$0xff]  ;;  %v2111_v61 = vunpack.c.l.s8.bf16 %v1817_v31 }
 0x2e5   :  { %1558 = vmatprep.subr.bf16.mxu0 %v1190_v51  ;;  %v1985_v4 = vunpack.c.l.s8.bf16 %v1754_v50 }
 0x2e7   :  { %1516 = vmatpush2.bf16.msra.mxu1 %v1061_v53 }
 0x2e8   :  { %1559 = vmatpush2.bf16.msra.mxu0 %v1189_v54  ;;  %1517 = vmatprep.subr.bf16.mxu1 %v1054_v55  ;;  %v1992_v55 = vunpack.c.h.s8.bf16 %v1754_v50 }
 0x2e9   :  { %1560 = vmatprep.subr.bf16.mxu0 %v1182_v57  ;;  %v2104_v57 = vunpack.c.h.s8.bf16 %v1810_v1 }
 0x2eb   :  { %1518 = vmatpush2.bf16.msra.mxu1 %v1053_v59  ;;  %v1748_v59 = vld [vmem:[#allocation14 + $0x8] sm:$0xff] }
 0x2ec   :  { %1561 = vmatpush2.bf16.msra.mxu0 %v1181_v60  ;;  %1519 = vmatprep.subr.bf16.mxu1 %v1046_v62  ;;  %v2098_v60 = vunpack.c.l.s8.bf16 %v1811_v45  ;;  %v1804_v62 = vld [vmem:[#allocation14 + $0x1c8] sm:$0xff] }
 0x2ed   :  { %1562 = vmatprep.subr.bf16.mxu0 %v1174_v63 }
 0x2ef   :  { %1520 = vmatpush2.bf16.msra.mxu1 %v1045_v5 }
 0x2f0   :  { %1563 = vmatpush2.bf16.msra.mxu0 %v1173_v6  ;;  %2419 = vmatprep.subr.bf16.mxu1 %v2021_v7  ;;  %v1979_v6 = vunpack.c.h.s8.bf16 %v1748_v59  ;;  %v1747_v7 = vld [vmem:[#allocation14] sm:$0xff] }
 0x2f1   :  { %2462 = vmatprep.subr.bf16.mxu0 %v2133_v9  ;;  %v2091_v9 = vunpack.c.h.s8.bf16 %v1804_v62 }
 0x2f2   :  { %1522 = vmatmul.mubr.bf16.vlgmr.msra.gmra.mxu1 %v3997_v0  ;;  %v4020_v16 = vpop.f32.mrf.mxu1  ;;  %v2007_v0 = vunpack.c.h.s8.bf16 %v1762_v14  ;;  %v1797_v14 = vld [vmem:[#allocation14 + $0x190] sm:$0xff] }
 0x2f3   :  { %1565 = vmatmul.mubr.bf16.vlgmr.msra.gmra.mxu0 %v4001_v3  ;;  %v4023_v18 = vpop.f32.mrf.mxu0  ;;  %2420 = vmatpush1.bf16.msra.mxu1 %v2020_v11  ;;  %v2119_v3 = vunpack.c.h.s8.bf16 %v1818_v17  ;;  %v1978_v11 = vunpack.c.h.s8.bf16 %v1747_v7  ;;  %v1853_v17 = vld [vmem:[#allocation14 + $0x350] sm:$0xff] }
 0x2f4   :  { %v1267_v26 = vpop.f32.mrf.mxu1  ;;  %2421 = vmatprep.subr.bf16.mxu1 %v2014_v12  ;;  %2463 = vmatpush1.bf16.msra.mxu0 %v2132_v13  ;;  %v1972_v12 = vunpack.c.l.s8.bf16 %v1748_v59  ;;  %v2090_v13 = vunpack.c.h.s8.bf16 %v1803_v10  ;;  %v2189_v28 = vunpack.c.h.s8.bf16 %v1853_v17 }
 0x2f5   :  { %v1310_v30 = vpop.f32.mrf.mxu0  ;;  %2464 = vmatprep.subr.bf16.mxu0 %v2126_v15  ;;  %v2084_v15 = vunpack.c.l.s8.bf16 %v1804_v62  ;;  %v1776_v62 = vld [vmem:[#allocation14 + $0xe8] sm:$0xff] }
 0x2f6   :  { %v1311_v33 = vadd.f32 %v1310_v30, %v1267_v26  ;;  %v4034_v34 = vpop.f32.mrf.mxu1  ;;  %v2077_v26 = vunpack.c.h.s8.bf16 %v1797_v14 }
 0x2f7   :  { %v4038_v36 = vpop.f32.mrf.mxu0  ;;  %2422 = vmatpush1.bf16.msra.mxu1 %v2013_v22  ;;  %v1971_v22 = vunpack.c.l.s8.bf16 %v1747_v7 }
 0x2f8   :  { %v1618_v38 = vmul.f32 %v1584_v27, %v1311_v33  ;;  %v1271_v39 = vpop.f32.mrf.mxu1  ;;  %2423 = vmatprep.subr.bf16.mxu1 %v2007_v0  ;;  %2465 = vmatpush1.bf16.msra.mxu0 %v2125_v29  ;;  %v2083_v0 = vunpack.c.l.s8.bf16 %v1803_v10  ;;  %v1852_v29 = vld [vmem:[#allocation14 + $0x348] sm:$0xff]  ;;  %v1790_v33 = vld [vmem:[#allocation14 + $0x158] sm:$0xff]  ;;  %v1313_v1 = vadd.f32 %v4038_v36, %v4034_v34 }
 0x2f9   :  { %v1314_v42 = vpop.f32.mrf.mxu0  ;;  %2466 = vmatprep.subr.bf16.mxu0 %v2119_v3  ;;  %v2070_v3 = vunpack.c.l.s8.bf16 %v1797_v14  ;;  %v2188_v31 = vunpack.c.h.s8.bf16 %v1852_v29  ;;  %v2056_v45 = vunpack.c.l.s8.bf16 %v1790_v33  ;;  %v1832_v34 = vld [vmem:[#allocation14 + $0x2a8] sm:$0xff] }
 0x2fa   :  { %v1676_v46 = vadd.f32 %v1642_v35, %v1618_v38  ;;  %v1315_v47 = vadd.f32 %v1314_v42, %v1271_v39  ;;  %v2063_v39 = vunpack.c.h.s8.bf16 %v1790_v33 }
 0x2fb   :  { %2424 = vmatpush1.bf16.msra.mxu1 %v2006_v37  ;;  %v1846_v37 = vld [vmem:[#allocation14 + $0x318] sm:$0xff] }
 0x2fc   :  { %2425 = vmatprep.subr.bf16.mxu1 %v2000_v40  ;;  %2467 = vmatpush1.bf16.msra.mxu0 %v2118_v41  ;;  %v1626_v51 = vmul.f32 %v1584_v27, %v1315_v47  ;;  %v1708_v53 = vmul.f32 0.2, %v1676_v46  ;;  %vm1692_vm12 = vcmp.gt.f32.partialorder %v1676_v46, 0.0  ;;  %v1796_v27 = vld [vmem:[#allocation14 + $0x188] sm:$0xff]  ;;  %v1789_v40 = vld [vmem:[#allocation14 + $0x150] sm:$0xff]  ;;  %v2181_v41 = vunpack.c.l.s8.bf16 %v1852_v29  ;;  %v1783_v47 = vld [vmem:[#allocation14 + $0x120] sm:$0xff] }
 0x2fd   :  { %2468 = vmatprep.subr.bf16.mxu0 %v2112_v44  ;;  %v2076_v30 = vunpack.c.h.s8.bf16 %v1796_v27  ;;  %v2069_v38 = vunpack.c.l.s8.bf16 %v1796_v27  ;;  %v2175_v42 = vunpack.c.h.s8.bf16 %v1846_v37  ;;  %v2062_v44 = vunpack.c.h.s8.bf16 %v1789_v40  ;;  %v1880_v29 = vld [vmem:[#allocation14 + $0x428] sm:$0xff] }
 0x2fe   :  { %v1684_v54 = vadd.f32 %v1642_v35, %v1626_v51  ;;  %v1724_v63 = vsel %vm1692_vm12, %v1676_v46, %v1708_v53  ;;  %v2182_v35 = vunpack.c.l.s8.bf16 %v1853_v17  ;;  %v2174_v46 = vunpack.c.h.s8.bf16 %v1845_v43  ;;  %v1782_v51 = vld [vmem:[#allocation14 + $0x118] sm:$0xff]  ;;  %v1881_v17 = vld [vmem:[#allocation14 + $0x430] sm:$0xff] }
 0x2ff   :  { %2426 = vmatpush1.bf16.msra.mxu1 %v1999_v48  ;;  %v2168_v48 = vunpack.c.l.s8.bf16 %v1846_v37  ;;  %v2055_v50 = vunpack.c.l.s8.bf16 %v1789_v40  ;;  %v2244_v33 = vunpack.c.h.s8.bf16 %v1880_v29  ;;  %v2238_v37 = vunpack.c.l.s8.bf16 %v1881_v17 }
 0x300   :  { %2427 = vmatprep.subr.bf16.mxu1 %v1993_v49  ;;  %2469 = vmatpush1.bf16.msra.mxu0 %v2111_v61  ;;  %vm1700_vm13 = vcmp.gt.f32.partialorder %v1684_v54, 0.0  ;;  %v1716_v58 = vmul.f32 0.2, %v1684_v54  ;;  %v1839_v49 = vld [vmem:[#allocation14 + $0x2e0] sm:$0xff]  ;;  %v2049_v61 = vunpack.c.h.s8.bf16 %v1783_v47 }
 0x301   :  { %2470 = vmatprep.subr.bf16.mxu0 %v2105_v52  ;;  %v2167_v52 = vunpack.c.l.s8.bf16 %v1845_v43  ;;  %v2161_v53 = vunpack.c.h.s8.bf16 %v1839_v49  ;;  %v1588_v43 = vrot.slane %v4028_v21, %v3988_v20 }
 0x302   :  { %v1732_v2 = vsel %vm1700_vm13, %v1684_v54, %v1716_v58  ;;  %v1838_v54 = vld [vmem:[#allocation14 + $0x2d8] sm:$0xff]  ;;  %v2042_v58 = vunpack.c.l.s8.bf16 %v1783_v47  ;;  %v1873_v47 = vld [vmem:[#allocation14 + $0x3f0] sm:$0xff] }
 0x303   :  { %2428 = vmatpush1.bf16.msra.mxu1 %v1992_v55  ;;  %v4040_v5 = vpack.c.bf16 %v1732_v2, %v1724_v63  ;;  %v1309_v55 = vadd.f32 %v4023_v18, %v4020_v16  ;;  %v2160_v59 = vunpack.c.h.s8.bf16 %v1838_v54  ;;  %v2154_v63 = vunpack.c.l.s8.bf16 %v1839_v49 }
 0x304   :  { %2429 = vmatprep.subr.bf16.mxu1 %v1986_v56  ;;  %2471 = vmatpush1.bf16.msra.mxu0 %v2104_v57  ;;  %v1580_v56 = vrot.slane %v4028_v21, %v3974_v25  ;;  %v2048_v57 = vunpack.c.h.s8.bf16 %v1782_v51  ;;  %v1638_v2 = vrot.slane %v4032_v32, %v3974_v25  ;;  %v2041_v16 = vunpack.c.l.s8.bf16 %v1782_v51 }
 0x305   :  { %2472 = vmatprep.subr.bf16.mxu0 %v2098_v60  ;;  %2451 = vmatprep.mubr.bf16.mxu1 %v4040_v5  ;;  %v2035_v18 = vunpack.c.h.s8.bf16 %v1776_v62  ;;  %v1650_v51 = vrot.slane %v4032_v32, %v3985_v19 }
 0x306   :  { %v1625_v60 = vmul.f32 %v1580_v56, %v1313_v1  ;;  %v1617_v36 = vmul.f32 %v1580_v56, %v1309_v55  ;;  %v2230_v1 = vunpack.c.h.s8.bf16 %v1873_v47 }
 0x307   :  { %2430 = vmatpush1.bf16.msra.mxu1 %v1985_v4  ;;  %v1775_v4 = vld [vmem:[#allocation14 + $0xe0] sm:$0xff] }
 0x308   :  { %2431 = vmatprep.subr.bf16.mxu1 %v1979_v6  ;;  %2473 = vmatpush1.bf16.msra.mxu0 %v2097_v8  ;;  %v2153_v6 = vunpack.c.l.s8.bf16 %v1838_v54  ;;  %v1683_v7 = vadd.f32 %v1638_v2, %v1625_v60  ;;  %v2147_v8 = vunpack.c.h.s8.bf16 %v1832_v34  ;;  %v1675_v10 = vadd.f32 %v1638_v2, %v1617_v36 }
 0x309   :  { %2474 = vmatprep.subr.bf16.mxu0 %v2091_v9  ;;  %v1831_v9 = vld [vmem:[#allocation14 + $0x2a0] sm:$0xff]  ;;  %v2027_v27 = vunpack.c.l.s8.bf16 %v1775_v4 }
 0x30a   :  { %v1715_v14 = vmul.f32 0.2, %v1683_v7  ;;  %vm1699_vm14 = vcmp.gt.f32.partialorder %v1683_v7, 0.0  ;;  %vm1691_vm15 = vcmp.gt.f32.partialorder %v1675_v10, 0.0 }
 0x30b   :  { %2432 = vmatpush1.bf16.msra.mxu1 %v1978_v11  ;;  %v2034_v11 = vunpack.c.h.s8.bf16 %v1775_v4 }
 0x30c   :  { %2433 = vmatprep.subr.bf16.mxu1 %v1972_v12  ;;  %2475 = vmatpush1.bf16.msra.mxu0 %v2090_v13  ;;  %v2028_v12 = vunpack.c.l.s8.bf16 %v1776_v62  ;;  %v2146_v13 = vunpack.c.h.s8.bf16 %v1831_v9 }
 0x30d   :  { %2476 = vmatprep.subr.bf16.mxu0 %v2084_v15  ;;  %v2140_v15 = vunpack.c.l.s8.bf16 %v1832_v34  ;;  %v2223_v34 = vunpack.c.l.s8.bf16 %v1873_v47 }
 0x30f   :  { %2434 = vmatpush1.bf16.msra.mxu1 %v1971_v22  ;;  %v4051_v22 = vld [vmem:[#allocation14 + $0x5f0] sm:$0xff] }
 0x310   :  { %2435 = vmatprep.subr.bf16.mxu1 %v2077_v26  ;;  %2477 = vmatpush1.bf16.msra.mxu0 %v2083_v0  ;;  %v1707_v26 = vmul.f32 0.2, %v1675_v10  ;;  %v2139_v0 = vunpack.c.l.s8.bf16 %v1831_v9 }
 0x311   :  { %2478 = vmatprep.subr.bf16.mxu0 %v2189_v28  ;;  %v2245_v28 = vunpack.c.h.s8.bf16 %v1881_v17 }
 0x313   :  { %2436 = vmatpush2.bf16.msra.mxu1 %v2076_v30  ;;  %v1731_v30 = vsel %vm1699_vm14, %v1683_v7, %v1715_v14  ;;  %v1936_v14 = vld [vmem:[#allocation14 + $0x5e8] sm:$0xff] }
 0x314   :  { %2437 = vmatprep.subr.bf16.mxu1 %v2070_v3  ;;  %2479 = vmatpush2.bf16.msra.mxu0 %v2188_v31  ;;  %v2357_v3 = vunpack.c.h.s8.bf16 %v4051_v22  ;;  %v1723_v31 = vsel %vm1691_vm15, %v1675_v10, %v1707_v26 }
 0x315   :  { %2480 = vmatprep.subr.bf16.mxu0 %v2182_v35  ;;  %v4054_v35 = vpack.c.bf16 %v1731_v30, %v1723_v31  ;;  %v1859_v30 = vld [vmem:[#allocation14 + $0x380] sm:$0xff] }
 0x317   :  { %2438 = vmatpush2.bf16.msra.mxu1 %v2069_v38  ;;  %v1874_v38 = vld [vmem:[#allocation14 + $0x3f8] sm:$0xff] }
 0x318   :  { %2439 = vmatprep.subr.bf16.mxu1 %v2063_v39  ;;  %2481 = vmatpush2.bf16.msra.mxu0 %v2181_v41  ;;  %v2237_v41 = vunpack.c.l.s8.bf16 %v1880_v29 }
 0x319   :  { %2482 = vmatprep.subr.bf16.mxu0 %v2175_v42 }
 0x31b   :  { %2440 = vmatpush2.bf16.msra.mxu1 %v2062_v44 }
 0x31c   :  { %2441 = vmatprep.subr.bf16.mxu1 %v2056_v45  ;;  %2483 = vmatpush2.bf16.msra.mxu0 %v2174_v46  ;;  %v1592_v45 = vrot.slane %v4028_v21, %v3985_v19  ;;  %v2231_v46 = vunpack.c.h.s8.bf16 %v1874_v38 }
 0x31d   :  { %2484 = vmatprep.subr.bf16.mxu0 %v2168_v48 }
 0x31f   :  { %2442 = vmatpush2.bf16.msra.mxu1 %v2055_v50 }
 0x320   :  { %2443 = vmatprep.subr.bf16.mxu1 %v2049_v61  ;;  %2485 = vmatpush2.bf16.msra.mxu0 %v2167_v52  ;;  %v1646_v61 = vrot.slane %v4032_v32, %v3988_v20 }
 0x321   :  { %2486 = vmatprep.subr.bf16.mxu0 %v2161_v53 }
 0x323   :  { %2444 = vmatpush2.bf16.msra.mxu1 %v2048_v57  ;;  %v2224_v57 = vunpack.c.l.s8.bf16 %v1874_v38  ;;  %v2202_v38 = vunpack.c.h.s8.bf16 %v1859_v30 }
 0x324   :  { %2445 = vmatprep.subr.bf16.mxu1 %v2042_v58  ;;  %2487 = vmatpush2.bf16.msra.mxu0 %v2160_v59  ;;  %v1867_v59 = vld [vmem:[#allocation14 + $0x3c0] sm:$0xff] }
 0x325   :  { %2488 = vmatprep.subr.bf16.mxu0 %v2154_v63 }
 0x327   :  { %2446 = vmatpush2.bf16.msra.mxu1 %v2041_v16  ;;  %v2217_v16 = vunpack.c.h.s8.bf16 %v1867_v59 }
 0x328   :  { %2447 = vmatprep.subr.bf16.mxu1 %v2035_v18  ;;  %2489 = vmatpush2.bf16.msra.mxu0 %v2153_v6  ;;  %v1866_v18 = vld [vmem:[#allocation14 + $0x3b8] sm:$0xff] }
 0x329   :  { %2490 = vmatprep.subr.bf16.mxu0 %v2147_v8  ;;  %v2216_v9 = vunpack.c.h.s8.bf16 %v1866_v18 }
 0x32b   :  { %2448 = vmatpush2.bf16.msra.mxu1 %v2034_v11  ;;  %v2210_v11 = vunpack.c.l.s8.bf16 %v1867_v59 }
 0x32c   :  { %2449 = vmatprep.subr.bf16.mxu1 %v2028_v12  ;;  %2491 = vmatpush2.bf16.msra.mxu0 %v2146_v13  ;;  %v1860_v13 = vld [vmem:[#allocation14 + $0x388] sm:$0xff] }
 0x32d   :  { %2492 = vmatprep.subr.bf16.mxu0 %v2140_v15  ;;  %v2203_v29 = vunpack.c.h.s8.bf16 %v1860_v13 }
 0x32f   :  { %2450 = vmatpush2.bf16.msra.mxu1 %v2027_v27  ;;  %v2209_v27 = vunpack.c.l.s8.bf16 %v1866_v18  ;;  %v1894_v18 = vld [vmem:[#allocation14 + $0x498] sm:$0xff] }
 0x330   :  { %2493 = vmatpush2.bf16.msra.mxu0 %v2139_v0  ;;  %2505 = vmatprep.subr.bf16.mxu1 %v2245_v28 }
 0x331   :  { %2548 = vmatprep.subr.bf16.mxu0 %v2357_v3  ;;  %v2356_v3 = vunpack.c.h.s8.bf16 %v1936_v14 }
 0x332   :  { %v1351_v39 = vpop.f32.mrf.mxu1  ;;  %2452 = vmatmul.mubr.bf16.vlgmr.msra.gmra.mxu1 %v4054_v35 }
 0x333   :  { %v1394_v40 = vpop.f32.mrf.mxu0  ;;  %2506 = vmatpush1.bf16.msra.mxu1 %v2244_v33  ;;  %v2350_v33 = vunpack.c.l.s8.bf16 %v4051_v22  ;;  %v1908_v22 = vld [vmem:[#allocation14 + $0x508] sm:$0xff] }
 0x334   :  { %v1395_v42 = vadd.f32 %v1394_v40, %v1351_v39  ;;  %v1353_v44 = vpop.f32.mrf.mxu1  ;;  %2507 = vmatprep.subr.bf16.mxu1 %v2238_v37  ;;  %v1930_v37 = vld [vmem:[#allocation14 + $0x5b8] sm:$0xff]  ;;  %v2196_v39 = vunpack.c.l.s8.bf16 %v1860_v13  ;;  %v2349_v40 = vunpack.c.l.s8.bf16 %v1936_v14  ;;  %v1964_v13 = vld [vmem:[#allocation14 + $0x6c8] sm:$0xff]  ;;  %v2265_v14 = vunpack.c.l.s8.bf16 %v1894_v18 }
 0x335   :  { %v1396_v48 = vpop.f32.mrf.mxu0  ;;  %v2336_v47 = vunpack.c.l.s8.bf16 %v1930_v37 }
 0x336   :  { %v1397_v49 = vadd.f32 %v1396_v48, %v1353_v44  ;;  %v1355_v50 = vpop.f32.mrf.mxu1  ;;  %v1619_v53 = vmul.f32 %v1588_v43, %v1395_v42  ;;  %v2343_v42 = vunpack.c.h.s8.bf16 %v1930_v37  ;;  %v2195_v44 = vunpack.c.l.s8.bf16 %v1859_v30  ;;  %v1923_v48 = vld [vmem:[#allocation14 + $0x580] sm:$0xff] }
 0x337   :  { %v1398_v52 = vpop.f32.mrf.mxu0  ;;  %2508 = vmatpush1.bf16.msra.mxu1 %v2237_v41  ;;  %v1909_v41 = vld [vmem:[#allocation14 + $0x510] sm:$0xff] }
 0x338   :  { %v1620_v54 = vmul.f32 %v1592_v45, %v1397_v49  ;;  %v1399_v55 = vadd.f32 %v1398_v52, %v1355_v50  ;;  %v1357_v56 = vpop.f32.mrf.mxu1  ;;  %2509 = vmatprep.subr.bf16.mxu1 %v2231_v46  ;;  %v1677_v36 = vadd.f32 %v1646_v61, %v1619_v53  ;;  %v2300_v49 = vunpack.c.h.s8.bf16 %v1908_v22 }
 0x339   :  { %v1400_v58 = vpop.f32.mrf.mxu0  ;;  %v2294_v50 = vunpack.c.l.s8.bf16 %v1909_v41  ;;  %v2329_v52 = vunpack.c.h.s8.bf16 %v1923_v48  ;;  %v2293_v53 = vunpack.c.l.s8.bf16 %v1908_v22 }
 0x33a   :  { %v1627_v60 = vmul.f32 %v1588_v43, %v1399_v55  ;;  %v1678_v62 = vadd.f32 %v1650_v51, %v1620_v54  ;;  %v1401_v63 = vadd.f32 %v1400_v58, %v1357_v56  ;;  %v1709_v10 = vmul.f32 0.2, %v1677_v36  ;;  %v1929_v43 = vld [vmem:[#allocation14 + $0x5b0] sm:$0xff]  ;;  %v1916_v58 = vld [vmem:[#allocation14 + $0x548] sm:$0xff] }
 0x33b   :  { %2510 = vmatpush1.bf16.msra.mxu1 %v2230_v1  ;;  %vm1693_vm2 = vcmp.gt.f32.partialorder %v1677_v36, 0.0  ;;  %v2342_v46 = vunpack.c.h.s8.bf16 %v1929_v43  ;;  %v1922_v1 = vld [vmem:[#allocation14 + $0x578] sm:$0xff]  ;;  %v1901_v55 = vld [vmem:[#allocation14 + $0x4d0] sm:$0xff] }
 0x33c   :  { %v1685_v2 = vadd.f32 %v1646_v61, %v1627_v60  ;;  %2511 = vmatprep.subr.bf16.mxu1 %v2224_v57  ;;  %v1628_v4 = vmul.f32 %v1592_v45, %v1401_v63  ;;  %v1710_v7 = vmul.f32 0.2, %v1678_v62  ;;  %vm1694_vm1 = vcmp.gt.f32.partialorder %v1678_v62, 0.0  ;;  %v1895_v63 = vld [vmem:[#allocation14 + $0x4a0] sm:$0xff] }
 0x33d   :  { %v1725_v28 = vsel %vm1693_vm2, %v1677_v36, %v1709_v10  ;;  %v2301_v45 = vunpack.c.h.s8.bf16 %v1909_v41  ;;  %v2335_v61 = vunpack.c.l.s8.bf16 %v1929_v43  ;;  %v2328_v56 = vunpack.c.h.s8.bf16 %v1922_v1  ;;  %v1915_v36 = vld [vmem:[#allocation14 + $0x540] sm:$0xff] }
 0x33e   :  { %v1717_v6 = vmul.f32 0.2, %v1685_v2  ;;  %vm1701_vm0 = vcmp.gt.f32.partialorder %v1685_v2, 0.0  ;;  %v1686_v8 = vadd.f32 %v1650_v51, %v1628_v4  ;;  %v1726_v17 = vsel %vm1694_vm1, %v1678_v62, %v1710_v7  ;;  %v1902_v51 = vld [vmem:[#allocation14 + $0x4d8] sm:$0xff]  ;;  %v1965_v7 = vld [vmem:[#allocation14 + $0x6d0] sm:$0xff]  ;;  %v1951_v43 = vld [vmem:[#allocation14 + $0x660] sm:$0xff] }
 0x33f   :  { %2512 = vmatpush1.bf16.msra.mxu1 %v2223_v34  ;;  %v2287_v54 = vunpack.c.h.s8.bf16 %v1902_v51  ;;  %v2322_v57 = vunpack.c.l.s8.bf16 %v1923_v48  ;;  %v2286_v59 = vunpack.c.h.s8.bf16 %v1901_v55  ;;  %v2280_v60 = vunpack.c.l.s8.bf16 %v1902_v51 }
 0x340   :  { %2513 = vmatprep.subr.bf16.mxu1 %v2217_v16  ;;  %vm1702_vm3 = vcmp.gt.f32.partialorder %v1686_v8, 0.0  ;;  %v1718_v12 = vmul.f32 0.2, %v1686_v8  ;;  %v1733_v15 = vsel %vm1701_vm0, %v1685_v2, %v1717_v6  ;;  %v2321_v62 = vunpack.c.l.s8.bf16 %v1922_v1 }
 0x341   :  { %v4067_v31 = vpack.c.bf16 %v1733_v15, %v1725_v28  ;;  %v2315_v34 = vunpack.c.h.s8.bf16 %v1916_v58  ;;  %v2279_v2 = vunpack.c.l.s8.bf16 %v1901_v55  ;;  %v2273_v16 = vunpack.c.h.s8.bf16 %v1895_v63  ;;  %v1958_v28 = vld [vmem:[#allocation14 + $0x698] sm:$0xff] }
 0x342   :  { %v1734_v26 = vsel %vm1702_vm3, %v1686_v8, %v1718_v12  ;;  %v2314_v4 = vunpack.c.h.s8.bf16 %v1915_v36  ;;  %v2308_v6 = vunpack.c.l.s8.bf16 %v1916_v58  ;;  %v2272_v8 = vunpack.c.h.s8.bf16 %v1894_v18 }
 0x343   :  { %2514 = vmatpush1.bf16.msra.mxu1 %v2216_v9  ;;  %v4065_v0 = vpack.c.bf16 %v1734_v26, %v1726_v17  ;;  %v2266_v9 = vunpack.c.l.s8.bf16 %v1895_v63  ;;  %v2307_v10 = vunpack.c.l.s8.bf16 %v1915_v36  ;;  %v2413_v12 = vunpack.c.h.s8.bf16 %v1965_v7  ;;  %v1887_v17 = vld [vmem:[#allocation14 + $0x460] sm:$0xff] }
 0x344   :  { %2515 = vmatprep.subr.bf16.mxu1 %v2210_v11  ;;  %v1888_v11 = vld [vmem:[#allocation14 + $0x468] sm:$0xff]  ;;  %v2412_v26 = vunpack.c.h.s8.bf16 %v1964_v13  ;;  %v2399_v37 = vunpack.c.h.s8.bf16 %v1958_v28 }
 0x345   :  { %2494 = vmatprep.mubr.bf16.mxu0 %v4065_v0  ;;  %v2259_v15 = vunpack.c.h.s8.bf16 %v1888_v11  ;;  %v2252_v30 = vunpack.c.l.s8.bf16 %v1888_v11 }
 0x346   :  { %2495 = vmatmul.mubr.bf16.vlgmr.msra.gmra.mxu0 %v4067_v31 }
 0x347   :  { %2516 = vmatpush1.bf16.msra.mxu1 %v2209_v27  ;;  %2549 = vmatpush1.bf16.msra.mxu0 %v2356_v3  ;;  %v2406_v27 = vunpack.c.l.s8.bf16 %v1965_v7  ;;  %v2405_v3 = vunpack.c.l.s8.bf16 %v1964_v13 }
 0x348   :  { %2517 = vmatprep.subr.bf16.mxu1 %v2203_v29  ;;  %2550 = vmatprep.subr.bf16.mxu0 %v2350_v33  ;;  %v2258_v29 = vunpack.c.h.s8.bf16 %v1887_v17  ;;  %v4072_v33 = vld [vmem:[#allocation14 + $0xc0] sm:$0xff] }
 0x34b   :  { %2518 = vmatpush1.bf16.msra.mxu1 %v2202_v38  ;;  %2551 = vmatpush1.bf16.msra.mxu0 %v2349_v40  ;;  %v1957_v38 = vld [vmem:[#allocation14 + $0x690] sm:$0xff]  ;;  %v2023_v40 = vunpack.c.h.s8.bf16 %v4072_v33 }
 0x34c   :  { %2519 = vmatprep.subr.bf16.mxu1 %v2196_v39  ;;  %2552 = vmatprep.subr.bf16.mxu0 %v2343_v42  ;;  %v2251_v39 = vunpack.c.l.s8.bf16 %v1887_v17  ;;  %v2398_v41 = vunpack.c.h.s8.bf16 %v1957_v38  ;;  %v2392_v42 = vunpack.c.l.s8.bf16 %v1958_v28  ;;  %v2391_v22 = vunpack.c.l.s8.bf16 %v1957_v38 }
 0x34f   :  { %2520 = vmatpush1.bf16.msra.mxu1 %v2195_v44  ;;  %2553 = vmatpush1.bf16.msra.mxu0 %v2342_v46  ;;  %v4076_v44 = vsub.s32 4, %v3968_v23  ;;  %v2385_v46 = vunpack.c.h.s8.bf16 %v1951_v43 }
 0x350   :  { %2521 = vmatprep.subr.bf16.mxu1 %v2301_v45  ;;  %2554 = vmatprep.subr.bf16.mxu0 %v2336_v47  ;;  %v4079_v45 = vsub.s32 5, %v3968_v23  ;;  %v1950_v47 = vld [vmem:[#allocation14 + $0x658] sm:$0xff] }
 0x351   :  { %v2384_v1 = vunpack.c.h.s8.bf16 %v1950_v47  ;;  %v1654_v58 = vrot.slane %v4032_v32, %v4076_v44 }
 0x353   :  { %2522 = vmatpush2.bf16.msra.mxu1 %v2300_v49  ;;  %2555 = vmatpush1.bf16.msra.mxu0 %v2335_v61  ;;  %v1596_v61 = vrot.slane %v4028_v21, %v4076_v44 }
 0x354   :  { %2523 = vmatprep.subr.bf16.mxu1 %v2294_v50  ;;  %2556 = vmatprep.subr.bf16.mxu0 %v2329_v52  ;;  %v1600_v52 = vrot.slane %v4028_v21, %v4079_v45 }
 0x357   :  { %2524 = vmatpush2.bf16.msra.mxu1 %v2293_v53  ;;  %2557 = vmatpush1.bf16.msra.mxu0 %v2328_v56 }
 0x358   :  { %2525 = vmatprep.subr.bf16.mxu1 %v2287_v54  ;;  %2558 = vmatprep.subr.bf16.mxu0 %v2322_v57  ;;  %v2378_v54 = vunpack.c.l.s8.bf16 %v1951_v43  ;;  %v1944_v57 = vld [vmem:[#allocation14 + $0x628] sm:$0xff] }
 0x359   :  { %v2371_v18 = vunpack.c.h.s8.bf16 %v1944_v57  ;;  %v2364_v13 = vunpack.c.l.s8.bf16 %v1944_v57 }
 0x35b   :  { %2526 = vmatpush2.bf16.msra.mxu1 %v2286_v59  ;;  %2559 = vmatpush1.bf16.msra.mxu0 %v2321_v62  ;;  %v1658_v59 = vrot.slane %v4032_v32, %v4079_v45 }
 0x35c   :  { %2527 = vmatprep.subr.bf16.mxu1 %v2280_v60  ;;  %2560 = vmatprep.subr.bf16.mxu0 %v2315_v34 }
 0x35f   :  { %2528 = vmatpush2.bf16.msra.mxu1 %v2279_v2  ;;  %2561 = vmatpush1.bf16.msra.mxu0 %v2314_v4  ;;  %v2377_v2 = vunpack.c.l.s8.bf16 %v1950_v47  ;;  %v1943_v4 = vld [vmem:[#allocation14 + $0x620] sm:$0xff] }
 0x360   :  { %2529 = vmatprep.subr.bf16.mxu1 %v2273_v16  ;;  %2562 = vmatprep.subr.bf16.mxu0 %v2308_v6  ;;  %v2370_v11 = vunpack.c.h.s8.bf16 %v1943_v4  ;;  %v2363_v28 = vunpack.c.l.s8.bf16 %v1943_v4 }
 0x363   :  { %2530 = vmatpush2.bf16.msra.mxu1 %v2272_v8  ;;  %2563 = vmatpush1.bf16.msra.mxu0 %v2307_v10 }
 0x364   :  { %2531 = vmatprep.subr.bf16.mxu1 %v2266_v9  ;;  %2564 = vmatprep.subr.bf16.mxu0 %v2413_v12 }
 0x367   :  { %2532 = vmatpush2.bf16.msra.mxu1 %v2265_v14  ;;  %2565 = vmatpush2.bf16.msra.mxu0 %v2412_v26 }
 0x368   :  { %2533 = vmatprep.subr.bf16.mxu1 %v2259_v15  ;;  %2566 = vmatprep.subr.bf16.mxu0 %v2406_v27  ;;  %v4089_v15 = vld [vmem:[#allocation14 + $0x280] sm:$0xff] }
 0x36b   :  { %2534 = vmatpush2.bf16.msra.mxu1 %v2258_v29  ;;  %2567 = vmatpush2.bf16.msra.mxu0 %v2405_v3  ;;  %v2135_v3 = vunpack.c.h.s8.bf16 %v4089_v15 }
 0x36c   :  { %2535 = vmatprep.subr.bf16.mxu1 %v2252_v30  ;;  %2568 = vmatprep.subr.bf16.mxu0 %v2399_v37  ;;  %v1770_v30 = vld [vmem:[#allocation14 + $0xb8] sm:$0xff] }
 0x36d   :  { %v2015_v47 = vunpack.c.l.s8.bf16 %v1770_v30 }
 0x36f   :  { %2536 = vmatpush2.bf16.msra.mxu1 %v2251_v39  ;;  %2569 = vmatpush2.bf16.msra.mxu0 %v2398_v41 }
 0x370   :  { %2591 = vmatprep.subr.bf16.mxu1 %v2023_v40  ;;  %2570 = vmatprep.subr.bf16.mxu0 %v2392_v42  ;;  %v2022_v42 = vunpack.c.h.s8.bf16 %v1770_v30 }
 0x372   :  { %v1437_v48 = vpop.f32.mrf.mxu1 }
 0x373   :  { %v1480_v49 = vpop.f32.mrf.mxu0  ;;  %2571 = vmatpush2.bf16.msra.mxu0 %v2391_v22  ;;  %v2016_v22 = vunpack.c.l.s8.bf16 %v4072_v33 }
 0x374   :  { %v1481_v50 = vadd.f32 %v1480_v49, %v1437_v48  ;;  %v1439_v51 = vpop.f32.mrf.mxu1  ;;  %2572 = vmatprep.subr.bf16.mxu0 %v2385_v46  ;;  %v1764_v46 = vld [vmem:[#allocation14 + $0x88] sm:$0xff]  ;;  %v1763_v49 = vld [vmem:[#allocation14 + $0x80] sm:$0xff] }
 0x375   :  { %v1482_v53 = vpop.f32.mrf.mxu0  ;;  %v2009_v48 = vunpack.c.h.s8.bf16 %v1764_v46  ;;  %v2001_v33 = vunpack.c.l.s8.bf16 %v1763_v49 }
 0x376   :  { %v1483_v55 = vadd.f32 %v1482_v53, %v1439_v51  ;;  %v1441_v56 = vpop.f32.mrf.mxu1  ;;  %v1621_v62 = vmul.f32 %v1596_v61, %v1481_v50  ;;  %v2008_v50 = vunpack.c.h.s8.bf16 %v1763_v49  ;;  %v1757_v51 = vld [vmem:[#allocation14 + $0x50] sm:$0xff] }
 0x377   :  { %v1484_v60 = vpop.f32.mrf.mxu0  ;;  %2573 = vmatpush2.bf16.msra.mxu0 %v2384_v1  ;;  %v1756_v1 = vld [vmem:[#allocation14 + $0x48] sm:$0xff] }
 0x378   :  { %v1622_v63 = vmul.f32 %v1600_v52, %v1483_v55  ;;  %v1485_v34 = vadd.f32 %v1484_v60, %v1441_v56  ;;  %v1443_v36 = vpop.f32.mrf.mxu1  ;;  %2574 = vmatprep.subr.bf16.mxu0 %v2378_v54  ;;  %v1679_v9 = vadd.f32 %v1654_v58, %v1621_v62  ;;  %v1994_v53 = vunpack.c.h.s8.bf16 %v1756_v1  ;;  %v1750_v55 = vld [vmem:[#allocation14 + $0x18] sm:$0xff]  ;;  %v1799_v62 = vld [vmem:[#allocation14 + $0x1a0] sm:$0xff] }
 0x379   :  { %v1486_v16 = vpop.f32.mrf.mxu0  ;;  %v1988_v54 = vunpack.c.l.s8.bf16 %v1757_v51  ;;  %v1987_v56 = vunpack.c.l.s8.bf16 %v1756_v1  ;;  %v1981_v57 = vunpack.c.h.s8.bf16 %v1750_v55  ;;  %v1974_v60 = vunpack.c.l.s8.bf16 %v1750_v55 }
 0x37a   :  { %v1629_v6 = vmul.f32 %v1596_v61, %v1485_v34  ;;  %v1680_v7 = vadd.f32 %v1658_v59, %v1622_v63  ;;  %v1487_v8 = vadd.f32 %v1486_v16, %v1443_v36  ;;  %v1711_v27 = vmul.f32 0.2, %v1679_v9  ;;  %v1798_v36 = vld [vmem:[#allocation14 + $0x198] sm:$0xff] }
 0x37b   :  { %2575 = vmatpush2.bf16.msra.mxu0 %v2377_v2  ;;  %vm1695_vm6 = vcmp.gt.f32.partialorder %v1679_v9, 0.0  ;;  %v2002_v61 = vunpack.c.l.s8.bf16 %v1764_v46  ;;  %v2079_v34 = vunpack.c.h.s8.bf16 %v1799_v62  ;;  %v2078_v2 = vunpack.c.h.s8.bf16 %v1798_v36 }
 0x37c   :  { %v1687_v10 = vadd.f32 %v1654_v58, %v1629_v6  ;;  %v1630_v12 = vmul.f32 %v1600_v52, %v1487_v8  ;;  %2576 = vmatprep.subr.bf16.mxu0 %v2371_v18  ;;  %v1712_v17 = vmul.f32 0.2, %v1680_v7  ;;  %vm1696_vm5 = vcmp.gt.f32.partialorder %v1680_v7, 0.0  ;;  %v1749_v58 = vld [vmem:[#allocation14 + $0x10] sm:$0xff]  ;;  %v1792_v18 = vld [vmem:[#allocation14 + $0x168] sm:$0xff] }
 0x37d   :  { %v1727_v41 = vsel %vm1695_vm6, %v1679_v9, %v1711_v27  ;;  %v1995_v52 = vunpack.c.h.s8.bf16 %v1757_v51  ;;  %v1973_v63 = vunpack.c.l.s8.bf16 %v1749_v58  ;;  %v2072_v16 = vunpack.c.l.s8.bf16 %v1799_v62 }
 0x37e   :  { %v1719_v14 = vmul.f32 0.2, %v1687_v10  ;;  %vm1703_vm4 = vcmp.gt.f32.partialorder %v1687_v10, 0.0  ;;  %v1688_v26 = vadd.f32 %v1658_v59, %v1630_v12  ;;  %v1728_v38 = vsel %vm1696_vm5, %v1680_v7, %v1712_v17  ;;  %v1791_v7 = vld [vmem:[#allocation14 + $0x160] sm:$0xff]  ;;  %v1784_v17 = vld [vmem:[#allocation14 + $0x128] sm:$0xff] }
 0x37f   :  { %2577 = vmatpush2.bf16.msra.mxu0 %v2370_v11  ;;  %v1980_v59 = vunpack.c.h.s8.bf16 %v1749_v58  ;;  %v2071_v4 = vunpack.c.l.s8.bf16 %v1798_v36  ;;  %v2065_v6 = vunpack.c.h.s8.bf16 %v1792_v18  ;;  %v2064_v8 = vunpack.c.h.s8.bf16 %v1791_v7 }
 0x380   :  { %vm1704_vm7 = vcmp.gt.f32.partialorder %v1688_v26, 0.0  ;;  %v1720_v29 = vmul.f32 0.2, %v1688_v26  ;;  %2578 = vmatprep.subr.bf16.mxu0 %v2364_v13  ;;  %v1735_v37 = vsel %vm1703_vm4, %v1687_v10, %v1719_v14  ;;  %v2058_v9 = vunpack.c.l.s8.bf16 %v1792_v18  ;;  %v1785_v10 = vld [vmem:[#allocation14 + $0x130] sm:$0xff]  ;;  %v1826_v18 = vld [vmem:[#allocation14 + $0x278] sm:$0xff] }
 0x381   :  { %v4094_v43 = vpack.c.bf16 %v1735_v37, %v1727_v41  ;;  %v2057_v11 = vunpack.c.l.s8.bf16 %v1791_v7  ;;  %v4101_v12 = vsub.s32 6, %v3968_v23  ;;  %v1607_v13 = vsub.s32 7, %v3968_v23  ;;  %v1778_v23 = vld [vmem:[#allocation14 + $0xf8] sm:$0xff] }
 0x382   :  { %v1736_v39 = vsel %vm1704_vm7, %v1688_v26, %v1720_v29  ;;  %v2051_v14 = vunpack.c.h.s8.bf16 %v1785_v10  ;;  %v2050_v37 = vunpack.c.h.s8.bf16 %v1784_v17  ;;  %v2043_v51 = vunpack.c.l.s8.bf16 %v1784_v17 }
 0x383   :  { %v4092_v40 = vpack.c.bf16 %v1736_v39, %v1728_v38  ;;  %2579 = vmatpush2.bf16.msra.mxu0 %v2363_v28  ;;  %v1604_v29 = vrot.slane %v4028_v21, %v4101_v12  ;;  %v2044_v39 = vunpack.c.l.s8.bf16 %v1785_v10  ;;  %v1666_v46 = vrot.slane %v4032_v32, %v1607_v13 }
 0x384   :  { %2634 = vmatprep.subr.bf16.mxu0 %v2135_v3  ;;  %v1608_v3 = vrot.slane %v4028_v21, %v1607_v13  ;;  %v2128_v17 = vunpack.c.l.s8.bf16 %v4089_v15 }
 0x385   :  { %2537 = vmatprep.mubr.bf16.mxu1 %v4092_v40 }
 0x386   :  { %2538 = vmatmul.mubr.bf16.vlgmr.msra.gmra.mxu1 %v4094_v43 }
 0x387   :  { %2592 = vmatpush1.bf16.msra.mxu1 %v2022_v42  ;;  %2623 = vmatprep.mubr.bf16.mxu1 %v4040_v5 }
 0x388   :  { %2593 = vmatprep.subr.bf16.mxu1 %v2016_v22  ;;  %v1662_v22 = vrot.slane %v4032_v32, %v4101_v12  ;;  %v2030_v32 = vunpack.c.l.s8.bf16 %v1778_v23 }
 0x38b   :  { %2594 = vmatpush1.bf16.msra.mxu1 %v2015_v47 }
 0x38c   :  { %2595 = vmatprep.subr.bf16.mxu1 %v2009_v48 }
 0x38f   :  { %2596 = vmatpush1.bf16.msra.mxu1 %v2008_v50 }
 0x390   :  { %2597 = vmatprep.subr.bf16.mxu1 %v2002_v61 }
 0x393   :  { %2598 = vmatpush1.bf16.msra.mxu1 %v2001_v33  ;;  %v2037_v33 = vunpack.c.h.s8.bf16 %v1778_v23 }
 0x394   :  { %2599 = vmatprep.subr.bf16.mxu1 %v1995_v52  ;;  %v1777_v52 = vld [vmem:[#allocation14 + $0xf0] sm:$0xff] }
 0x395   :  { %v2029_v36 = vunpack.c.l.s8.bf16 %v1777_v52 }
 0x397   :  { %2600 = vmatpush1.bf16.msra.mxu1 %v1994_v53 }
 0x398   :  { %2601 = vmatprep.subr.bf16.mxu1 %v1988_v54 }
 0x39b   :  { %2602 = vmatpush1.bf16.msra.mxu1 %v1987_v56 }
 0x39c   :  { %2603 = vmatprep.subr.bf16.mxu1 %v1981_v57  ;;  %v2036_v57 = vunpack.c.h.s8.bf16 %v1777_v52 }
 0x39f   :  { %2604 = vmatpush1.bf16.msra.mxu1 %v1980_v59 }
 0x3a0   :  { %2605 = vmatprep.subr.bf16.mxu1 %v1974_v60  ;;  %v1883_v60 = vld [vmem:[#allocation14 + $0x440] sm:$0xff] }
 0x3a3   :  { %2606 = vmatpush1.bf16.msra.mxu1 %v1973_v63 }
 0x3a4   :  { %2607 = vmatprep.subr.bf16.mxu1 %v2079_v34 }
 0x3a7   :  { %2608 = vmatpush2.bf16.msra.mxu1 %v2078_v2 }
 0x3a8   :  { %2609 = vmatprep.subr.bf16.mxu1 %v2072_v16  ;;  %v2247_v16 = vunpack.c.h.s8.bf16 %v1883_v60 }
 0x3ab   :  { %2610 = vmatpush2.bf16.msra.mxu1 %v2071_v4  ;;  %v1882_v4 = vld [vmem:[#allocation14 + $0x438] sm:$0xff] }
 0x3ac   :  { %2611 = vmatprep.subr.bf16.mxu1 %v2065_v6  ;;  %v2246_v13 = vunpack.c.h.s8.bf16 %v1882_v4 }
 0x3af   :  { %2612 = vmatpush2.bf16.msra.mxu1 %v2064_v8 }
 0x3b0   :  { %2613 = vmatprep.subr.bf16.mxu1 %v2058_v9 }
 0x3b2   :  { %v1523_v26 = vpop.f32.mrf.mxu1 }
 0x3b3   :  { %v1566_v27 = vpop.f32.mrf.mxu0  ;;  %2614 = vmatpush2.bf16.msra.mxu1 %v2057_v11  ;;  %v2134_v11 = vunpack.c.h.s8.bf16 %v1826_v18 }
 0x3b4   :  { %v1567_v28 = vadd.f32 %v1566_v27, %v1523_v26  ;;  %v1525_v30 = vpop.f32.mrf.mxu1  ;;  %2615 = vmatprep.subr.bf16.mxu1 %v2051_v14  ;;  %v2240_v26 = vunpack.c.l.s8.bf16 %v1883_v60  ;;  %v1820_v27 = vld [vmem:[#allocation14 + $0x248] sm:$0xff] }
 0x3b5   :  { %v1568_v38 = vpop.f32.mrf.mxu0 }
 0x3b6   :  { %v1569_v41 = vadd.f32 %v1568_v38, %v1525_v30  ;;  %v1527_v42 = vpop.f32.mrf.mxu1  ;;  %v1623_v48 = vmul.f32 %v1604_v29, %v1567_v28  ;;  %v1876_v28 = vld [vmem:[#allocation14 + $0x408] sm:$0xff]  ;;  %v2239_v30 = vunpack.c.l.s8.bf16 %v1882_v4  ;;  %v1819_v38 = vld [vmem:[#allocation14 + $0x240] sm:$0xff] }
 0x3b7   :  { %v1570_v47 = vpop.f32.mrf.mxu0  ;;  %2616 = vmatpush2.bf16.msra.mxu1 %v2050_v37  ;;  %v2233_v37 = vunpack.c.h.s8.bf16 %v1876_v28  ;;  %v2120_v15 = vunpack.c.h.s8.bf16 %v1819_v38  ;;  %v2226_v23 = vunpack.c.l.s8.bf16 %v1876_v28 }
 0x3b8   :  { %v1624_v49 = vmul.f32 %v1608_v3, %v1569_v41  ;;  %v1571_v50 = vadd.f32 %v1570_v47, %v1527_v42  ;;  %v1529_v61 = vpop.f32.mrf.mxu1  ;;  %2617 = vmatprep.subr.bf16.mxu1 %v2044_v39  ;;  %v1681_v55 = vadd.f32 %v1662_v22, %v1623_v48  ;;  %v1875_v39 = vld [vmem:[#allocation14 + $0x400] sm:$0xff]  ;;  %v2114_v42 = vunpack.c.l.s8.bf16 %v1820_v27 }
 0x3b9   :  { %v1572_v21 = vpop.f32.mrf.mxu0  ;;  %v2232_v41 = vunpack.c.h.s8.bf16 %v1875_v39  ;;  %v2113_v47 = vunpack.c.l.s8.bf16 %v1819_v38  ;;  %v2225_v48 = vunpack.c.l.s8.bf16 %v1875_v39  ;;  %v1903_v38 = vld [vmem:[#allocation14 + $0x4e0] sm:$0xff] }
 0x3ba   :  { %v1631_v1 = vmul.f32 %v1604_v29, %v1571_v50  ;;  %v1682_v53 = vadd.f32 %v1666_v46, %v1624_v49  ;;  %v1573_v54 = vadd.f32 %v1572_v21, %v1529_v61  ;;  %v1713_v34 = vmul.f32 0.2, %v1681_v55  ;;  %v1812_v61 = vld [vmem:[#allocation14 + $0x208] sm:$0xff] }
 0x3bb   :  { %2618 = vmatpush2.bf16.msra.mxu1 %v2043_v51  ;;  %vm1697_vm10 = vcmp.gt.f32.partialorder %v1681_v55, 0.0  ;;  %v2127_v29 = vunpack.c.l.s8.bf16 %v1826_v18  ;;  %v1868_v51 = vld [vmem:[#allocation14 + $0x3c8] sm:$0xff]  ;;  %v2106_v21 = vunpack.c.h.s8.bf16 %v1812_v61 }
 0x3bc   :  { %v1689_v56 = vadd.f32 %v1662_v22, %v1631_v1  ;;  %v1632_v58 = vmul.f32 %v1608_v3, %v1573_v54  ;;  %2619 = vmatprep.subr.bf16.mxu1 %v2037_v33  ;;  %v1714_v62 = vmul.f32 0.2, %v1682_v53  ;;  %vm1698_vm9 = vcmp.gt.f32.partialorder %v1682_v53, 0.0  ;;  %v1813_v22 = vld [vmem:[#allocation14 + $0x210] sm:$0xff]  ;;  %v1862_v54 = vld [vmem:[#allocation14 + $0x398] sm:$0xff] }
 0x3bd   :  { %v1729_v10 = vsel %vm1697_vm10, %v1681_v55, %v1713_v34  ;;  %v2121_v3 = vunpack.c.h.s8.bf16 %v1820_v27  ;;  %v2107_v49 = vunpack.c.h.s8.bf16 %v1813_v22  ;;  %v2218_v33 = vunpack.c.h.s8.bf16 %v1868_v51  ;;  %v1904_v27 = vld [vmem:[#allocation14 + $0x4e8] sm:$0xff] }
 0x3be   :  { %v1721_v59 = vmul.f32 0.2, %v1689_v56  ;;  %vm1705_vm8 = vcmp.gt.f32.partialorder %v1689_v56, 0.0  ;;  %v1690_v63 = vadd.f32 %v1666_v46, %v1632_v58  ;;  %v1730_v7 = vsel %vm1698_vm9, %v1682_v53, %v1714_v62  ;;  %v1869_v46 = vld [vmem:[#allocation14 + $0x3d0] sm:$0xff]  ;;  %v1806_v53 = vld [vmem:[#allocation14 + $0x1d8] sm:$0xff] }
 0x3bf   :  { %2620 = vmatpush2.bf16.msra.mxu1 %v2036_v57  ;;  %v2219_v50 = vunpack.c.h.s8.bf16 %v1869_v46  ;;  %v2100_v52 = vunpack.c.l.s8.bf16 %v1813_v22  ;;  %v2212_v1 = vunpack.c.l.s8.bf16 %v1869_v46  ;;  %v2099_v55 = vunpack.c.l.s8.bf16 %v1812_v61  ;;  %v1897_v22 = vld [vmem:[#allocation14 + $0x4b0] sm:$0xff]  ;;  %v1896_v61 = vld [vmem:[#allocation14 + $0x4a8] sm:$0xff] }
 0x3c0   :  { %vm1706_vm11 = vcmp.gt.f32.partialorder %v1690_v63, 0.0  ;;  %v1722_v2 = vmul.f32 0.2, %v1690_v63  ;;  %2621 = vmatprep.subr.bf16.mxu1 %v2030_v32  ;;  %v1737_v6 = vsel %vm1705_vm8, %v1689_v56, %v1721_v59  ;;  %v2211_v56 = vunpack.c.l.s8.bf16 %v1868_v51  ;;  %v1805_v32 = vld [vmem:[#allocation14 + $0x1d0] sm:$0xff] }
 0x3c1   :  { %v4112_v14 = vpack.c.bf16 %v1737_v6, %v1729_v10  ;;  %v2093_v57 = vunpack.c.h.s8.bf16 %v1806_v53  ;;  %v2205_v58 = vunpack.c.h.s8.bf16 %v1862_v54  ;;  %v1861_v59 = vld [vmem:[#allocation14 + $0x390] sm:$0xff]  ;;  %v2092_v60 = vunpack.c.h.s8.bf16 %v1805_v32 }
 0x3c2   :  { %v1738_v8 = vsel %vm1706_vm11, %v1690_v63, %v1722_v2  ;;  %v2204_v62 = vunpack.c.h.s8.bf16 %v1861_v59  ;;  %v2086_v63 = vunpack.c.l.s8.bf16 %v1806_v53  ;;  %v2198_v34 = vunpack.c.l.s8.bf16 %v1862_v54  ;;  %v1911_v2 = vld [vmem:[#allocation14 + $0x520] sm:$0xff]  ;;  %v1890_v53 = vld [vmem:[#allocation14 + $0x478] sm:$0xff] }
 0x3c3   :  { %2622 = vmatpush2.bf16.msra.mxu1 %v2029_v36  ;;  %v4110_v9 = vpack.c.bf16 %v1738_v8, %v1730_v7  ;;  %v1855_v36 = vld [vmem:[#allocation14 + $0x360] sm:$0xff]  ;;  %v2197_v18 = vunpack.c.l.s8.bf16 %v1861_v59  ;;  %v2303_v6 = vunpack.c.h.s8.bf16 %v1911_v2  ;;  %v1854_v7 = vld [vmem:[#allocation14 + $0x358] sm:$0xff] }
 0x3c4   :  { %2677 = vmatprep.subr.bf16.mxu1 %v2247_v16  ;;  %v2085_v16 = vunpack.c.l.s8.bf16 %v1805_v32  ;;  %v2191_v4 = vunpack.c.h.s8.bf16 %v1855_v36  ;;  %v1910_v8 = vld [vmem:[#allocation14 + $0x518] sm:$0xff]  ;;  %v2190_v10 = vunpack.c.h.s8.bf16 %v1854_v7  ;;  %v2183_v28 = vunpack.c.l.s8.bf16 %v1854_v7  ;;  %v1889_v32 = vld [vmem:[#allocation14 + $0x470] sm:$0xff]  ;;  %v1772_v7 = vld [vmem:[#allocation14 + $0xc8] sm:$0xff] }
 0x3c5   :  { %2580 = vmatprep.mubr.bf16.mxu0 %v4110_v9 }
 0x3c6   :  { %2624 = vmatmul.mubr.bf16.vlgmr.msra.gmra.mxu1 %v4054_v35  ;;  %2581 = vmatmul.mubr.bf16.vlgmr.msra.gmra.mxu0 %v4112_v14 }
 0x3c7   :  { %2635 = vmatpush1.bf16.msra.mxu0 %v2134_v11  ;;  %2678 = vmatpush1.bf16.msra.mxu1 %v2246_v13  ;;  %v2302_v11 = vunpack.c.h.s8.bf16 %v1910_v8  ;;  %v2184_v13 = vunpack.c.l.s8.bf16 %v1855_v36  ;;  %v1773_v36 = vld [vmem:[#allocation14 + $0xd0] sm:$0xff] }
 0x3c8   :  { %2709 = vmatprep.mubr.bf16.mxu1 %v4092_v40  ;;  %2666 = vmatprep.mubr.bf16.mxu0 %v4065_v0 }
 0x3c9   :  { %2636 = vmatprep.subr.bf16.mxu0 %v2128_v17  ;;  %2679 = vmatprep.subr.bf16.mxu1 %v2240_v26  ;;  %v2296_v17 = vunpack.c.l.s8.bf16 %v1911_v2  ;;  %v1848_v26 = vld [vmem:[#allocation14 + $0x328] sm:$0xff] }
 0x3cb   :  { %2637 = vmatpush1.bf16.msra.mxu0 %v2127_v29  ;;  %2680 = vmatpush1.bf16.msra.mxu1 %v2239_v30  ;;  %v2295_v29 = vunpack.c.l.s8.bf16 %v1910_v8  ;;  %v2177_v30 = vunpack.c.h.s8.bf16 %v1848_v26 }
 0x3cc   :  { %2638 = vmatprep.subr.bf16.mxu0 %v2121_v3  ;;  %2681 = vmatprep.subr.bf16.mxu1 %v2233_v37  ;;  %v2289_v3 = vunpack.c.h.s8.bf16 %v1904_v27  ;;  %v1847_v37 = vld [vmem:[#allocation14 + $0x320] sm:$0xff] }
 0x3cd   :  { %v2176_v39 = vunpack.c.h.s8.bf16 %v1847_v37  ;;  %v2169_v46 = vunpack.c.l.s8.bf16 %v1847_v37  ;;  %v1765_v37 = vld [vmem:[#allocation14 + $0x90] sm:$0xff] }
 0x3cf   :  { %2639 = vmatpush1.bf16.msra.mxu0 %v2120_v15  ;;  %2682 = vmatpush1.bf16.msra.mxu1 %v2232_v41  ;;  %v2288_v15 = vunpack.c.h.s8.bf16 %v1903_v38  ;;  %v2170_v41 = vunpack.c.l.s8.bf16 %v1848_v26  ;;  %v1766_v26 = vld [vmem:[#allocation14 + $0x98] sm:$0xff] }
 0x3d0   :  { %2640 = vmatprep.subr.bf16.mxu0 %v2114_v42  ;;  %2683 = vmatprep.subr.bf16.mxu1 %v2226_v23  ;;  %v2282_v42 = vunpack.c.l.s8.bf16 %v1904_v27  ;;  %v1841_v23 = vld [vmem:[#allocation14 + $0x2f0] sm:$0xff] }
 0x3d3   :  { %2641 = vmatpush1.bf16.msra.mxu0 %v2113_v47  ;;  %2684 = vmatpush1.bf16.msra.mxu1 %v2225_v48  ;;  %v2281_v47 = vunpack.c.l.s8.bf16 %v1903_v38  ;;  %v2163_v48 = vunpack.c.h.s8.bf16 %v1841_v23 }
 0x3d4   :  { %2642 = vmatprep.subr.bf16.mxu0 %v2107_v49  ;;  %2685 = vmatprep.subr.bf16.mxu1 %v2219_v50  ;;  %v2275_v49 = vunpack.c.h.s8.bf16 %v1897_v22  ;;  %v1840_v50 = vld [vmem:[#allocation14 + $0x2e8] sm:$0xff] }
 0x3d5   :  { %v2162_v51 = vunpack.c.h.s8.bf16 %v1840_v50  ;;  %v2155_v54 = vunpack.c.l.s8.bf16 %v1840_v50  ;;  %v1758_v50 = vld [vmem:[#allocation14 + $0x58] sm:$0xff] }
 0x3d7   :  { %2643 = vmatpush1.bf16.msra.mxu0 %v2106_v21  ;;  %2686 = vmatpush1.bf16.msra.mxu1 %v2218_v33  ;;  %v2274_v21 = vunpack.c.h.s8.bf16 %v1896_v61  ;;  %v2156_v33 = vunpack.c.l.s8.bf16 %v1841_v23  ;;  %v1759_v23 = vld [vmem:[#allocation14 + $0x60] sm:$0xff] }
 0x3d8   :  { %2644 = vmatprep.subr.bf16.mxu0 %v2100_v52  ;;  %2687 = vmatprep.subr.bf16.mxu1 %v2212_v1  ;;  %v2268_v52 = vunpack.c.l.s8.bf16 %v1897_v22  ;;  %v1834_v1 = vld [vmem:[#allocation14 + $0x2b8] sm:$0xff] }
 0x3db   :  { %2645 = vmatpush1.bf16.msra.mxu0 %v2099_v55  ;;  %2688 = vmatpush1.bf16.msra.mxu1 %v2211_v56  ;;  %v2267_v55 = vunpack.c.l.s8.bf16 %v1896_v61  ;;  %v2149_v56 = vunpack.c.h.s8.bf16 %v1834_v1 }
 0x3dc   :  { %2646 = vmatprep.subr.bf16.mxu0 %v2093_v57  ;;  %2689 = vmatprep.subr.bf16.mxu1 %v2205_v58  ;;  %v2261_v57 = vunpack.c.h.s8.bf16 %v1890_v53  ;;  %v1833_v58 = vld [vmem:[#allocation14 + $0x2b0] sm:$0xff] }
 0x3dd   :  { %v2148_v59 = vunpack.c.h.s8.bf16 %v1833_v58  ;;  %v2141_v2 = vunpack.c.l.s8.bf16 %v1833_v58  ;;  %v1751_v58 = vld [vmem:[#allocation14 + $0x20] sm:$0xff] }
 0x3df   :  { %2647 = vmatpush1.bf16.msra.mxu0 %v2092_v60  ;;  %2690 = vmatpush1.bf16.msra.mxu1 %v2204_v62  ;;  %v2260_v60 = vunpack.c.h.s8.bf16 %v1889_v32  ;;  %v2142_v62 = vunpack.c.l.s8.bf16 %v1834_v1  ;;  %v1752_v1 = vld [vmem:[#allocation14 + $0x28] sm:$0xff] }
 0x3e0   :  { %2648 = vmatprep.subr.bf16.mxu0 %v2086_v63  ;;  %2691 = vmatprep.subr.bf16.mxu1 %v2198_v34  ;;  %v2254_v63 = vunpack.c.l.s8.bf16 %v1890_v53  ;;  %v1939_v34 = vld [vmem:[#allocation14 + $0x600] sm:$0xff] }
 0x3e3   :  { %2649 = vmatpush1.bf16.msra.mxu0 %v2085_v16  ;;  %2692 = vmatpush1.bf16.msra.mxu1 %v2197_v18  ;;  %v2253_v16 = vunpack.c.l.s8.bf16 %v1889_v32  ;;  %v2359_v18 = vunpack.c.h.s8.bf16 %v1939_v34 }
 0x3e4   :  { %2650 = vmatprep.subr.bf16.mxu0 %v2191_v4  ;;  %2693 = vmatprep.subr.bf16.mxu1 %v2303_v6  ;;  %v2025_v4 = vunpack.c.h.s8.bf16 %v1773_v36  ;;  %v1938_v6 = vld [vmem:[#allocation14 + $0x5f8] sm:$0xff] }
 0x3e5   :  { %v2358_v8 = vunpack.c.h.s8.bf16 %v1938_v6  ;;  %v2351_v27 = vunpack.c.l.s8.bf16 %v1938_v6  ;;  %v1800_v6 = vld [vmem:[#allocation14 + $0x1a8] sm:$0xff] }
 0x3e7   :  { %2651 = vmatpush2.bf16.msra.mxu0 %v2190_v10  ;;  %2694 = vmatpush2.bf16.msra.mxu1 %v2302_v11  ;;  %v2024_v10 = vunpack.c.h.s8.bf16 %v1772_v7  ;;  %v2352_v11 = vunpack.c.l.s8.bf16 %v1939_v34  ;;  %v1801_v34 = vld [vmem:[#allocation14 + $0x1b0] sm:$0xff] }
 0x3e8   :  { %2652 = vmatprep.subr.bf16.mxu0 %v2184_v13  ;;  %2695 = vmatprep.subr.bf16.mxu1 %v2296_v17  ;;  %v2018_v13 = vunpack.c.l.s8.bf16 %v1773_v36  ;;  %v1932_v17 = vld [vmem:[#allocation14 + $0x5c8] sm:$0xff] }
 0x3eb   :  { %2653 = vmatpush2.bf16.msra.mxu0 %v2183_v28  ;;  %2696 = vmatpush2.bf16.msra.mxu1 %v2295_v29  ;;  %v2017_v28 = vunpack.c.l.s8.bf16 %v1772_v7  ;;  %v2345_v29 = vunpack.c.h.s8.bf16 %v1932_v17 }
 0x3ec   :  { %2654 = vmatprep.subr.bf16.mxu0 %v2177_v30  ;;  %2697 = vmatprep.subr.bf16.mxu1 %v2289_v3  ;;  %v1931_v30 = vld [vmem:[#allocation14 + $0x5c0] sm:$0xff]  ;;  %v2011_v3 = vunpack.c.h.s8.bf16 %v1766_v26 }
 0x3ed   :  { %v2344_v38 = vunpack.c.h.s8.bf16 %v1931_v30  ;;  %v2337_v22 = vunpack.c.l.s8.bf16 %v1931_v30 }
 0x3ef   :  { %2655 = vmatpush2.bf16.msra.mxu0 %v2176_v39  ;;  %2698 = vmatpush2.bf16.msra.mxu1 %v2288_v15  ;;  %v2010_v39 = vunpack.c.h.s8.bf16 %v1765_v37  ;;  %v2338_v15 = vunpack.c.l.s8.bf16 %v1932_v17  ;;  %v1794_v17 = vld [vmem:[#allocation14 + $0x178] sm:$0xff] }
 0x3f0   :  { %2656 = vmatprep.subr.bf16.mxu0 %v2170_v41  ;;  %2699 = vmatprep.subr.bf16.mxu1 %v2282_v42  ;;  %v2004_v41 = vunpack.c.l.s8.bf16 %v1766_v26  ;;  %v1925_v42 = vld [vmem:[#allocation14 + $0x590] sm:$0xff]  ;;  %v2067_v30 = vunpack.c.h.s8.bf16 %v1794_v17 }
 0x3f3   :  { %2657 = vmatpush2.bf16.msra.mxu0 %v2169_v46  ;;  %2700 = vmatpush2.bf16.msra.mxu1 %v2281_v47  ;;  %v2003_v46 = vunpack.c.l.s8.bf16 %v1765_v37  ;;  %v2331_v47 = vunpack.c.h.s8.bf16 %v1925_v42 }
 0x3f4   :  { %2658 = vmatprep.subr.bf16.mxu0 %v2163_v48  ;;  %2701 = vmatprep.subr.bf16.mxu1 %v2275_v49  ;;  %v1924_v48 = vld [vmem:[#allocation14 + $0x588] sm:$0xff]  ;;  %v1997_v49 = vunpack.c.h.s8.bf16 %v1759_v23 }
 0x3f5   :  { %v2330_v61 = vunpack.c.h.s8.bf16 %v1924_v48  ;;  %v2323_v53 = vunpack.c.l.s8.bf16 %v1924_v48 }
 0x3f7   :  { %2659 = vmatpush2.bf16.msra.mxu0 %v2162_v51  ;;  %2702 = vmatpush2.bf16.msra.mxu1 %v2274_v21  ;;  %v1996_v51 = vunpack.c.h.s8.bf16 %v1758_v50  ;;  %v2324_v21 = vunpack.c.l.s8.bf16 %v1925_v42  ;;  %v1787_v42 = vld [vmem:[#allocation14 + $0x140] sm:$0xff] }
 0x3f8   :  { %2660 = vmatprep.subr.bf16.mxu0 %v2156_v33  ;;  %2703 = vmatprep.subr.bf16.mxu1 %v2268_v52  ;;  %v1990_v33 = vunpack.c.l.s8.bf16 %v1759_v23  ;;  %v1918_v52 = vld [vmem:[#allocation14 + $0x558] sm:$0xff]  ;;  %v2053_v48 = vunpack.c.h.s8.bf16 %v1787_v42 }
 0x3fb   :  { %2661 = vmatpush2.bf16.msra.mxu0 %v2155_v54  ;;  %2704 = vmatpush2.bf16.msra.mxu1 %v2267_v55  ;;  %v1989_v54 = vunpack.c.l.s8.bf16 %v1758_v50  ;;  %v2317_v55 = vunpack.c.h.s8.bf16 %v1918_v52 }
 0x3fc   :  { %2662 = vmatprep.subr.bf16.mxu0 %v2149_v56  ;;  %2705 = vmatprep.subr.bf16.mxu1 %v2261_v57  ;;  %v1917_v56 = vld [vmem:[#allocation14 + $0x550] sm:$0xff]  ;;  %v1983_v57 = vunpack.c.h.s8.bf16 %v1752_v1 }
 0x3fd   :  { %v2316_v32 = vunpack.c.h.s8.bf16 %v1917_v56  ;;  %v2309_v36 = vunpack.c.l.s8.bf16 %v1917_v56 }
 0x3ff   :  { %2663 = vmatpush2.bf16.msra.mxu0 %v2148_v59  ;;  %2706 = vmatpush2.bf16.msra.mxu1 %v2260_v60  ;;  %v1982_v59 = vunpack.c.h.s8.bf16 %v1751_v58  ;;  %v2310_v60 = vunpack.c.l.s8.bf16 %v1918_v52  ;;  %v1780_v52 = vld [vmem:[#allocation14 + $0x108] sm:$0xff] }
 0x400   :  { %2664 = vmatprep.subr.bf16.mxu0 %v2142_v62  ;;  %2707 = vmatprep.subr.bf16.mxu1 %v2254_v63  ;;  %v1976_v62 = vunpack.c.l.s8.bf16 %v1752_v1  ;;  %v1967_v63 = vld [vmem:[#allocation14 + $0x6e0] sm:$0xff]  ;;  %v2039_v56 = vunpack.c.h.s8.bf16 %v1780_v52 }
 0x403   :  { %2665 = vmatpush2.bf16.msra.mxu0 %v2141_v2  ;;  %2708 = vmatpush2.bf16.msra.mxu1 %v2253_v16  ;;  %v1975_v2 = vunpack.c.l.s8.bf16 %v1751_v58  ;;  %v2415_v16 = vunpack.c.h.s8.bf16 %v1967_v63 }
 0x404   :  { %2720 = vmatprep.subr.bf16.mxu0 %v2359_v18  ;;  %2763 = vmatprep.subr.bf16.mxu1 %v2025_v4  ;;  %v1966_v18 = vld [vmem:[#allocation14 + $0x6d8] sm:$0xff]  ;;  %v2081_v4 = vunpack.c.h.s8.bf16 %v1801_v34 }
 0x405   :  { %v2414_v7 = vunpack.c.h.s8.bf16 %v1966_v18  ;;  %v2407_v26 = vunpack.c.l.s8.bf16 %v1966_v18 }
 0x406   :  { %2667 = vmatmul.mubr.bf16.vlgmr.msra.gmra.mxu0 %v4067_v31  ;;  %2710 = vmatmul.mubr.bf16.vlgmr.msra.gmra.mxu1 %v4094_v43 }
 0x407   :  { %2721 = vmatpush1.bf16.msra.mxu0 %v2358_v8  ;;  %2752 = vmatprep.mubr.bf16.mxu0 %v4110_v9  ;;  %v2080_v8 = vunpack.c.h.s8.bf16 %v1800_v6 }
 0x408   :  { %2764 = vmatpush1.bf16.msra.mxu1 %v2024_v10  ;;  %2795 = vmatprep.mubr.bf16.mxu1 %v4040_v5  ;;  %v2408_v10 = vunpack.c.l.s8.bf16 %v1967_v63  ;;  %v1885_v63 = vld [vmem:[#allocation14 + $0x450] sm:$0xff] }
 0x409   :  { %2722 = vmatprep.subr.bf16.mxu0 %v2352_v11  ;;  %2765 = vmatprep.subr.bf16.mxu1 %v2018_v13  ;;  %v2074_v11 = vunpack.c.l.s8.bf16 %v1801_v34  ;;  %v1960_v13 = vld [vmem:[#allocation14 + $0x6a8] sm:$0xff]  ;;  %v2249_v18 = vunpack.c.h.s8.bf16 %v1885_v63 }
 0x40b   :  { %2723 = vmatpush1.bf16.msra.mxu0 %v2351_v27  ;;  %v2073_v27 = vunpack.c.l.s8.bf16 %v1800_v6 }
 0x40c   :  { %2766 = vmatpush1.bf16.msra.mxu1 %v2017_v28  ;;  %2724 = vmatprep.subr.bf16.mxu0 %v2345_v29  ;;  %v2401_v28 = vunpack.c.h.s8.bf16 %v1960_v13  ;;  %v1959_v29 = vld [vmem:[#allocation14 + $0x6a0] sm:$0xff] }
 0x40d   :  { %2767 = vmatprep.subr.bf16.mxu1 %v2011_v3  ;;  %v1793_v3 = vld [vmem:[#allocation14 + $0x170] sm:$0xff]  ;;  %v2400_v37 = vunpack.c.h.s8.bf16 %v1959_v29  ;;  %v2393_v23 = vunpack.c.l.s8.bf16 %v1959_v29 }
 0x40f   :  { %2725 = vmatpush1.bf16.msra.mxu0 %v2344_v38  ;;  %v2066_v38 = vunpack.c.h.s8.bf16 %v1793_v3 }
 0x410   :  { %2768 = vmatpush1.bf16.msra.mxu1 %v2010_v39  ;;  %2726 = vmatprep.subr.bf16.mxu0 %v2338_v15  ;;  %v2394_v39 = vunpack.c.l.s8.bf16 %v1960_v13  ;;  %v2060_v15 = vunpack.c.l.s8.bf16 %v1794_v17  ;;  %v1878_v13 = vld [vmem:[#allocation14 + $0x418] sm:$0xff] }
 0x411   :  { %2769 = vmatprep.subr.bf16.mxu1 %v2004_v41  ;;  %v1953_v41 = vld [vmem:[#allocation14 + $0x670] sm:$0xff]  ;;  %v2235_v29 = vunpack.c.h.s8.bf16 %v1878_v13 }
 0x413   :  { %2727 = vmatpush1.bf16.msra.mxu0 %v2337_v22  ;;  %v2059_v22 = vunpack.c.l.s8.bf16 %v1793_v3 }
 0x414   :  { %2770 = vmatpush1.bf16.msra.mxu1 %v2003_v46  ;;  %2728 = vmatprep.subr.bf16.mxu0 %v2331_v47  ;;  %v2387_v46 = vunpack.c.h.s8.bf16 %v1953_v41  ;;  %v1952_v47 = vld [vmem:[#allocation14 + $0x668] sm:$0xff] }
 0x415   :  { %2771 = vmatprep.subr.bf16.mxu1 %v1997_v49  ;;  %v1786_v49 = vld [vmem:[#allocation14 + $0x138] sm:$0xff]  ;;  %v2386_v50 = vunpack.c.h.s8.bf16 %v1952_v47  ;;  %v2379_v1 = vunpack.c.l.s8.bf16 %v1952_v47 }
 0x417   :  { %2729 = vmatpush1.bf16.msra.mxu0 %v2330_v61  ;;  %v2052_v61 = vunpack.c.h.s8.bf16 %v1786_v49 }
 0x418   :  { %2772 = vmatpush1.bf16.msra.mxu1 %v1996_v51  ;;  %2730 = vmatprep.subr.bf16.mxu0 %v2324_v21  ;;  %v2380_v51 = vunpack.c.l.s8.bf16 %v1953_v41  ;;  %v2046_v21 = vunpack.c.l.s8.bf16 %v1787_v42  ;;  %v1871_v41 = vld [vmem:[#allocation14 + $0x3e0] sm:$0xff] }
 0x419   :  { %2773 = vmatprep.subr.bf16.mxu1 %v1990_v33  ;;  %v1946_v33 = vld [vmem:[#allocation14 + $0x638] sm:$0xff]  ;;  %v2221_v47 = vunpack.c.h.s8.bf16 %v1871_v41 }
 0x41b   :  { %2731 = vmatpush1.bf16.msra.mxu0 %v2323_v53  ;;  %v2045_v53 = vunpack.c.l.s8.bf16 %v1786_v49 }
 0x41c   :  { %2774 = vmatpush1.bf16.msra.mxu1 %v1989_v54  ;;  %2732 = vmatprep.subr.bf16.mxu0 %v2317_v55  ;;  %v2373_v54 = vunpack.c.h.s8.bf16 %v1946_v33  ;;  %v1945_v55 = vld [vmem:[#allocation14 + $0x630] sm:$0xff] }
 0x41d   :  { %2775 = vmatprep.subr.bf16.mxu1 %v1983_v57  ;;  %v1779_v57 = vld [vmem:[#allocation14 + $0x100] sm:$0xff]  ;;  %v2372_v58 = vunpack.c.h.s8.bf16 %v1945_v55  ;;  %v2365_v34 = vunpack.c.l.s8.bf16 %v1945_v55 }
 0x41f   :  { %2733 = vmatpush1.bf16.msra.mxu0 %v2316_v32  ;;  %v2038_v32 = vunpack.c.h.s8.bf16 %v1779_v57 }
 0x420   :  { %2776 = vmatpush1.bf16.msra.mxu1 %v1982_v59  ;;  %2734 = vmatprep.subr.bf16.mxu0 %v2310_v60  ;;  %v2366_v59 = vunpack.c.l.s8.bf16 %v1946_v33  ;;  %v2032_v60 = vunpack.c.l.s8.bf16 %v1780_v52  ;;  %v1864_v33 = vld [vmem:[#allocation14 + $0x3a8] sm:$0xff] }
 0x421   :  { %2777 = vmatprep.subr.bf16.mxu1 %v1976_v62  ;;  %v1829_v62 = vld [vmem:[#allocation14 + $0x290] sm:$0xff]  ;;  %v2207_v55 = vunpack.c.h.s8.bf16 %v1864_v33 }
 0x423   :  { %2735 = vmatpush1.bf16.msra.mxu0 %v2309_v36  ;;  %v2031_v36 = vunpack.c.l.s8.bf16 %v1779_v57 }
 0x424   :  { %2778 = vmatpush1.bf16.msra.mxu1 %v1975_v2  ;;  %2736 = vmatprep.subr.bf16.mxu0 %v2415_v16  ;;  %v2137_v2 = vunpack.c.h.s8.bf16 %v1829_v62  ;;  %v1828_v16 = vld [vmem:[#allocation14 + $0x288] sm:$0xff] }
 0x425   :  { %2779 = vmatprep.subr.bf16.mxu1 %v2081_v4  ;;  %v1884_v4 = vld [vmem:[#allocation14 + $0x448] sm:$0xff]  ;;  %v2136_v6 = vunpack.c.h.s8.bf16 %v1828_v16  ;;  %v2129_v17 = vunpack.c.l.s8.bf16 %v1828_v16 }
 0x427   :  { %2737 = vmatpush2.bf16.msra.mxu0 %v2414_v7  ;;  %v2248_v7 = vunpack.c.h.s8.bf16 %v1884_v4 }
 0x428   :  { %2780 = vmatpush2.bf16.msra.mxu1 %v2080_v8  ;;  %2738 = vmatprep.subr.bf16.mxu0 %v2408_v10  ;;  %v2130_v8 = vunpack.c.l.s8.bf16 %v1829_v62  ;;  %v1822_v10 = vld [vmem:[#allocation14 + $0x258] sm:$0xff]  ;;  %v1913_v62 = vld [vmem:[#allocation14 + $0x530] sm:$0xff] }
 0x429   :  { %2781 = vmatprep.subr.bf16.mxu1 %v2074_v11  ;;  %v2242_v11 = vunpack.c.l.s8.bf16 %v1885_v63  ;;  %v2305_v16 = vunpack.c.h.s8.bf16 %v1913_v62 }
 0x42b   :  { %2739 = vmatpush2.bf16.msra.mxu0 %v2407_v26  ;;  %v2241_v26 = vunpack.c.l.s8.bf16 %v1884_v4 }
 0x42c   :  { %2782 = vmatpush2.bf16.msra.mxu1 %v2073_v27  ;;  %2740 = vmatprep.subr.bf16.mxu0 %v2401_v28  ;;  %v2123_v27 = vunpack.c.h.s8.bf16 %v1822_v10  ;;  %v1821_v28 = vld [vmem:[#allocation14 + $0x250] sm:$0xff] }
 0x42d   :  { %2783 = vmatprep.subr.bf16.mxu1 %v2067_v30  ;;  %v1877_v30 = vld [vmem:[#allocation14 + $0x410] sm:$0xff]  ;;  %v2122_v3 = vunpack.c.h.s8.bf16 %v1821_v28  ;;  %v2115_v42 = vunpack.c.l.s8.bf16 %v1821_v28 }
 0x42f   :  { %2741 = vmatpush2.bf16.msra.mxu0 %v2400_v37  ;;  %v2234_v37 = vunpack.c.h.s8.bf16 %v1877_v30 }
 0x430   :  { %2784 = vmatpush2.bf16.msra.mxu1 %v2066_v38  ;;  %2742 = vmatprep.subr.bf16.mxu0 %v2394_v39  ;;  %v2116_v38 = vunpack.c.l.s8.bf16 %v1822_v10  ;;  %v2228_v39 = vunpack.c.l.s8.bf16 %v1878_v13  ;;  %v1850_v10 = vld [vmem:[#allocation14 + $0x338] sm:$0xff] }
 0x431   :  { %2785 = vmatprep.subr.bf16.mxu1 %v2060_v15  ;;  %v1815_v15 = vld [vmem:[#allocation14 + $0x220] sm:$0xff] }
 0x433   :  { %2743 = vmatpush2.bf16.msra.mxu0 %v2393_v23  ;;  %v2227_v23 = vunpack.c.l.s8.bf16 %v1877_v30 }
 0x434   :  { %2786 = vmatpush2.bf16.msra.mxu1 %v2059_v22  ;;  %2744 = vmatprep.subr.bf16.mxu0 %v2387_v46  ;;  %v2109_v22 = vunpack.c.h.s8.bf16 %v1815_v15  ;;  %v1814_v46 = vld [vmem:[#allocation14 + $0x218] sm:$0xff] }
 0x435   :  { %2787 = vmatprep.subr.bf16.mxu1 %v2053_v48  ;;  %v1870_v48 = vld [vmem:[#allocation14 + $0x3d8] sm:$0xff]  ;;  %v2108_v49 = vunpack.c.h.s8.bf16 %v1814_v46  ;;  %v2101_v52 = vunpack.c.l.s8.bf16 %v1814_v46 }
 0x436   :  { %v1842_v46 = vld [vmem:[#allocation14 + $0x2f8] sm:$0xff] }
 0x437   :  { %2745 = vmatpush2.bf16.msra.mxu0 %v2386_v50  ;;  %v2220_v50 = vunpack.c.h.s8.bf16 %v1870_v48 }
 0x438   :  { %2788 = vmatpush2.bf16.msra.mxu1 %v2052_v61  ;;  %2746 = vmatprep.subr.bf16.mxu0 %v2380_v51  ;;  %v2102_v61 = vunpack.c.l.s8.bf16 %v1815_v15  ;;  %v2214_v51 = vunpack.c.l.s8.bf16 %v1871_v41  ;;  %v2453_v15 = vpop.f32.mrf.mxu1  ;;  %v1899_v41 = vld [vmem:[#allocation14 + $0x4c0] sm:$0xff] }
 0x439   :  { %2789 = vmatprep.subr.bf16.mxu1 %v2046_v21  ;;  %v1808_v21 = vld [vmem:[#allocation14 + $0x1e8] sm:$0xff] }
 0x43b   :  { %2747 = vmatpush2.bf16.msra.mxu0 %v2379_v1  ;;  %v2213_v1 = vunpack.c.l.s8.bf16 %v1870_v48  ;;  %v1898_v48 = vld [vmem:[#allocation14 + $0x4b8] sm:$0xff] }
 0x43c   :  { %2790 = vmatpush2.bf16.msra.mxu1 %v2045_v53  ;;  %2748 = vmatprep.subr.bf16.mxu0 %v2373_v54  ;;  %v2095_v53 = vunpack.c.h.s8.bf16 %v1808_v21  ;;  %v1807_v54 = vld [vmem:[#allocation14 + $0x1e0] sm:$0xff] }
 0x43d   :  { %2791 = vmatprep.subr.bf16.mxu1 %v2039_v56  ;;  %v1863_v56 = vld [vmem:[#allocation14 + $0x3a0] sm:$0xff]  ;;  %v2094_v57 = vunpack.c.h.s8.bf16 %v1807_v54  ;;  %v2087_v63 = vunpack.c.l.s8.bf16 %v1807_v54  ;;  %v2496_v54 = vpop.f32.mrf.mxu0 }
 0x43f   :  { %2749 = vmatpush2.bf16.msra.mxu0 %v2372_v58  ;;  %v2206_v58 = vunpack.c.h.s8.bf16 %v1863_v56 }
 0x440   :  { %2792 = vmatpush2.bf16.msra.mxu1 %v2038_v32  ;;  %2750 = vmatprep.subr.bf16.mxu0 %v2366_v59  ;;  %v2088_v32 = vunpack.c.l.s8.bf16 %v1808_v21  ;;  %v2200_v59 = vunpack.c.l.s8.bf16 %v1864_v33  ;;  %v2270_v21 = vunpack.c.l.s8.bf16 %v1899_v41  ;;  %v1836_v33 = vld [vmem:[#allocation14 + $0x2c8] sm:$0xff] }
 0x441   :  { %2793 = vmatprep.subr.bf16.mxu1 %v2032_v60  ;;  %v1857_v60 = vld [vmem:[#allocation14 + $0x370] sm:$0xff] }
 0x443   :  { %2751 = vmatpush2.bf16.msra.mxu0 %v2365_v34  ;;  %v2199_v34 = vunpack.c.l.s8.bf16 %v1863_v56  ;;  %v2151_v56 = vunpack.c.h.s8.bf16 %v1836_v33 }
 0x444   :  { %2794 = vmatpush2.bf16.msra.mxu1 %v2031_v36  ;;  %2806 = vmatprep.subr.bf16.mxu0 %v2137_v2  ;;  %v2193_v36 = vunpack.c.h.s8.bf16 %v1857_v60  ;;  %v1856_v2 = vld [vmem:[#allocation14 + $0x368] sm:$0xff] }
 0x445   :  { %2849 = vmatprep.subr.bf16.mxu1 %v2249_v18  ;;  %v1912_v18 = vld [vmem:[#allocation14 + $0x528] sm:$0xff]  ;;  %v2192_v4 = vunpack.c.h.s8.bf16 %v1856_v2  ;;  %v2185_v13 = vunpack.c.l.s8.bf16 %v1856_v2 }
 0x446   :  { %2753 = vmatmul.mubr.bf16.vlgmr.msra.gmra.mxu0 %v4112_v14 }
 0x447   :  { %2796 = vmatmul.mubr.bf16.vlgmr.msra.gmra.mxu1 %v4054_v35  ;;  %2807 = vmatpush1.bf16.msra.mxu0 %v2136_v6  ;;  %v2304_v6 = vunpack.c.h.s8.bf16 %v1912_v18 }
 0x448   :  { %2838 = vmatprep.mubr.bf16.mxu0 %v4065_v0  ;;  %2850 = vmatpush1.bf16.msra.mxu1 %v2248_v7  ;;  %v2186_v7 = vunpack.c.l.s8.bf16 %v1857_v60 }
 0x449   :  { %2881 = vmatprep.mubr.bf16.mxu1 %v4092_v40  ;;  %2808 = vmatprep.subr.bf16.mxu0 %v2130_v8  ;;  %v2298_v8 = vunpack.c.l.s8.bf16 %v1913_v62  ;;  %v2498_v62 = vpop.f32.mrf.mxu0 }
 0x44a   :  { %2851 = vmatprep.subr.bf16.mxu1 %v2242_v11  ;;  %v1906_v11 = vld [vmem:[#allocation14 + $0x4f8] sm:$0xff] }
 0x44b   :  { %2809 = vmatpush1.bf16.msra.mxu0 %v2129_v17  ;;  %v2297_v17 = vunpack.c.l.s8.bf16 %v1912_v18  ;;  %v2291_v28 = vunpack.c.h.s8.bf16 %v1906_v11  ;;  %v1802_v18 = vld [vmem:[#allocation14 + $0x1b8] sm:$0xff] }
 0x44c   :  { %2852 = vmatpush1.bf16.msra.mxu1 %v2241_v26  ;;  %2810 = vmatprep.subr.bf16.mxu0 %v2123_v27  ;;  %v2179_v26 = vunpack.c.h.s8.bf16 %v1850_v10  ;;  %v1849_v27 = vld [vmem:[#allocation14 + $0x330] sm:$0xff] }
 0x44d   :  { %2853 = vmatprep.subr.bf16.mxu1 %v2235_v29  ;;  %v1905_v29 = vld [vmem:[#allocation14 + $0x4f0] sm:$0xff]  ;;  %v2178_v30 = vunpack.c.h.s8.bf16 %v1849_v27 }
 0x44f   :  { %2811 = vmatpush1.bf16.msra.mxu0 %v2122_v3  ;;  %v2290_v3 = vunpack.c.h.s8.bf16 %v1905_v29 }
 0x450   :  { %2854 = vmatpush1.bf16.msra.mxu1 %v2234_v37  ;;  %2812 = vmatprep.subr.bf16.mxu0 %v2116_v38  ;;  %v2172_v37 = vunpack.c.l.s8.bf16 %v1850_v10  ;;  %v2284_v38 = vunpack.c.l.s8.bf16 %v1906_v11  ;;  %v1940_v11 = vld [vmem:[#allocation14 + $0x608] sm:$0xff] }
 0x451   :  { %2855 = vmatprep.subr.bf16.mxu1 %v2228_v39  ;;  %v1843_v39 = vld [vmem:[#allocation14 + $0x300] sm:$0xff] }
 0x453   :  { %2813 = vmatpush1.bf16.msra.mxu0 %v2115_v42  ;;  %v2171_v42 = vunpack.c.l.s8.bf16 %v1849_v27  ;;  %v2497_v27 = vadd.f32 %v2496_v54, %v2453_v15 }
 0x454   :  { %2856 = vmatpush1.bf16.msra.mxu1 %v2227_v23  ;;  %2814 = vmatprep.subr.bf16.mxu0 %v2109_v22  ;;  %v2283_v23 = vunpack.c.l.s8.bf16 %v1905_v29  ;;  %v2165_v22 = vunpack.c.h.s8.bf16 %v1843_v39  ;;  %v2360_v29 = vunpack.c.h.s8.bf16 %v1940_v11 }
 0x455   :  { %2857 = vmatprep.subr.bf16.mxu1 %v2221_v47  ;;  %v2277_v47 = vunpack.c.h.s8.bf16 %v1899_v41 }
 0x457   :  { %2815 = vmatpush1.bf16.msra.mxu0 %v2108_v49  ;;  %v2455_v49 = vpop.f32.mrf.mxu1 }
 0x458   :  { %2858 = vmatpush1.bf16.msra.mxu1 %v2220_v50  ;;  %2816 = vmatprep.subr.bf16.mxu0 %v2102_v61  ;;  %v2164_v50 = vunpack.c.h.s8.bf16 %v1842_v46  ;;  %v2276_v61 = vunpack.c.h.s8.bf16 %v1898_v48 }
 0x459   :  { %2859 = vmatprep.subr.bf16.mxu1 %v2214_v51  ;;  %v2158_v51 = vunpack.c.l.s8.bf16 %v1843_v39 }
 0x45b   :  { %2817 = vmatpush1.bf16.msra.mxu0 %v2101_v52  ;;  %v2457_v52 = vpop.f32.mrf.mxu1 }
 0x45c   :  { %2860 = vmatpush1.bf16.msra.mxu1 %v2213_v1  ;;  %2818 = vmatprep.subr.bf16.mxu0 %v2095_v53  ;;  %v1892_v1 = vld [vmem:[#allocation14 + $0x488] sm:$0xff]  ;;  %v2157_v53 = vunpack.c.l.s8.bf16 %v1842_v46 }
 0x45d   :  { %2861 = vmatprep.subr.bf16.mxu1 %v2207_v55  ;;  %v2269_v55 = vunpack.c.l.s8.bf16 %v1898_v48  ;;  %v2256_v2 = vunpack.c.l.s8.bf16 %v1892_v1  ;;  %v1795_v48 = vld [vmem:[#allocation14 + $0x180] sm:$0xff] }
 0x45f   :  { %2819 = vmatpush1.bf16.msra.mxu0 %v2094_v57  ;;  %v1835_v57 = vld [vmem:[#allocation14 + $0x2c0] sm:$0xff] }
 0x460   :  { %2862 = vmatpush1.bf16.msra.mxu1 %v2206_v58  ;;  %2820 = vmatprep.subr.bf16.mxu0 %v2088_v32  ;;  %v2263_v58 = vunpack.c.h.s8.bf16 %v1892_v1  ;;  %v1891_v32 = vld [vmem:[#allocation14 + $0x480] sm:$0xff]  ;;  %v2150_v60 = vunpack.c.h.s8.bf16 %v1835_v57 }
 0x461   :  { %2863 = vmatprep.subr.bf16.mxu1 %v2200_v59  ;;  %v2459_v59 = vpop.f32.mrf.mxu1 }
 0x463   :  { %2821 = vmatpush1.bf16.msra.mxu0 %v2087_v63  ;;  %v2539_v63 = vpop.f32.mrf.mxu1 }
 0x464   :  { %2864 = vmatpush1.bf16.msra.mxu1 %v2199_v34  ;;  %2822 = vmatprep.subr.bf16.mxu0 %v2193_v36  ;;  %v2262_v34 = vunpack.c.h.s8.bf16 %v1891_v32  ;;  %v2144_v36 = vunpack.c.l.s8.bf16 %v1836_v33  ;;  %v2540_v39 = vadd.f32 %v2539_v63, %v2497_v27 }
 0x465   :  { %2865 = vmatprep.subr.bf16.mxu1 %v2305_v16  ;;  %v1941_v16 = vld [vmem:[#allocation14 + $0x610] sm:$0xff] }
 0x466   :  { %v2361_v10 = vunpack.c.h.s8.bf16 %v1941_v16 }
 0x467   :  { %2823 = vmatpush2.bf16.msra.mxu0 %v2192_v4  ;;  %v2143_v4 = vunpack.c.l.s8.bf16 %v1835_v57 }
 0x468   :  { %2866 = vmatpush2.bf16.msra.mxu1 %v2304_v6  ;;  %2824 = vmatprep.subr.bf16.mxu0 %v2186_v7  ;;  %v2500_v6 = vpop.f32.mrf.mxu0  ;;  %v2541_v7 = vpop.f32.mrf.mxu1 }
 0x469   :  { %2867 = vmatprep.subr.bf16.mxu1 %v2298_v8  ;;  %v2255_v8 = vunpack.c.l.s8.bf16 %v1891_v32  ;;  %v1767_v32 = vld [vmem:[#allocation14 + $0xa0] sm:$0xff] }
 0x46b   :  { %2825 = vmatpush2.bf16.msra.mxu0 %v2185_v13  ;;  %v2082_v13 = vunpack.c.h.s8.bf16 %v1802_v18 }
 0x46c   :  { %2868 = vmatpush2.bf16.msra.mxu1 %v2297_v17  ;;  %2826 = vmatprep.subr.bf16.mxu0 %v2179_v26  ;;  %v1774_v17 = vld [vmem:[#allocation14 + $0xd8] sm:$0xff]  ;;  %v4131_v26 = vld [vmem:[%s4187_s9] sm:$0xff]  ;;  %s3875_s9 = smov [#allocation17]  }
 0x46d   :  { %2869 = vmatprep.subr.bf16.mxu1 %v2291_v28  ;;  %v4133_v28 = vld [vmem:[#allocation16] sm:$0xff]  ;;  %v3104_v41 = vrot.slane %v4131_v26, %v3974_v25  ;;  %s3272_s5 = sshll.u32 %s3875_s9, 4  ;;  %s3273_s5 = int_to_ptr.vmem [resolvable:$true] %s3272_s5 }
 0x46e   :  { %v3155_v46 = vrot.slane %v4133_v28, %v3974_v25  ;;  %v3159_v25 = vrot.slane %v4133_v28, %v3971_v24  ;;  %s3824_s26 = scalar_lea.vmem %s3273_s5, 896  ;;  %p3829_p4 = scmp.lt.s32.totalorder %s3273_s5, %s3273_s5 }
 0x46f   :  { %2827 = vmatpush2.bf16.msra.mxu0 %v2178_v30  ;;  %v2502_v30 = vpop.f32.mrf.mxu0  ;;  %p3825_p3 = scmp.ne.s32.totalorder %s3273_s5, %s3824_s26  ;;  %p3830_p5 = scmp.lt.s32.totalorder %s3824_s26, %s3824_s26 }
 0x470   :  { %2870 = vmatpush2.bf16.msra.mxu1 %v2290_v3  ;;  %2828 = vmatprep.subr.bf16.mxu0 %v2172_v37  ;;  %v2543_v3 = vpop.f32.mrf.mxu1  ;;  %v2026_v37 = vunpack.c.h.s8.bf16 %v1774_v17  ;;  %v2503_v33 = vadd.f32 %v2502_v30, %v2459_v59 }
 0x471   :  { %2871 = vmatprep.subr.bf16.mxu1 %v2284_v38  ;;  %v2499_v38 = vadd.f32 %v2498_v62, %v2455_v49  ;;  %p3831_p6 = por %p3830_p5, %p3829_p4 }
 0x473   :  { %2829 = vmatpush2.bf16.msra.mxu0 %v2171_v42  ;;  %v2354_v42 = vunpack.c.l.s8.bf16 %v1941_v16  ;;  %p3832_p7 = pnand %p3831_p6, %p3825_p3 }
 0x474   :  { %2872 = vmatpush2.bf16.msra.mxu1 %v2283_v23  ;;  %2830 = vmatprep.subr.bf16.mxu0 %v2165_v22  ;;  %v1934_v23 = vld [vmem:[#allocation14 + $0x5d8] sm:$0xff]  ;;  %v2501_v22 = vadd.f32 %v2500_v6, %v2457_v52  ;;  %v2545_v52 = vpop.f32.mrf.mxu1  ;;  %v2061_v6 = vunpack.c.l.s8.bf16 %v1795_v48 }
 0x475   :  { %2873 = vmatprep.subr.bf16.mxu1 %v2277_v47  ;;  %v2075_v47 = vunpack.c.l.s8.bf16 %v1802_v18  ;;  %v2347_v54 = vunpack.c.h.s8.bf16 %v1934_v23  ;;  %v2546_v62 = vadd.f32 %v2545_v52, %v2503_v33  ;;  %v2340_v16 = vunpack.c.l.s8.bf16 %v1934_v23  ;;  %v1920_v23 = vld [vmem:[#allocation14 + $0x568] sm:$0xff] }
 0x476   :  { %v2312_v52 = vunpack.c.l.s8.bf16 %v1920_v23 }
 0x477   :  { %2831 = vmatpush2.bf16.msra.mxu0 %v2164_v50  ;;  %v2542_v50 = vadd.f32 %v2541_v7, %v2499_v38  ;;  %v1927_v7 = vld [vmem:[#allocation14 + $0x5a0] sm:$0xff] }
 0x478   :  { %2874 = vmatpush2.bf16.msra.mxu1 %v2276_v61  ;;  %2832 = vmatprep.subr.bf16.mxu0 %v2158_v51  ;;  %v3108_v61 = vrot.slane %v4131_v26, %v3971_v24  ;;  %v2353_v51 = vunpack.c.l.s8.bf16 %v1940_v11  ;;  %v2333_v27 = vunpack.c.h.s8.bf16 %v1927_v7 }
 0x479   :  { %2875 = vmatprep.subr.bf16.mxu1 %v2270_v21  ;;  %v1933_v21 = vld [vmem:[#allocation14 + $0x5d0] sm:$0xff] }
 0x47b   :  { %2833 = vmatpush2.bf16.msra.mxu0 %v2157_v53  ;;  %v2019_v53 = vunpack.c.l.s8.bf16 %v1774_v17  ;;  %v2005_v17 = vunpack.c.l.s8.bf16 %v1767_v32 }
 0x47c   :  { %2876 = vmatpush2.bf16.msra.mxu1 %v2269_v55  ;;  %2834 = vmatprep.subr.bf16.mxu0 %v2151_v56  ;;  %v2544_v55 = vadd.f32 %v2543_v3, %v2501_v22  ;;  %v1781_v22 = vld [vmem:[#allocation14 + $0x110] sm:$0xff] }
 0x47d   :  { %2877 = vmatprep.subr.bf16.mxu1 %v2263_v58  ;;  %v2068_v58 = vunpack.c.h.s8.bf16 %v1795_v48  ;;  %v1919_v48 = vld [vmem:[#allocation14 + $0x560] sm:$0xff] }
 0x47f   :  { %2835 = vmatpush2.bf16.msra.mxu0 %v2150_v60  ;;  %v2346_v60 = vunpack.c.h.s8.bf16 %v1933_v21 }
 0x480   :  { %2878 = vmatpush2.bf16.msra.mxu1 %v2262_v34  ;;  %2836 = vmatprep.subr.bf16.mxu0 %v2144_v36 }
 0x481   :  { %2879 = vmatprep.subr.bf16.mxu1 %v2256_v2  ;;  %v2012_v2 = vunpack.c.h.s8.bf16 %v1767_v32 }
 0x483   :  { %2837 = vmatpush2.bf16.msra.mxu0 %v2143_v4 }
 0x484   :  { %2880 = vmatpush2.bf16.msra.mxu1 %v2255_v8  ;;  %2892 = vmatprep.subr.bf16.mxu0 %v2361_v10  ;;  %v1788_v8 = vld [vmem:[#allocation14 + $0x148] sm:$0xff] }
 0x485   :  { %3385 = vmatprep.subr.bf16.mxu1 %v2082_v13  ;;  %v2339_v13 = vunpack.c.l.s8.bf16 %v1933_v21  ;;  %v2054_v3 = vunpack.c.h.s8.bf16 %v1788_v8 }
 0x486   :  { %2839 = vmatmul.mubr.bf16.vlgmr.msra.gmra.mxu0 %v4067_v31  ;;  %v2582_v15 = vpop.f32.mrf.mxu0 }
 0x487   :  { %2882 = vmatmul.mubr.bf16.vlgmr.msra.gmra.mxu1 %v4094_v43  ;;  %v2583_v49 = vadd.f32 %v2582_v15, %v2540_v39  ;;  %2893 = vmatpush1.bf16.msra.mxu0 %v2360_v29  ;;  %v1926_v29 = vld [vmem:[#allocation14 + $0x598] sm:$0xff] }
 0x488   :  { %2924 = vmatprep.mubr.bf16.mxu0 %v4110_v9  ;;  %3386 = vmatpush3.bf16.msra.mxu1 %v2026_v37  ;;  %v2584_v1 = vpop.f32.mrf.mxu0  ;;  %v1760_v37 = vld [vmem:[#allocation14 + $0x68] sm:$0xff]  ;;  %v2332_v38 = vunpack.c.h.s8.bf16 %v1926_v29  ;;  %v2325_v15 = vunpack.c.l.s8.bf16 %v1926_v29 }
 0x489   :  { %v3136_v56 = vmul.f32 %v3104_v41, %v2583_v49  ;;  %2967 = vmatprep.mubr.bf16.mxu1 %v4040_v5  ;;  %v2585_v57 = vadd.f32 %v2584_v1, %v2542_v50  ;;  %2894 = vmatprep.subr.bf16.mxu0 %v2354_v42  ;;  %v1998_v39 = vunpack.c.h.s8.bf16 %v1760_v37  ;;  %v2047_v42 = vunpack.c.l.s8.bf16 %v1788_v8  ;;  %v1753_v49 = vld [vmem:[#allocation14 + $0x30] sm:$0xff]  ;;  %v1900_v29 = vld [vmem:[#allocation14 + $0x4c8] sm:$0xff] }
 0x48a   :  { %3387 = vmatprep.subr.bf16.mxu1 %v2075_v47  ;;  %v2586_v59 = vpop.f32.mrf.mxu0  ;;  %v2319_v47 = vunpack.c.h.s8.bf16 %v1920_v23  ;;  %v2040_v50 = vunpack.c.h.s8.bf16 %v1781_v22  ;;  %v1984_v33 = vunpack.c.h.s8.bf16 %v1753_v49 }
 0x48b   :  { %v3187_v63 = vadd.f32 %v3155_v46, %v3136_v56  ;;  %v3137_v34 = vmul.f32 %v3108_v61, %v2585_v57  ;;  %v2587_v36 = vadd.f32 %v2586_v59, %v2544_v55  ;;  %2895 = vmatpush1.bf16.msra.mxu0 %v2353_v51  ;;  %v2318_v51 = vunpack.c.h.s8.bf16 %v1919_v48  ;;  %v1968_v59 = vld [vmem:[#allocation14 + $0x6e8] sm:$0xff] }
 0x48c   :  { %3388 = vmatpush3.bf16.msra.mxu1 %v2019_v53  ;;  %v2588_v24 = vpop.f32.mrf.mxu0  ;;  %2896 = vmatprep.subr.bf16.mxu0 %v2347_v54  ;;  %v1969_v53 = vld [vmem:[#allocation14 + $0x6f0] sm:$0xff]  ;;  %v1914_v54 = vld [vmem:[#allocation14 + $0x538] sm:$0xff]  ;;  %v2311_v56 = vunpack.c.l.s8.bf16 %v1919_v48 }
 0x48d   :  { %v3188_v18 = vadd.f32 %v3159_v25, %v3137_v34  ;;  %v3143_v4 = vmul.f32 %v3104_v41, %v2587_v36  ;;  %v2589_v5 = vadd.f32 %v2588_v24, %v2546_v62  ;;  %3389 = vmatprep.subr.bf16.mxu1 %v2068_v58  ;;  %3616 = vtanh.f32 %v3187_v63  ;;  %v1886_v63 = vld [vmem:[#allocation14 + $0x458] sm:$0xff] }
 0x48e   :  { %v2326_v41 = vunpack.c.l.s8.bf16 %v1927_v7  ;;  %v1977_v58 = vunpack.c.l.s8.bf16 %v1753_v49  ;;  %v2417_v32 = vunpack.c.h.s8.bf16 %v1969_v53  ;;  %v2306_v62 = vunpack.c.h.s8.bf16 %v1914_v54  ;;  %v1961_v7 = vld [vmem:[#allocation14 + $0x6b0] sm:$0xff]  ;;  %v1947_v49 = vld [vmem:[#allocation14 + $0x640] sm:$0xff] }
 0x48f   :  { %3618 = vtanh.f32 %v3188_v18  ;;  %v3194_v10 = vadd.f32 %v3155_v46, %v3143_v4  ;;  %v3144_v11 = vmul.f32 %v3108_v61, %v2589_v5  ;;  %2897 = vmatpush1.bf16.msra.mxu0 %v2346_v60  ;;  %v1991_v46 = vunpack.c.l.s8.bf16 %v1760_v37  ;;  %v1907_v18 = vld [vmem:[#allocation14 + $0x500] sm:$0xff]  ;;  %v1954_v37 = vld [vmem:[#allocation14 + $0x678] sm:$0xff] }
 0x490   :  { %3390 = vmatpush3.bf16.msra.mxu1 %v2012_v2  ;;  %2898 = vmatprep.subr.bf16.mxu0 %v2340_v16  ;;  %v2416_v34 = vunpack.c.h.s8.bf16 %v1968_v59  ;;  %v2250_v36 = vunpack.c.h.s8.bf16 %v1886_v63  ;;  %v2410_v24 = vunpack.c.l.s8.bf16 %v1969_v53  ;;  %v2299_v2 = vunpack.c.l.s8.bf16 %v1914_v54  ;;  %v1962_v16 = vld [vmem:[#allocation14 + $0x6b8] sm:$0xff] }
 0x491   :  { %v3195_v30 = vadd.f32 %v3159_v25, %v3144_v11  ;;  %3391 = vmatprep.subr.bf16.mxu1 %v2061_v6  ;;  %3620 = vtanh.f32 %v3194_v10  ;;  %v2033_v25 = vunpack.c.l.s8.bf16 %v1781_v22  ;;  %v2409_v4 = vunpack.c.l.s8.bf16 %v1968_v59  ;;  %v1879_v10 = vld [vmem:[#allocation14 + $0x420] sm:$0xff] }
 0x492   :  { %v2243_v5 = vunpack.c.l.s8.bf16 %v1886_v63  ;;  %v2403_v6 = vunpack.c.h.s8.bf16 %v1962_v16  ;;  %v2292_v8 = vunpack.c.h.s8.bf16 %v1907_v18  ;;  %v2402_v11 = vunpack.c.h.s8.bf16 %v1961_v7 }
 0x493   :  { %3622 = vtanh.f32 %v3195_v30  ;;  %2899 = vmatpush1.bf16.msra.mxu0 %v2339_v13  ;;  %v2236_v13 = vunpack.c.h.s8.bf16 %v1879_v10  ;;  %v2395_v30 = vunpack.c.l.s8.bf16 %v1961_v7  ;;  %v2271_v22 = vunpack.c.l.s8.bf16 %v1900_v29 }
 0x494   :  { %3392 = vmatpush3.bf16.msra.mxu1 %v2005_v17  ;;  %2900 = vmatprep.subr.bf16.mxu0 %v2333_v27  ;;  %v2396_v17 = vunpack.c.l.s8.bf16 %v1962_v16  ;;  %v1955_v27 = vld [vmem:[#allocation14 + $0x680] sm:$0xff]  ;;  %v2367_v53 = vunpack.c.l.s8.bf16 %v1947_v49  ;;  %v1816_v16 = vld [vmem:[#allocation14 + $0x228] sm:$0xff] }
 0x495   :  { %3393 = vmatprep.subr.bf16.mxu1 %v2054_v3  ;;  %v2389_v3 = vunpack.c.h.s8.bf16 %v1955_v27  ;;  %v2382_v23 = vunpack.c.l.s8.bf16 %v1955_v27 }
 0x497   :  { %2901 = vmatpush1.bf16.msra.mxu0 %v2332_v38  ;;  %v2278_v38 = vunpack.c.h.s8.bf16 %v1900_v29  ;;  %v1963_v29 = vld [vmem:[#allocation14 + $0x6c0] sm:$0xff] }
 0x498   :  { %3394 = vmatpush3.bf16.msra.mxu1 %v1998_v39  ;;  %2902 = vmatprep.subr.bf16.mxu0 %v2326_v41  ;;  %v1872_v39 = vld [vmem:[#allocation14 + $0x3e8] sm:$0xff]  ;;  %v2388_v41 = vunpack.c.h.s8.bf16 %v1954_v37 }
 0x499   :  { %3395 = vmatprep.subr.bf16.mxu1 %v2047_v42  ;;  %v2222_v42 = vunpack.c.h.s8.bf16 %v1872_v39  ;;  %v2215_v48 = vunpack.c.l.s8.bf16 %v1872_v39  ;;  %v1956_v39 = vld [vmem:[#allocation14 + $0x688] sm:$0xff] }
 0x49a   :  { %v3617_v61 = vpop.eup %3616 }
 0x49b   :  { %2903 = vmatpush1.bf16.msra.mxu0 %v2325_v15  ;;  %v1948_v15 = vld [vmem:[#allocation14 + $0x648] sm:$0xff] }
 0x49c   :  { %v3619_v21 = vpop.eup %3618  ;;  %3396 = vmatpush3.bf16.msra.mxu1 %v1991_v46  ;;  %2904 = vmatprep.subr.bf16.mxu0 %v2319_v47  ;;  %v1893_v46 = vld [vmem:[#allocation14 + $0x490] sm:$0xff]  ;;  %v2381_v47 = vunpack.c.l.s8.bf16 %v1954_v37 }
 0x49d   :  { %v3377_v1 = vpack.c.bf16 %v3619_v21, %v3617_v61  ;;  %3397 = vmatprep.subr.bf16.mxu1 %v2040_v50  ;;  %v2375_v50 = vunpack.c.h.s8.bf16 %v1948_v15  ;;  %v2264_v61 = vunpack.c.h.s8.bf16 %v1893_v46  ;;  %v2374_v21 = vunpack.c.h.s8.bf16 %v1947_v49 }
 0x49e   :  { %v3621_v55 = vpop.eup %3620 }
 0x49f   :  { %3259 = vst [vmem:[#allocation17] sm:$0xff] %v3377_v1  ;;  %2905 = vmatpush1.bf16.msra.mxu0 %v2318_v51  ;;  %v1865_v51 = vld [vmem:[#allocation14 + $0x3b0] sm:$0xff]  ;;  %v2257_v1 = vunpack.c.l.s8.bf16 %v1893_v46 }
 0x4a0   :  { %v3623_v57 = vpop.eup %3622  ;;  %3398 = vmatpush3.bf16.msra.mxu1 %v1984_v33  ;;  %2906 = vmatprep.subr.bf16.mxu0 %v2312_v52  ;;  %v2208_v33 = vunpack.c.h.s8.bf16 %v1865_v51  ;;  %v2368_v52 = vunpack.c.l.s8.bf16 %v1948_v15  ;;  %v2201_v54 = vunpack.c.l.s8.bf16 %v1865_v51  ;;  %v1949_v46 = vld [vmem:[#allocation14 + $0x650] sm:$0xff] }
 0x4a1   :  { %v3381_v60 = vpack.c.bf16 %v3623_v57, %v3621_v55  ;;  %3399 = vmatprep.subr.bf16.mxu1 %v2033_v25  ;;  %v1858_v25 = vld [vmem:[#allocation14 + $0x378] sm:$0xff]  ;;  %v2376_v49 = vunpack.c.h.s8.bf16 %v1949_v46 }
 0x4a2   :  { %v2194_v55 = vunpack.c.h.s8.bf16 %v1858_v25 }
 0x4a3   :  { %3263 = vst [vmem:[#allocation17 + $0x1c] sm:$0xff] %v3381_v60  ;;  %2907 = vmatpush1.bf16.msra.mxu0 %v2311_v56  ;;  %v1830_v56 = vld [vmem:[#allocation14 + $0x298] sm:$0xff] }
 0x4a4   :  { %3400 = vmatpush3.bf16.msra.mxu1 %v1977_v58  ;;  %2908 = vmatprep.subr.bf16.mxu0 %v2417_v32  ;;  %v2138_v57 = vunpack.c.h.s8.bf16 %v1830_v56  ;;  %v2187_v58 = vunpack.c.l.s8.bf16 %v1858_v25  ;;  %v1851_v32 = vld [vmem:[#allocation14 + $0x340] sm:$0xff]  ;;  %v2131_v59 = vunpack.c.l.s8.bf16 %v1830_v56 }
 0x4a5   :  { %3429 = vmatprep.subr.bf16.mxu1 %v2306_v62  ;;  %v2180_v60 = vunpack.c.h.s8.bf16 %v1851_v32  ;;  %v1823_v62 = vld [vmem:[#allocation14 + $0x260] sm:$0xff] }
 0x4a6   :  { %v2124_v63 = vunpack.c.h.s8.bf16 %v1823_v62 }
 0x4a7   :  { %2968 = vmatmul.mubr.bf16.vlgmr.msra.gmra.mxu1 %v4054_v35  ;;  %2909 = vmatpush2.bf16.msra.mxu0 %v2416_v34  ;;  %v2285_v35 = vunpack.c.l.s8.bf16 %v1907_v18  ;;  %v2173_v34 = vunpack.c.l.s8.bf16 %v1851_v32  ;;  %v2110_v18 = vunpack.c.h.s8.bf16 %v1816_v16 }
 0x4a8   :  { %3430 = vmatpush3.bf16.msra.mxu1 %v2250_v36  ;;  %3049 = vmatprep.mubr.bf16.mxu1 %v4092_v40  ;;  %v2229_v40 = vunpack.c.l.s8.bf16 %v1879_v10  ;;  %v1844_v36 = vld [vmem:[#allocation14 + $0x308] sm:$0xff]  ;;  %v1970_v10 = vld [vmem:[#allocation14 + $0x6f8] sm:$0xff] }
 0x4a9   :  { %2910 = vmatprep.subr.bf16.mxu0 %v2410_v24  ;;  %3431 = vmatprep.subr.bf16.mxu1 %v2299_v2  ;;  %v2117_v24 = vunpack.c.l.s8.bf16 %v1823_v62  ;;  %v2166_v2 = vunpack.c.h.s8.bf16 %v1844_v36  ;;  %v2411_v27 = vunpack.c.l.s8.bf16 %v1970_v10 }
 0x4ab   :  { %2911 = vmatpush2.bf16.msra.mxu0 %v2409_v4  ;;  %v1837_v4 = vld [vmem:[#allocation14 + $0x2d0] sm:$0xff] }
 0x4ac   :  { %3432 = vmatpush3.bf16.msra.mxu1 %v2243_v5  ;;  %2912 = vmatprep.subr.bf16.mxu0 %v2403_v6  ;;  %v2152_v5 = vunpack.c.h.s8.bf16 %v1837_v4  ;;  %v1809_v6 = vld [vmem:[#allocation14 + $0x1f0] sm:$0xff] }
 0x4ad   :  { %3433 = vmatprep.subr.bf16.mxu1 %v2292_v8  ;;  %v2096_v7 = vunpack.c.h.s8.bf16 %v1809_v6  ;;  %v2145_v8 = vunpack.c.l.s8.bf16 %v1837_v4 }
 0x4af   :  { %2913 = vmatpush2.bf16.msra.mxu0 %v2402_v11  ;;  %v2089_v11 = vunpack.c.l.s8.bf16 %v1809_v6 }
 0x4b0   :  { %3434 = vmatpush3.bf16.msra.mxu1 %v2236_v13  ;;  %2914 = vmatprep.subr.bf16.mxu0 %v2396_v17  ;;  %v2418_v13 = vunpack.c.h.s8.bf16 %v1970_v10  ;;  %v1942_v17 = vld [vmem:[#allocation14 + $0x618] sm:$0xff] }
 0x4b1   :  { %3435 = vmatprep.subr.bf16.mxu1 %v2285_v35  ;;  %v2362_v35 = vunpack.c.h.s8.bf16 %v1942_v17 }
 0x4b3   :  { %2915 = vmatpush2.bf16.msra.mxu0 %v2395_v30  ;;  %v2355_v30 = vunpack.c.l.s8.bf16 %v1942_v17 }
 0x4b4   :  { %3436 = vmatpush3.bf16.msra.mxu1 %v2229_v40  ;;  %2916 = vmatprep.subr.bf16.mxu0 %v2389_v3  ;;  %v2404_v40 = vunpack.c.h.s8.bf16 %v1963_v29  ;;  %v1935_v3 = vld [vmem:[#allocation14 + $0x5e0] sm:$0xff] }
 0x4b5   :  { %3437 = vmatprep.subr.bf16.mxu1 %v2278_v38  ;;  %v2348_v37 = vunpack.c.h.s8.bf16 %v1935_v3  ;;  %v2397_v38 = vunpack.c.l.s8.bf16 %v1963_v29 }
 0x4b7   :  { %2917 = vmatpush2.bf16.msra.mxu0 %v2388_v41  ;;  %v2341_v41 = vunpack.c.l.s8.bf16 %v1935_v3 }
 0x4b8   :  { %3438 = vmatpush3.bf16.msra.mxu1 %v2222_v42  ;;  %2918 = vmatprep.subr.bf16.mxu0 %v2382_v23  ;;  %v2625_v42 = vpop.f32.mrf.mxu1  ;;  %v2390_v23 = vunpack.c.h.s8.bf16 %v1956_v39 }
 0x4b9   :  { %3439 = vmatprep.subr.bf16.mxu1 %v2271_v22  ;;  %v1928_v22 = vld [vmem:[#allocation14 + $0x5a8] sm:$0xff] }
 0x4ba   :  { %v2627_v15 = vpop.f32.mrf.mxu1 }
 0x4bb   :  { %2919 = vmatpush2.bf16.msra.mxu0 %v2381_v47  ;;  %v2327_v47 = vunpack.c.l.s8.bf16 %v1928_v22 }
 0x4bc   :  { %3440 = vmatpush3.bf16.msra.mxu1 %v2215_v48  ;;  %2920 = vmatprep.subr.bf16.mxu0 %v2375_v50  ;;  %v2629_v48 = vpop.f32.mrf.mxu1 }
 0x4bd   :  { %3441 = vmatprep.subr.bf16.mxu1 %v2264_v61  ;;  %v1921_v61 = vld [vmem:[#allocation14 + $0x570] sm:$0xff] }
 0x4be   :  { %v2320_v51 = vunpack.c.h.s8.bf16 %v1921_v61  ;;  %v2313_v25 = vunpack.c.l.s8.bf16 %v1921_v61 }
 0x4bf   :  { %2921 = vmatpush2.bf16.msra.mxu0 %v2374_v21  ;;  %v2631_v21 = vpop.f32.mrf.mxu1 }
 0x4c0   :  { %3442 = vmatpush3.bf16.msra.mxu1 %v2208_v33  ;;  %2922 = vmatprep.subr.bf16.mxu0 %v2368_v52  ;;  %v2369_v52 = vunpack.c.l.s8.bf16 %v1949_v46 }
 0x4c1   :  { %3443 = vmatprep.subr.bf16.mxu1 %v2257_v1 }
 0x4c3   :  { %2923 = vmatpush2.bf16.msra.mxu0 %v2367_v53 }
 0x4c4   :  { %3444 = vmatpush3.bf16.msra.mxu1 %v2201_v54  ;;  %3407 = vmatprep.subr.bf16.mxu0 %v2194_v55 }
 0x4c6   :  { %2925 = vmatmul.mubr.bf16.vlgmr.msra.gmra.mxu0 %v4112_v14  ;;  %v2668_v50 = vpop.f32.mrf.mxu0  ;;  %v2711_v1 = vpop.f32.mrf.mxu1 }
 0x4c7   :  { %3050 = vmatmul.mubr.bf16.vlgmr.msra.gmra.mxu1 %v4094_v43  ;;  %3408 = vmatpush3.bf16.msra.mxu0 %v2138_v57  ;;  %v2159_v43 = vunpack.c.l.s8.bf16 %v1844_v36  ;;  %v2669_v54 = vadd.f32 %v2668_v50, %v2625_v42 }
 0x4c8   :  { %3008 = vmatprep.mubr.bf16.mxu0 %v4065_v0  ;;  %3409 = vmatprep.subr.bf16.mxu0 %v2187_v58  ;;  %v2103_v0 = vunpack.c.l.s8.bf16 %v1816_v16  ;;  %v2670_v33 = vpop.f32.mrf.mxu0  ;;  %v2713_v55 = vpop.f32.mrf.mxu1 }
 0x4c9   :  { %v2671_v56 = vadd.f32 %v2670_v33, %v2627_v15  ;;  %v2712_v58 = vadd.f32 %v2711_v1, %v2669_v54  ;;  %v3124_v54 = vrot.slane %v4131_v26, %v4079_v45 }
 0x4ca   :  { %v2672_v53 = vpop.f32.mrf.mxu0 }
 0x4cb   :  { %3410 = vmatpush3.bf16.msra.mxu0 %v2131_v59  ;;  %v2673_v32 = vadd.f32 %v2672_v53, %v2629_v48  ;;  %v3112_v59 = vrot.slane %v4131_v26, %v3988_v20 }
 0x4cc   :  { %3411 = vmatprep.subr.bf16.mxu0 %v2180_v60  ;;  %v2674_v57 = vpop.f32.mrf.mxu0  ;;  %v2715_v60 = vpop.f32.mrf.mxu1 }
 0x4cd   :  { %v2675_v36 = vadd.f32 %v2674_v57, %v2631_v21 }
 0x4cf   :  { %3412 = vmatpush3.bf16.msra.mxu0 %v2124_v63  ;;  %v3163_v63 = vrot.slane %v4133_v28, %v3988_v20 }
 0x4d0   :  { %3413 = vmatprep.subr.bf16.mxu0 %v2173_v34  ;;  %v2714_v34 = vadd.f32 %v2713_v55, %v2671_v56 }
 0x4d3   :  { %3414 = vmatpush3.bf16.msra.mxu0 %v2117_v24 }
 0x4d4   :  { %3415 = vmatprep.subr.bf16.mxu0 %v2166_v2  ;;  %v3116_v2 = vrot.slane %v4131_v26, %v3985_v19 }
 0x4d7   :  { %3416 = vmatpush3.bf16.msra.mxu0 %v2110_v18  ;;  %v2716_v18 = vadd.f32 %v2715_v60, %v2673_v32  ;;  %v3175_v32 = vrot.slane %v4133_v28, %v4079_v45 }
 0x4d8   :  { %3417 = vmatprep.subr.bf16.mxu0 %v2159_v43 }
 0x4db   :  { %3418 = vmatpush3.bf16.msra.mxu0 %v2103_v0  ;;  %v3167_v0 = vrot.slane %v4133_v28, %v3985_v19 }
 0x4dc   :  { %3419 = vmatprep.subr.bf16.mxu0 %v2152_v5  ;;  %v2717_v5 = vpop.f32.mrf.mxu1 }
 0x4df   :  { %3420 = vmatpush3.bf16.msra.mxu0 %v2096_v7  ;;  %v2718_v7 = vadd.f32 %v2717_v5, %v2675_v36 }
 0x4e0   :  { %3421 = vmatprep.subr.bf16.mxu0 %v2145_v8 }
 0x4e3   :  { %3422 = vmatpush3.bf16.msra.mxu0 %v2089_v11 }
 0x4e4   :  { %3451 = vmatprep.subr.bf16.mxu0 %v2418_v13 }
 0x4e6   :  { %3009 = vmatmul.mubr.bf16.vlgmr.msra.gmra.mxu0 %v4067_v31  ;;  %v2334_v31 = vunpack.c.h.s8.bf16 %v1928_v22 }
 0x4e7   :  { %3452 = vmatpush3.bf16.msra.mxu0 %v2362_v35  ;;  %3090 = vmatprep.mubr.bf16.mxu0 %v4110_v9  ;;  %v2383_v9 = vunpack.c.l.s8.bf16 %v1956_v39 }
 0x4e8   :  { %3453 = vmatprep.subr.bf16.mxu0 %v2411_v27 }
 0x4eb   :  { %3454 = vmatpush3.bf16.msra.mxu0 %v2355_v30 }
 0x4ec   :  { %3455 = vmatprep.subr.bf16.mxu0 %v2404_v40 }
 0x4ef   :  { %3456 = vmatpush3.bf16.msra.mxu0 %v2348_v37 }
 0x4f0   :  { %3457 = vmatprep.subr.bf16.mxu0 %v2397_v38 }
 0x4f3   :  { %3458 = vmatpush3.bf16.msra.mxu0 %v2341_v41 }
 0x4f4   :  { %3459 = vmatprep.subr.bf16.mxu0 %v2390_v23 }
 0x4f7   :  { %3460 = vmatpush3.bf16.msra.mxu0 %v2334_v31 }
 0x4f8   :  { %3461 = vmatprep.subr.bf16.mxu0 %v2383_v9 }
 0x4fb   :  { %3462 = vmatpush3.bf16.msra.mxu0 %v2327_v47 }
 0x4fc   :  { %3463 = vmatprep.subr.bf16.mxu0 %v2376_v49 }
 0x4ff   :  { %3464 = vmatpush3.bf16.msra.mxu0 %v2320_v51  ;;  %v3120_v51 = vrot.slane %v4131_v26, %v4076_v44 }
 0x500   :  { %3465 = vmatprep.subr.bf16.mxu0 %v2369_v52  ;;  %v3171_v52 = vrot.slane %v4133_v28, %v4076_v44 }
 0x503   :  { %3466 = vmatpush3.bf16.msra.mxu0 %v2313_v25 }
 0x506   :  { %v2754_v62 = vpop.f32.mrf.mxu0  ;;  %3091 = vmatmul.mubr.bf16.vlgmr.msra.gmra.mxu0 %v4112_v14 }
 0x507   :  { %v2755_v24 = vadd.f32 %v2754_v62, %v2712_v58  ;;  %v2797_v39 = vpop.f32.mrf.mxu1 }
 0x508   :  { %v2756_v16 = vpop.f32.mrf.mxu0 }
 0x509   :  { %v3138_v43 = vmul.f32 %v3112_v59, %v2755_v24  ;;  %v2757_v4 = vadd.f32 %v2756_v16, %v2714_v34  ;;  %v2799_v41 = vpop.f32.mrf.mxu1 }
 0x50a   :  { %v2758_v6 = vpop.f32.mrf.mxu0 }
 0x50b   :  { %v3189_v8 = vadd.f32 %v3163_v63, %v3138_v43  ;;  %v3139_v20 = vmul.f32 %v3116_v2, %v2757_v4  ;;  %v2759_v10 = vadd.f32 %v2758_v6, %v2716_v18  ;;  %v2801_v42 = vpop.f32.mrf.mxu1 }
 0x50c   :  { %v2760_v14 = vpop.f32.mrf.mxu0 }
 0x50d   :  { %v3190_v11 = vadd.f32 %v3167_v0, %v3139_v20  ;;  %v3145_v13 = vmul.f32 %v3112_v59, %v2759_v10  ;;  %v2761_v17 = vadd.f32 %v2760_v14, %v2718_v7  ;;  %3624 = vtanh.f32 %v3189_v8  ;;  %v2803_v22 = vpop.f32.mrf.mxu1 }
 0x50f   :  { %3626 = vtanh.f32 %v3190_v11  ;;  %v3196_v35 = vadd.f32 %v3163_v63, %v3145_v13  ;;  %v3146_v27 = vmul.f32 %v3116_v2, %v2761_v17 }
 0x511   :  { %v3197_v29 = vadd.f32 %v3167_v0, %v3146_v27  ;;  %3628 = vtanh.f32 %v3196_v35 }
 0x513   :  { %3630 = vtanh.f32 %v3197_v29 }
 0x51a   :  { %v3625_v30 = vpop.eup %3624 }
 0x51c   :  { %v3627_v40 = vpop.eup %3626 }
 0x51d   :  { %v3378_v19 = vpack.c.bf16 %v3627_v40, %v3625_v30 }
 0x51e   :  { %v3629_v3 = vpop.eup %3628 }
 0x51f   :  { %3260 = vst [vmem:[#allocation17 + $0x8] sm:$0xff] %v3378_v19 }
 0x520   :  { %v3631_v37 = vpop.eup %3630 }
 0x521   :  { %v3382_v38 = vpack.c.bf16 %v3631_v37, %v3629_v3 }
 0x523   :  { %3264 = vst [vmem:[#allocation17 + $0x24] sm:$0xff] %v3382_v38 }
 0x546   :  { %v2840_v23 = vpop.f32.mrf.mxu0 }
 0x547   :  { %v2883_v15 = vpop.f32.mrf.mxu1  ;;  %v2841_v46 = vadd.f32 %v2840_v23, %v2797_v39 }
 0x548   :  { %v2842_v31 = vpop.f32.mrf.mxu0 }
 0x549   :  { %v2885_v47 = vpop.f32.mrf.mxu1  ;;  %v2843_v48 = vadd.f32 %v2842_v31, %v2799_v41  ;;  %v2884_v49 = vadd.f32 %v2883_v15, %v2841_v46  ;;  %v3128_v46 = vrot.slane %v4131_v26, %v4101_v12 }
 0x54a   :  { %v2844_v9 = vpop.f32.mrf.mxu0 }
 0x54b   :  { %v2845_v61 = vadd.f32 %v2844_v9, %v2801_v42  ;;  %v2887_v21 = vpop.f32.mrf.mxu1  ;;  %v2886_v1 = vadd.f32 %v2885_v47, %v2843_v48 }
 0x54c   :  { %v2846_v50 = vpop.f32.mrf.mxu0 }
 0x54d   :  { %v2847_v25 = vadd.f32 %v2846_v50, %v2803_v22  ;;  %v2888_v56 = vadd.f32 %v2887_v21, %v2845_v61  ;;  %v2889_v59 = vpop.f32.mrf.mxu1 }
 0x54f   :  { %v2890_v62 = vadd.f32 %v2889_v59, %v2847_v25 }
 0x567   :  { %v3401_v20 = vpop.f32.mrf.mxu1 }
 0x569   :  { %v3402_v10 = vpop.f32.mrf.mxu1 }
 0x56a   :  { %v3403_v19 = vadd.f32 %v3402_v10, %v3401_v20 }
 0x56b   :  { %v3404_v14 = vpop.f32.mrf.mxu1 }
 0x56d   :  { %v3405_v13 = vpop.f32.mrf.mxu1 }
 0x56e   :  { %v3406_v41 = vadd.f32 %v3405_v13, %v3404_v14 }
 0x586   :  { %v2926_v33 = vpop.f32.mrf.mxu0 }
 0x587   :  { %v2927_v53 = vadd.f32 %v2926_v33, %v2884_v49  ;;  %v3445_v35 = vpop.f32.mrf.mxu1  ;;  %v3179_v49 = vrot.slane %v4133_v28, %v4101_v12 }
 0x588   :  { %v2928_v55 = vpop.f32.mrf.mxu0 }
 0x589   :  { %v3140_v57 = vmul.f32 %v3120_v51, %v2927_v53  ;;  %v2929_v58 = vadd.f32 %v2928_v55, %v2886_v1  ;;  %v3446_v29 = vpop.f32.mrf.mxu1 }
 0x58a   :  { %v2930_v60 = vpop.f32.mrf.mxu0  ;;  %v3447_v42 = vadd.f32 %v3446_v29, %v3445_v35 }
 0x58b   :  { %v3191_v63 = vadd.f32 %v3171_v52, %v3140_v57  ;;  %v3141_v34 = vmul.f32 %v3124_v54, %v2929_v58  ;;  %v2931_v36 = vadd.f32 %v2930_v60, %v2888_v56  ;;  %v3448_v3 = vpop.f32.mrf.mxu1 }
 0x58c   :  { %v2932_v44 = vpop.f32.mrf.mxu0 }
 0x58d   :  { %v3192_v24 = vadd.f32 %v3175_v32, %v3141_v34  ;;  %v3147_v2 = vmul.f32 %v3120_v51, %v2931_v36  ;;  %v2933_v16 = vadd.f32 %v2932_v44, %v2890_v62  ;;  %3632 = vtanh.f32 %v3191_v63  ;;  %v3449_v23 = vpop.f32.mrf.mxu1 }
 0x58e   :  { %v3450_v48 = vadd.f32 %v3449_v23, %v3448_v3 }
 0x58f   :  { %3634 = vtanh.f32 %v3192_v24  ;;  %v3198_v18 = vadd.f32 %v3171_v52, %v3147_v2  ;;  %v3148_v43 = vmul.f32 %v3124_v54, %v2933_v16 }
 0x591   :  { %v3199_v4 = vadd.f32 %v3175_v32, %v3148_v43  ;;  %3636 = vtanh.f32 %v3198_v18 }
 0x593   :  { %3638 = vtanh.f32 %v3199_v4 }
 0x59a   :  { %v3633_v0 = vpop.eup %3632 }
 0x59c   :  { %v3635_v5 = vpop.eup %3634 }
 0x59d   :  { %v3379_v45 = vpack.c.bf16 %v3635_v5, %v3633_v0 }
 0x59e   :  { %v3637_v6 = vpop.eup %3636 }
 0x59f   :  { %3261 = vst [vmem:[#allocation17 + $0x10] sm:$0xff] %v3379_v45 }
 0x5a0   :  { %v3639_v7 = vpop.eup %3638 }
 0x5a1   :  { %v3383_v8 = vpack.c.bf16 %v3639_v7, %v3637_v6 }
 0x5a3   :  { %3265 = vst [vmem:[#allocation17 + $0x2c] sm:$0xff] %v3383_v8 }
 0x5a6   :  { %v3423_v11 = vpop.f32.mrf.mxu0 }
 0x5a8   :  { %v3424_v17 = vpop.f32.mrf.mxu0 }
 0x5a9   :  { %v3425_v30 = vadd.f32 %v3424_v17, %v3423_v11 }
 0x5aa   :  { %v3426_v27 = vpop.f32.mrf.mxu0 }
 0x5ab   :  { %v3011_v37 = vadd.f32 %v3425_v30, %v3403_v19 }
 0x5ac   :  { %v3427_v40 = vpop.f32.mrf.mxu0 }
 0x5ad   :  { %v3428_v38 = vadd.f32 %v3427_v40, %v3426_v27  ;;  %v3052_v15 = vadd.f32 %v3447_v42, %v3011_v37 }
 0x5af   :  { %v3014_v31 = vadd.f32 %v3428_v38, %v3406_v41 }
 0x5b1   :  { %v3055_v21 = vadd.f32 %v3450_v48, %v3014_v31 }
 0x5c6   :  { %v3467_v39 = vpop.f32.mrf.mxu0 }
 0x5c8   :  { %v3468_v22 = vpop.f32.mrf.mxu0 }
 0x5c9   :  { %v3469_v9 = vadd.f32 %v3468_v22, %v3467_v39 }
 0x5ca   :  { %v3470_v47 = vpop.f32.mrf.mxu0 }
 0x5cb   :  { %v3093_v50 = vadd.f32 %v3469_v9, %v3052_v15 }
 0x5cc   :  { %v3471_v61 = vpop.f32.mrf.mxu0 }
 0x5cd   :  { %v3142_v51 = vmul.f32 %v3128_v46, %v3093_v50  ;;  %v3472_v33 = vadd.f32 %v3471_v61, %v3470_v47 }
 0x5cf   :  { %v3193_v52 = vadd.f32 %v3179_v49, %v3142_v51  ;;  %v3096_v1 = vadd.f32 %v3472_v33, %v3055_v21 }
 0x5d1   :  { %3640 = vtanh.f32 %v3193_v52  ;;  %v3149_v25 = vmul.f32 %v3128_v46, %v3096_v1 }
 0x5d3   :  { %v3200_v53 = vadd.f32 %v3179_v49, %v3149_v25 }
 0x5d5   :  { %3642 = vtanh.f32 %v3200_v53 }
 0x5de   :  { %v3641_v54 = vpop.eup %3640 }
 0x5df   :  { %v3380_v55 = vpack.c.bf16 %v3641_v54, %v3641_v54 }
 0x5e1   :  { %3262 = vst [vmem:[#allocation17 + $0x18] sm:$0xf] %v3380_v55 }
 0x5e2   :  { %v3643_v26 = vpop.eup %3642 }
 0x5e3   :  { %v3384_v56 = vpack.c.bf16 %v3643_v26, %v3643_v26 }
 0x5e5   :  { %3266 = vst [vmem:[#allocation17 + $0x34] sm:$0xf] %v3384_v56 }
 0x5e6   :  { %3835 = shalt.err (!%p3832_p7)
}
 0x5e7   :  { %s3876_s27 = smov 448   ;;  %s3877_s28 = smov 28  }
 0x5e8   :  { %3278 = dma.vmem_to_hbm [thread:$0]  %s3273_s5, 896, %s4189_s11, [#allocation4], %s3876_s27, %s3876_s27, %s3877_s28  }
 0x5e9   :  { %3854 = dma.done.wait [#allocation4], 896  }
 0x5ea   :  { %3855 = vsyncadd [#allocation4], 4294966400 }
 0x5eb   :  { %3282 = vsyncpa [#allocation3], 1 }
 0x5ec   :  { %3283 = vsyncpa [#allocation6], 1 }
 0x5ed   :  { %3284 = vsyncpa [#allocation9], 1 }
 0x5ee   :  { %3285 = vsyncpa [#allocation12], 1 }
 0x5ef   :  { %3286 = vsyncpa [#allocation15], 1 }
 0x5f0   :  { %3287 = vsyncpa [#allocation4], 1 }

</bundles_post_ra>
